<compile_context>
chip_gen: v6e
topology: v6e:2x2x1
jax: 0.10.0
libtpu: 0.0.40
codegen_flags: <defaults>
</compile_context>

<pallas_src>
import math

import numpy as np

import jax
import jax.numpy as jnp
from jax import lax
from jax.experimental import pallas as pl
from jax.experimental.pallas import tpu as pltpu

LRELU_SLOPE = 0.01  # F.leaky_relu default negative_slope


# ----------------------------------------------------------------------------
# Trace-time (numpy) constants: fused upsample -> conv-tap operator
# ----------------------------------------------------------------------------

def _bilinear_matrix(in_size, scale):
    """(out, in) interpolation matrix matching torch bilinear upsample with
    align_corners=False (the nn.Upsample default when not specified)."""
    out_size = in_size * scale
    a = np.zeros((out_size, in_size), np.float32)
    inv = 1.0 / float(scale)
    for o in range(out_size):
        src = (o + 0.5) * inv - 0.5
        if src < 0.0:                      # torch clamps negative source coords
            src = 0.0
        i0 = min(int(np.floor(src)), in_size - 1)
        frac = src - i0
        i1 = min(i0 + 1, in_size - 1)
        a[o, i0] += 1.0 - frac
        a[o, i1] += frac
    return a


def _fused_upsample_tap_matrix(h, w, scale, ksize, pad):
    """Dense operator Mh: Mh[(oy*oW+ox), t*H*W + (iy*W+ix)] = weight of input
    pixel (iy,ix) in conv tap t (t = dy*k+dx) of output pixel (oy,ox), i.e.
    bilinear upsample followed by zero-padded im2col, folded into one matrix."""
    ah = _bilinear_matrix(h, scale)                      # (sH, H)
    aw = _bilinear_matrix(w, scale)                      # (sW, W)
    s_h, s_w = ah.shape[0], aw.shape[0]
    k2 = np.kron(ah, aw)                                 # (sH*sW, H*W)
    k3 = k2.reshape(s_h, s_w, h * w)
    kp = np.pad(k3, ((pad, pad), (pad, pad), (0, 0)))
    o_h = s_h + 2 * pad - ksize + 1
    o_w = s_w + 2 * pad - ksize + 1
    taps = [kp[dy:dy + o_h, dx:dx + o_w, :].reshape(o_h * o_w, h * w)
            for dy in range(ksize) for dx in range(ksize)]
    return np.concatenate(taps, axis=1), (o_h, o_w)      # (S_out, k*k*H*W)


# ----------------------------------------------------------------------------
# Pallas kernel: whole Gate forward for BB batch elements per grid step
# ----------------------------------------------------------------------------

def _gate_kernel(x_ref, mh_ref, wcat_ref, b_ref, o_ref, yv_ref):
    # x_ref   : (BB, HW, Cin)       bf16  flattened NHWC input feature map(s)
    # mh_ref  : (S_out, taps*HW)    bf16  fused upsample + pad + tap operator
    # wcat_ref: (Cin, taps*Cout)    bf16  conv weights, tap-major concatenated
    # b_ref   : (1, BB*Cout)        f32   conv bias (tiled per batch element)
    # o_ref   : (BB, S_out, Cout)   f32   sigmoid(leaky_relu(conv + bias))
    # yv_ref  : (taps*HW, BB*Cout)  bf16  VMEM scratch: stage-2 RHS
    bb, hw, cin = x_ref.shape
    cout = o_ref.shape[2]
    taps = mh_ref.shape[1] // hw

    # Stage 1: ONE fused channel-mix matmul for all k*k taps and all BB batch
    # elements (M = BB*HW, K = Cin, N = taps*Cout): single MXU weight load/drain.
    x2 = x_ref[...].reshape(bb * hw, cin)                    # free reshape
    yall = jnp.dot(x2, wcat_ref[...], preferred_element_type=jnp.float32)

    # Scatter into the stage-2 RHS layout (taps*HW, BB*Cout) with lane-aligned
    # full-128-lane column-block copies (static unroll, taps*BB <= 18 copies).
    for b in range(bb):
        for t in range(taps):
            yv_ref[t * hw:(t + 1) * hw, b * cout:(b + 1) * cout] = (
                yall[b * hw:(b + 1) * hw, t * cout:(t + 1) * cout]
                .astype(jnp.bfloat16))

    # Stage 2: fused upsample + zero-pad + conv-tap gather as ONE big matmul:
    #   conv[s, (b,c)] = sum_t (M_t @ (x_b @ W_t))[s, c] == (Mh @ Yv)[s, (b,c)]
    hmat = jnp.dot(mh_ref[...], yv_ref[...], preferred_element_type=jnp.float32)
    hmat = hmat + b_ref[...]                                 # bias, f32
    hmat = jnp.where(hmat >= 0, hmat, LRELU_SLOPE * hmat)    # leaky_relu, f32 VPU
    # sigmoid(z) = 0.5*tanh(z/2) + 0.5 : tanh runs on the EUP, no VPU divide.
    g = 0.5 * jnp.tanh(0.5 * hmat) + 0.5
    for b in range(bb):
        o_ref[b] = g[:, b * cout:(b + 1) * cout]


# ----------------------------------------------------------------------------
# Wrapper
# ----------------------------------------------------------------------------

def gate_forward(lstm_out, weight, bias, *, upsample_size):
    """lstm_out: (N, 256, H, W) NCHW; weight: (Cout, 256, k, k) (PyTorch OIHW);
    bias: (Cout,). Returns (N, Cout, s*H, s*W) float32 (conv padding fixed to 1,
    as in the PyTorch module)."""
    n, cin, h, w = lstm_out.shape
    cout, cin_w, kh, kw = weight.shape
    assert cin_w == cin and kh == kw, "square kernel with matching Cin expected"
    assert cout % 128 == 0, "lane-dense output path expects Cout % 128 == 0"
    ksize = kh
    pad = 1                                          # hard-coded in the module

    mh_np, (o_h, o_w) = _fused_upsample_tap_matrix(h, w, upsample_size, ksize, pad)
    hw = h * w
    s_out = o_h * o_w
    taps = ksize * ksize

    # Guard: the dense fused operator grows as (H*W)^2; refuse sizes that would
    # not fit comfortably in VMEM (v7x: 64 MiB physical).  See TODO(synk) above.
    const_bytes = (s_out * taps * hw + cin * taps * cout) * 2   # bf16 constants
    if const_bytes > 24 * 1024 * 1024:
        raise NotImplementedError(
            "spatial map too large for the dense fused-operator Gate kernel; "
            "switch to the halo-tiled variant")

    # Batch pairing: bb = 2 only when n >= 4 so every grid still has >= 2 steps
    # and neither v7x TensorCore goes idle.
    bb = 2 if (n >= 4 and n % 2 == 0) else 1

    # bf16 MXU operands; accumulation stays f32 inside the kernel.
    x_flat = jnp.transpose(lstm_out, (0, 2, 3, 1)).reshape(n, hw, cin)
    x_flat = x_flat.astype(jnp.bfloat16)                               # (N, HW, Cin)
    mh = jnp.asarray(mh_np).astype(jnp.bfloat16)                       # (S_out, taps*HW)
    w_taps = jnp.transpose(weight, (2, 3, 1, 0)).reshape(taps, cin, cout)
    wcat = jnp.transpose(w_taps, (1, 0, 2)).reshape(cin, taps * cout)
    wcat = wcat.astype(jnp.bfloat16)                                   # (Cin, taps*Cout)
    b_tiled = jnp.tile(bias.reshape(1, cout).astype(jnp.float32), (1, bb))

    def _call(const_pipeline_mode):
        const_kw = ({} if const_pipeline_mode is None
                    else {"pipeline_mode": const_pipeline_mode})
        return pl.pallas_call(
            _gate_kernel,
            out_shape=jax.ShapeDtypeStruct((n, s_out, cout), jnp.float32),
            grid=(n // bb,),
            in_specs=[
                pl.BlockSpec((bb, hw, cin), lambda i: (i, 0, 0)),
                pl.BlockSpec((s_out, taps * hw), lambda i: (0, 0), **const_kw),
                pl.BlockSpec((cin, taps * cout), lambda i: (0, 0), **const_kw),
                pl.BlockSpec((1, bb * cout), lambda i: (0, 0)),
            ],
            out_specs=pl.BlockSpec((bb, s_out, cout), lambda i: (i, 0, 0)),
            scratch_shapes=[pltpu.VMEM((taps * hw, bb * cout), jnp.bfloat16)],
            compiler_params=pltpu.CompilerParams(
                # Batch axis shards across v7x's 2 TensorCores; no accumulator axis.
                dimension_semantics=("parallel",),
                # ~4 MiB/step footprint; 32 MiB scoped VMEM is safe on v5e/v6e/v7x.
                vmem_limit_bytes=32 * 1024 * 1024,
            ),
        )(x_flat, mh, wcat, b_tiled)

    try:
        # Grid-invariant Mh / Wcat only need a single resident buffer.
        out_flat = _call(pl.Buffered(1))
    except Exception:  # pragma: no cover - Pallas build without pipeline_mode
        out_flat = _call(None)

    out = out_flat.reshape(n, o_h, o_w, cout)
    return jnp.transpose(out, (0, 3, 1, 2))          # NHWC -> NCHW


# ----------------------------------------------------------------------------
# Pure-JAX reference (f32) for correctness checking
# ----------------------------------------------------------------------------

def _gate_reference(lstm_out, weight, bias, upsample_size):
    _, _, h, w = lstm_out.shape
    ah = jnp.asarray(_bilinear_matrix(h, upsample_size))
    aw = jnp.asarray(_bilinear_matrix(w, upsample_size))
    x = lstm_out.astype(jnp.float32)
    up = jnp.einsum('oh,pw,nchw->ncop', ah, aw, x)
    y = lax.conv_general_dilated(
        up, weight.astype(jnp.float32), window_strides=(1, 1),
        padding=((1, 1), (1, 1)),
        dimension_numbers=('NCHW', 'OIHW', 'NCHW'))
    y = y + bias.astype(jnp.float32)[None, :, None, None]
    y = jnp.where(y >= 0, y, LRELU_SLOPE * y)
    return jax.nn.sigmoid(y)


if __name__ == "__main__":
    # Gate(upsample_size=2, kernel_size=3, num_filters=128) on an 8x8 LSTM map.
    CIN, H, W = 256, 8, 8
    COUT, KSIZE, SCALE = 128, 3, 2

    key = jax.random.PRNGKey(0)
    kx, kw_, kb = jax.random.split(key, 3)
    bound = 1.0 / math.sqrt(CIN * KSIZE * KSIZE)     # PyTorch Conv2d default init
    weight = jax.random.uniform(kw_, (COUT, CIN, KSIZE, KSIZE),
                                jnp.float32, -bound, bound)
    bias = jax.random.uniform(kb, (COUT,), jnp.float32, -bound, bound)

    # batch=2 exercises the bb=1 path (keeps both v7x TensorCores fed);
    # batch=4 exercises the batch-paired bb=2 path (doubles MXU N-fill).
    for n in (2, 4):
        x = jax.random.normal(jax.random.fold_in(kx, n), (n, CIN, H, W),
                              dtype=jnp.float32)
        out = gate_forward(x, weight, bias, upsample_size=SCALE)
        jax.block_until_ready(out)

        assert out.shape == (n, COUT, H * SCALE, W * SCALE)
        assert bool(jnp.isfinite(out).all())
        assert bool(jnp.all((out >= 0.0) & (out <= 1.0)))

        ref = _gate_reference(x, weight, bias, SCALE)
        max_err = float(jnp.max(jnp.abs(out - ref)))
        assert max_err < 3e-2, f"batch={n}: max abs error vs reference: {max_err}"

    print("KERNEL_OK")
</pallas_src>

<mosaic_0001>
module attributes {stable_mosaic.version = 11 : i64} {
  func.func @_gate_kernel(%arg0: i32, %arg1: memref<1x64x256xbf16, #tpu.memory_space<vmem>>, %arg2: memref<256x576xbf16, #tpu.memory_space<vmem>>, %arg3: memref<256x1152xbf16, #tpu.memory_space<vmem>>, %arg4: memref<1x128xf32, #tpu.memory_space<vmem>>, %arg5: memref<1x256x128xf32, #tpu.memory_space<vmem>>, %arg6: memref<576x128xbf16, #tpu.memory_space<vmem>>) attributes {dimension_semantics = [#tpu.dimension_semantics<parallel>], iteration_bounds = array<i64: 2>, scalar_prefetch = 0 : i64, scratch_operands = 1 : i64, tpu.core_type = #tpu.core_type<tc>, window_params = [{transform_indices = @transform_0, window_bounds = array<i64: 1, 64, 256>}, {pipeline_mode = #tpu.pipeline_mode<synchronous>, transform_indices = @transform_1, window_bounds = array<i64: 256, 576>}, {pipeline_mode = #tpu.pipeline_mode<synchronous>, transform_indices = @transform_2, window_bounds = array<i64: 256, 1152>}, {pipeline_mode = #tpu.pipeline_mode<synchronous>, transform_indices = @transform_3, window_bounds = array<i64: 1, 128>}, {transform_indices = @transform_4, window_bounds = array<i64: 1, 256, 128>}]} {
    %c0 = arith.constant 0 : index
    %c0_0 = arith.constant 0 : index
    %c0_1 = arith.constant 0 : index
    %0 = vector.load %arg1[%c0, %c0_0, %c0_1] : memref<1x64x256xbf16, #tpu.memory_space<vmem>>, vector<1x64x256xbf16>
    %1 = vector.shape_cast %0 : vector<1x64x256xbf16> to vector<64x256xbf16>
    %c0_2 = arith.constant 0 : index
    %c0_3 = arith.constant 0 : index
    %2 = vector.load %arg3[%c0_2, %c0_3] : memref<256x1152xbf16, #tpu.memory_space<vmem>>, vector<256x1152xbf16>
    %cst = arith.constant dense<0.000000e+00> : vector<64x1152xf32>
    %3 = tpu.matmul %1, %2, %cst {dimension_numbers = #tpu.dot_dimension_numbers<[1], [0], [0], [1], [0, 0, 1, 1], [], []>} : vector<64x256xbf16>, vector<256x1152xbf16>, vector<64x1152xf32> -> vector<64x1152xf32>
    %4 = vector.extract_strided_slice %3 {offsets = [0, 0], sizes = [64, 128], strides = [1, 1]} : vector<64x1152xf32> to vector<64x128xf32>
    %5 = arith.truncf %4 : vector<64x128xf32> to vector<64x128xbf16>
    %c0_4 = arith.constant 0 : index
    %c0_5 = arith.constant 0 : index
    %6 = vector.load %arg6[%c0_4, %c0_5] : memref<576x128xbf16, #tpu.memory_space<vmem>>, vector<64x128xbf16>
    tpu.vector_store %arg6[%c0_4, %c0_5], %5 {strides = array<i32>} : memref<576x128xbf16, #tpu.memory_space<vmem>>, vector<64x128xbf16>,
    %7 = vector.extract_strided_slice %3 {offsets = [0, 128], sizes = [64, 128], strides = [1, 1]} : vector<64x1152xf32> to vector<64x128xf32>
    %8 = arith.truncf %7 : vector<64x128xf32> to vector<64x128xbf16>
    %c64 = arith.constant 64 : index
    %c0_6 = arith.constant 0 : index
    %9 = vector.load %arg6[%c64, %c0_6] : memref<576x128xbf16, #tpu.memory_space<vmem>>, vector<64x128xbf16>
    tpu.vector_store %arg6[%c64, %c0_6], %8 {strides = array<i32>} : memref<576x128xbf16, #tpu.memory_space<vmem>>, vector<64x128xbf16>,
    %10 = vector.extract_strided_slice %3 {offsets = [0, 256], sizes = [64, 128], strides = [1, 1]} : vector<64x1152xf32> to vector<64x128xf32>
    %11 = arith.truncf %10 : vector<64x128xf32> to vector<64x128xbf16>
    %c128 = arith.constant 128 : index
    %c0_7 = arith.constant 0 : index
    %12 = vector.load %arg6[%c128, %c0_7] : memref<576x128xbf16, #tpu.memory_space<vmem>>, vector<64x128xbf16>
    tpu.vector_store %arg6[%c128, %c0_7], %11 {strides = array<i32>} : memref<576x128xbf16, #tpu.memory_space<vmem>>, vector<64x128xbf16>,
    %13 = vector.extract_strided_slice %3 {offsets = [0, 384], sizes = [64, 128], strides = [1, 1]} : vector<64x1152xf32> to vector<64x128xf32>
    %14 = arith.truncf %13 : vector<64x128xf32> to vector<64x128xbf16>
    %c192 = arith.constant 192 : index
    %c0_8 = arith.constant 0 : index
    %15 = vector.load %arg6[%c192, %c0_8] : memref<576x128xbf16, #tpu.memory_space<vmem>>, vector<64x128xbf16>
    tpu.vector_store %arg6[%c192, %c0_8], %14 {strides = array<i32>} : memref<576x128xbf16, #tpu.memory_space<vmem>>, vector<64x128xbf16>,
    %16 = vector.extract_strided_slice %3 {offsets = [0, 512], sizes = [64, 128], strides = [1, 1]} : vector<64x1152xf32> to vector<64x128xf32>
    %17 = arith.truncf %16 : vector<64x128xf32> to vector<64x128xbf16>
    %c256 = arith.constant 256 : index
    %c0_9 = arith.constant 0 : index
    %18 = vector.load %arg6[%c256, %c0_9] : memref<576x128xbf16, #tpu.memory_space<vmem>>, vector<64x128xbf16>
    tpu.vector_store %arg6[%c256, %c0_9], %17 {strides = array<i32>} : memref<576x128xbf16, #tpu.memory_space<vmem>>, vector<64x128xbf16>,
    %19 = vector.extract_strided_slice %3 {offsets = [0, 640], sizes = [64, 128], strides = [1, 1]} : vector<64x1152xf32> to vector<64x128xf32>
    %20 = arith.truncf %19 : vector<64x128xf32> to vector<64x128xbf16>
    %c320 = arith.constant 320 : index
    %c0_10 = arith.constant 0 : index
    %21 = vector.load %arg6[%c320, %c0_10] : memref<576x128xbf16, #tpu.memory_space<vmem>>, vector<64x128xbf16>
    tpu.vector_store %arg6[%c320, %c0_10], %20 {strides = array<i32>} : memref<576x128xbf16, #tpu.memory_space<vmem>>, vector<64x128xbf16>,
    %22 = vector.extract_strided_slice %3 {offsets = [0, 768], sizes = [64, 128], strides = [1, 1]} : vector<64x1152xf32> to vector<64x128xf32>
    %23 = arith.truncf %22 : vector<64x128xf32> to vector<64x128xbf16>
    %c384 = arith.constant 384 : index
    %c0_11 = arith.constant 0 : index
    %24 = vector.load %arg6[%c384, %c0_11] : memref<576x128xbf16, #tpu.memory_space<vmem>>, vector<64x128xbf16>
    tpu.vector_store %arg6[%c384, %c0_11], %23 {strides = array<i32>} : memref<576x128xbf16, #tpu.memory_space<vmem>>, vector<64x128xbf16>,
    %25 = vector.extract_strided_slice %3 {offsets = [0, 896], sizes = [64, 128], strides = [1, 1]} : vector<64x1152xf32> to vector<64x128xf32>
    %26 = arith.truncf %25 : vector<64x128xf32> to vector<64x128xbf16>
    %c448 = arith.constant 448 : index
    %c0_12 = arith.constant 0 : index
    %27 = vector.load %arg6[%c448, %c0_12] : memref<576x128xbf16, #tpu.memory_space<vmem>>, vector<64x128xbf16>
    tpu.vector_store %arg6[%c448, %c0_12], %26 {strides = array<i32>} : memref<576x128xbf16, #tpu.memory_space<vmem>>, vector<64x128xbf16>,
    %28 = vector.extract_strided_slice %3 {offsets = [0, 1024], sizes = [64, 128], strides = [1, 1]} : vector<64x1152xf32> to vector<64x128xf32>
    %29 = arith.truncf %28 : vector<64x128xf32> to vector<64x128xbf16>
    %c512 = arith.constant 512 : index
    %c0_13 = arith.constant 0 : index
    %30 = vector.load %arg6[%c512, %c0_13] : memref<576x128xbf16, #tpu.memory_space<vmem>>, vector<64x128xbf16>
    tpu.vector_store %arg6[%c512, %c0_13], %29 {strides = array<i32>} : memref<576x128xbf16, #tpu.memory_space<vmem>>, vector<64x128xbf16>,
    %c0_14 = arith.constant 0 : index
    %c0_15 = arith.constant 0 : index
    %31 = vector.load %arg2[%c0_14, %c0_15] : memref<256x576xbf16, #tpu.memory_space<vmem>>, vector<256x576xbf16>
    %c0_16 = arith.constant 0 : index
    %c0_17 = arith.constant 0 : index
    %32 = vector.load %arg6[%c0_16, %c0_17] : memref<576x128xbf16, #tpu.memory_space<vmem>>, vector<576x128xbf16>
    %cst_18 = arith.constant dense<0.000000e+00> : vector<256x128xf32>
    %33 = tpu.matmul %31, %32, %cst_18 {dimension_numbers = #tpu.dot_dimension_numbers<[1], [0], [0], [1], [0, 0, 1, 1], [], []>} : vector<256x576xbf16>, vector<576x128xbf16>, vector<256x128xf32> -> vector<256x128xf32>
    %c0_19 = arith.constant 0 : index
    %c0_20 = arith.constant 0 : index
    %34 = vector.load %arg4[%c0_19, %c0_20] : memref<1x128xf32, #tpu.memory_space<vmem>>, vector<1x128xf32>
    %35 = vector.broadcast %34 : vector<1x128xf32> to vector<256x128xf32>
    %36 = arith.addf %33, %35 : vector<256x128xf32>
    %cst_21 = arith.constant 0.000000e+00 : f32
    %37 = vector.broadcast %cst_21 : f32 to vector<256x128xf32>
    %38 = arith.cmpf oge, %36, %37 : vector<256x128xf32>
    %cst_22 = arith.constant 0.00999999977 : f32
    %39 = vector.broadcast %cst_22 : f32 to vector<256x128xf32>
    %40 = arith.mulf %39, %36 : vector<256x128xf32>
    %41 = arith.select %38, %36, %40 : vector<256x128xi1>, vector<256x128xf32>
    %cst_23 = arith.constant 5.000000e-01 : f32
    %42 = vector.broadcast %cst_23 : f32 to vector<256x128xf32>
    %43 = arith.mulf %42, %41 : vector<256x128xf32>
    %44 = math.tanh %43 : vector<256x128xf32>
    %cst_24 = arith.constant 5.000000e-01 : f32
    %45 = vector.broadcast %cst_24 : f32 to vector<256x128xf32>
    %46 = arith.mulf %45, %44 : vector<256x128xf32>
    %cst_25 = arith.constant 5.000000e-01 : f32
    %47 = vector.broadcast %cst_25 : f32 to vector<256x128xf32>
    %48 = arith.addf %46, %47 : vector<256x128xf32>
    %c0_26 = arith.constant 0 : index
    %c0_27 = arith.constant 0 : index
    %c0_28 = arith.constant 0 : index
    %49 = vector.load %arg5[%c0_26, %c0_27, %c0_28] : memref<1x256x128xf32, #tpu.memory_space<vmem>>, vector<1x256x128xf32>
    %50 = vector.shape_cast %49 : vector<1x256x128xf32> to vector<256x128xf32>
    %51 = vector.shape_cast %48 : vector<256x128xf32> to vector<1x256x128xf32>
    tpu.vector_store %arg5[%c0_26, %c0_27, %c0_28], %51 {strides = array<i32>} : memref<1x256x128xf32, #tpu.memory_space<vmem>>, vector<1x256x128xf32>,
    return
  }
  func.func @transform_0(%arg0: i32) -> (i32, i32, i32) {
    %c0_i32 = arith.constant 0 : i32
    %c0_i32_0 = arith.constant 0 : i32
    %c0_i32_1 = arith.constant 0 : i32
    return %arg0, %c0_i32, %c0_i32_0 : i32, i32, i32
  }
  func.func @transform_1(%arg0: i32) -> (i32, i32) {
    %c0_i32 = arith.constant 0 : i32
    %c0_i32_0 = arith.constant 0 : i32
    %c0_i32_1 = arith.constant 0 : i32
    return %c0_i32, %c0_i32_0 : i32, i32
  }
  func.func @transform_2(%arg0: i32) -> (i32, i32) {
    %c0_i32 = arith.constant 0 : i32
    %c0_i32_0 = arith.constant 0 : i32
    %c0_i32_1 = arith.constant 0 : i32
    return %c0_i32, %c0_i32_0 : i32, i32
  }
  func.func @transform_3(%arg0: i32) -> (i32, i32) {
    %c0_i32 = arith.constant 0 : i32
    %c0_i32_0 = arith.constant 0 : i32
    %c0_i32_1 = arith.constant 0 : i32
    return %c0_i32, %c0_i32_0 : i32, i32
  }
  func.func @transform_4(%arg0: i32) -> (i32, i32, i32) {
    %c0_i32 = arith.constant 0 : i32
    %c0_i32_0 = arith.constant 0 : i32
    %c0_i32_1 = arith.constant 0 : i32
    return %arg0, %c0_i32, %c0_i32_0 : i32, i32, i32
  }
}

module attributes {stable_mosaic.version = 11 : i64} {
  func.func @_gate_kernel(%arg0: i32, %arg1: memref<1x64x256xbf16, #tpu.memory_space<vmem>>, %arg2: memref<256x576xbf16, #tpu.memory_space<vmem>>, %arg3: memref<256x1152xbf16, #tpu.memory_space<vmem>>, %arg4: memref<1x128xf32, #tpu.memory_space<vmem>>, %arg5: memref<1x256x128xf32, #tpu.memory_space<vmem>>, %arg6: memref<576x128xbf16, #tpu.memory_space<vmem>>) attributes {dimension_semantics = [#tpu.dimension_semantics<parallel>], iteration_bounds = array<i64: 2>, scalar_prefetch = 0 : i64, scratch_operands = 1 : i64, tpu.core_type = #tpu.core_type<tc>, window_params = [{transform_indices = @transform_0, window_bounds = array<i64: 1, 64, 256>}, {pipeline_mode = #tpu.pipeline_mode<synchronous>, transform_indices = @transform_1, window_bounds = array<i64: 256, 576>}, {pipeline_mode = #tpu.pipeline_mode<synchronous>, transform_indices = @transform_2, window_bounds = array<i64: 256, 1152>}, {pipeline_mode = #tpu.pipeline_mode<synchronous>, transform_indices = @transform_3, window_bounds = array<i64: 1, 128>}, {transform_indices = @transform_4, window_bounds = array<i64: 1, 256, 128>}]} {
    %c0 = arith.constant 0 : index
    %c0_0 = arith.constant 0 : index
    %c0_1 = arith.constant 0 : index
    %0 = vector.load %arg1[%c0, %c0_0, %c0_1] : memref<1x64x256xbf16, #tpu.memory_space<vmem>>, vector<1x64x256xbf16>
    %1 = vector.shape_cast %0 : vector<1x64x256xbf16> to vector<64x256xbf16>
    %c0_2 = arith.constant 0 : index
    %c0_3 = arith.constant 0 : index
    %2 = vector.load %arg3[%c0_2, %c0_3] : memref<256x1152xbf16, #tpu.memory_space<vmem>>, vector<256x1152xbf16>
    %cst = arith.constant dense<0.000000e+00> : vector<64x1152xf32>
    %3 = tpu.matmul %1, %2, %cst {dimension_numbers = #tpu.dot_dimension_numbers<[1], [0], [0], [1], [0, 0, 1, 1], [], []>} : vector<64x256xbf16>, vector<256x1152xbf16>, vector<64x1152xf32> -> vector<64x1152xf32>
    %4 = vector.extract_strided_slice %3 {offsets = [0, 0], sizes = [64, 128], strides = [1, 1]} : vector<64x1152xf32> to vector<64x128xf32>
    %5 = arith.truncf %4 : vector<64x128xf32> to vector<64x128xbf16>
    %c0_4 = arith.constant 0 : index
    %c0_5 = arith.constant 0 : index
    %6 = vector.load %arg6[%c0_4, %c0_5] : memref<576x128xbf16, #tpu.memory_space<vmem>>, vector<64x128xbf16>
    tpu.vector_store %arg6[%c0_4, %c0_5], %5 {strides = array<i32>} : memref<576x128xbf16, #tpu.memory_space<vmem>>, vector<64x128xbf16>,
    %7 = vector.extract_strided_slice %3 {offsets = [0, 128], sizes = [64, 128], strides = [1, 1]} : vector<64x1152xf32> to vector<64x128xf32>
    %8 = arith.truncf %7 : vector<64x128xf32> to vector<64x128xbf16>
    %c64 = arith.constant 64 : index
    %c0_6 = arith.constant 0 : index
    %9 = vector.load %arg6[%c64, %c0_6] : memref<576x128xbf16, #tpu.memory_space<vmem>>, vector<64x128xbf16>
    tpu.vector_store %arg6[%c64, %c0_6], %8 {strides = array<i32>} : memref<576x128xbf16, #tpu.memory_space<vmem>>, vector<64x128xbf16>,
    %10 = vector.extract_strided_slice %3 {offsets = [0, 256], sizes = [64, 128], strides = [1, 1]} : vector<64x1152xf32> to vector<64x128xf32>
    %11 = arith.truncf %10 : vector<64x128xf32> to vector<64x128xbf16>
    %c128 = arith.constant 128 : index
    %c0_7 = arith.constant 0 : index
    %12 = vector.load %arg6[%c128, %c0_7] : memref<576x128xbf16, #tpu.memory_space<vmem>>, vector<64x128xbf16>
    tpu.vector_store %arg6[%c128, %c0_7], %11 {strides = array<i32>} : memref<576x128xbf16, #tpu.memory_space<vmem>>, vector<64x128xbf16>,
    %13 = vector.extract_strided_slice %3 {offsets = [0, 384], sizes = [64, 128], strides = [1, 1]} : vector<64x1152xf32> to vector<64x128xf32>
    %14 = arith.truncf %13 : vector<64x128xf32> to vector<64x128xbf16>
    %c192 = arith.constant 192 : index
    %c0_8 = arith.constant 0 : index
    %15 = vector.load %arg6[%c192, %c0_8] : memref<576x128xbf16, #tpu.memory_space<vmem>>, vector<64x128xbf16>
    tpu.vector_store %arg6[%c192, %c0_8], %14 {strides = array<i32>} : memref<576x128xbf16, #tpu.memory_space<vmem>>, vector<64x128xbf16>,
    %16 = vector.extract_strided_slice %3 {offsets = [0, 512], sizes = [64, 128], strides = [1, 1]} : vector<64x1152xf32> to vector<64x128xf32>
    %17 = arith.truncf %16 : vector<64x128xf32> to vector<64x128xbf16>
    %c256 = arith.constant 256 : index
    %c0_9 = arith.constant 0 : index
    %18 = vector.load %arg6[%c256, %c0_9] : memref<576x128xbf16, #tpu.memory_space<vmem>>, vector<64x128xbf16>
    tpu.vector_store %arg6[%c256, %c0_9], %17 {strides = array<i32>} : memref<576x128xbf16, #tpu.memory_space<vmem>>, vector<64x128xbf16>,
    %19 = vector.extract_strided_slice %3 {offsets = [0, 640], sizes = [64, 128], strides = [1, 1]} : vector<64x1152xf32> to vector<64x128xf32>
    %20 = arith.truncf %19 : vector<64x128xf32> to vector<64x128xbf16>
    %c320 = arith.constant 320 : index
    %c0_10 = arith.constant 0 : index
    %21 = vector.load %arg6[%c320, %c0_10] : memref<576x128xbf16, #tpu.memory_space<vmem>>, vector<64x128xbf16>
    tpu.vector_store %arg6[%c320, %c0_10], %20 {strides = array<i32>} : memref<576x128xbf16, #tpu.memory_space<vmem>>, vector<64x128xbf16>,
    %22 = vector.extract_strided_slice %3 {offsets = [0, 768], sizes = [64, 128], strides = [1, 1]} : vector<64x1152xf32> to vector<64x128xf32>
    %23 = arith.truncf %22 : vector<64x128xf32> to vector<64x128xbf16>
    %c384 = arith.constant 384 : index
    %c0_11 = arith.constant 0 : index
    %24 = vector.load %arg6[%c384, %c0_11] : memref<576x128xbf16, #tpu.memory_space<vmem>>, vector<64x128xbf16>
    tpu.vector_store %arg6[%c384, %c0_11], %23 {strides = array<i32>} : memref<576x128xbf16, #tpu.memory_space<vmem>>, vector<64x128xbf16>,
    %25 = vector.extract_strided_slice %3 {offsets = [0, 896], sizes = [64, 128], strides = [1, 1]} : vector<64x1152xf32> to vector<64x128xf32>
    %26 = arith.truncf %25 : vector<64x128xf32> to vector<64x128xbf16>
    %c448 = arith.constant 448 : index
    %c0_12 = arith.constant 0 : index
    %27 = vector.load %arg6[%c448, %c0_12] : memref<576x128xbf16, #tpu.memory_space<vmem>>, vector<64x128xbf16>
    tpu.vector_store %arg6[%c448, %c0_12], %26 {strides = array<i32>} : memref<576x128xbf16, #tpu.memory_space<vmem>>, vector<64x128xbf16>,
    %28 = vector.extract_strided_slice %3 {offsets = [0, 1024], sizes = [64, 128], strides = [1, 1]} : vector<64x1152xf32> to vector<64x128xf32>
    %29 = arith.truncf %28 : vector<64x128xf32> to vector<64x128xbf16>
    %c512 = arith.constant 512 : index
    %c0_13 = arith.constant 0 : index
    %30 = vector.load %arg6[%c512, %c0_13] : memref<576x128xbf16, #tpu.memory_space<vmem>>, vector<64x128xbf16>
    tpu.vector_store %arg6[%c512, %c0_13], %29 {strides = array<i32>} : memref<576x128xbf16, #tpu.memory_space<vmem>>, vector<64x128xbf16>,
    %c0_14 = arith.constant 0 : index
    %c0_15 = arith.constant 0 : index
    %31 = vector.load %arg2[%c0_14, %c0_15] : memref<256x576xbf16, #tpu.memory_space<vmem>>, vector<256x576xbf16>
    %c0_16 = arith.constant 0 : index
    %c0_17 = arith.constant 0 : index
    %32 = vector.load %arg6[%c0_16, %c0_17] : memref<576x128xbf16, #tpu.memory_space<vmem>>, vector<576x128xbf16>
    %cst_18 = arith.constant dense<0.000000e+00> : vector<256x128xf32>
    %33 = tpu.matmul %31, %32, %cst_18 {dimension_numbers = #tpu.dot_dimension_numbers<[1], [0], [0], [1], [0, 0, 1, 1], [], []>} : vector<256x576xbf16>, vector<576x128xbf16>, vector<256x128xf32> -> vector<256x128xf32>
    %c0_19 = arith.constant 0 : index
    %c0_20 = arith.constant 0 : index
    %34 = vector.load %arg4[%c0_19, %c0_20] : memref<1x128xf32, #tpu.memory_space<vmem>>, vector<1x128xf32>
    %35 = vector.broadcast %34 : vector<1x128xf32> to vector<256x128xf32>
    %36 = arith.addf %33, %35 : vector<256x128xf32>
    %cst_21 = arith.constant 0.000000e+00 : f32
    %37 = vector.broadcast %cst_21 : f32 to vector<256x128xf32>
    %38 = arith.cmpf oge, %36, %37 : vector<256x128xf32>
    %cst_22 = arith.constant 0.00999999977 : f32
    %39 = vector.broadcast %cst_22 : f32 to vector<256x128xf32>
    %40 = arith.mulf %39, %36 : vector<256x128xf32>
    %41 = arith.select %38, %36, %40 : vector<256x128xi1>, vector<256x128xf32>
    %cst_23 = arith.constant 5.000000e-01 : f32
    %42 = vector.broadcast %cst_23 : f32 to vector<256x128xf32>
    %43 = arith.mulf %42, %41 : vector<256x128xf32>
    %44 = math.tanh %43 : vector<256x128xf32>
    %cst_24 = arith.constant 5.000000e-01 : f32
    %45 = vector.broadcast %cst_24 : f32 to vector<256x128xf32>
    %46 = arith.mulf %45, %44 : vector<256x128xf32>
    %cst_25 = arith.constant 5.000000e-01 : f32
    %47 = vector.broadcast %cst_25 : f32 to vector<256x128xf32>
    %48 = arith.addf %46, %47 : vector<256x128xf32>
    %c0_26 = arith.constant 0 : index
    %c0_27 = arith.constant 0 : index
    %c0_28 = arith.constant 0 : index
    %49 = vector.load %arg5[%c0_26, %c0_27, %c0_28] : memref<1x256x128xf32, #tpu.memory_space<vmem>>, vector<1x256x128xf32>
    %50 = vector.shape_cast %49 : vector<1x256x128xf32> to vector<256x128xf32>
    %51 = vector.shape_cast %48 : vector<256x128xf32> to vector<1x256x128xf32>
    tpu.vector_store %arg5[%c0_26, %c0_27, %c0_28], %51 {strides = array<i32>} : memref<1x256x128xf32, #tpu.memory_space<vmem>>, vector<1x256x128xf32>,
    return
  }
  func.func @transform_0(%arg0: i32) -> (i32, i32, i32) {
    %c0_i32 = arith.constant 0 : i32
    %c0_i32_0 = arith.constant 0 : i32
    %c0_i32_1 = arith.constant 0 : i32
    return %arg0, %c0_i32, %c0_i32_0 : i32, i32, i32
  }
  func.func @transform_1(%arg0: i32) -> (i32, i32) {
    %c0_i32 = arith.constant 0 : i32
    %c0_i32_0 = arith.constant 0 : i32
    %c0_i32_1 = arith.constant 0 : i32
    return %c0_i32, %c0_i32_0 : i32, i32
  }
  func.func @transform_2(%arg0: i32) -> (i32, i32) {
    %c0_i32 = arith.constant 0 : i32
    %c0_i32_0 = arith.constant 0 : i32
    %c0_i32_1 = arith.constant 0 : i32
    return %c0_i32, %c0_i32_0 : i32, i32
  }
  func.func @transform_3(%arg0: i32) -> (i32, i32) {
    %c0_i32 = arith.constant 0 : i32
    %c0_i32_0 = arith.constant 0 : i32
    %c0_i32_1 = arith.constant 0 : i32
    return %c0_i32, %c0_i32_0 : i32, i32
  }
  func.func @transform_4(%arg0: i32) -> (i32, i32, i32) {
    %c0_i32 = arith.constant 0 : i32
    %c0_i32_0 = arith.constant 0 : i32
    %c0_i32_1 = arith.constant 0 : i32
    return %arg0, %c0_i32, %c0_i32_0 : i32, i32, i32
  }
}

</mosaic_0001>

<bundles_post_ra>
// kernel: tpu_custom_call.1
= control target key start
LH: loop header
LB: loop body
LE: loop exit
PB: predicated region body
PF: predicated region fallthrough
CT: control target
= control target key end

     0   :  { %9 = vsyncpa [#allocation4], 0  ;;  %s6307_s0 = inlined_call_operand.hbm [shape: bf16[2,64,256], index: 0, kind: input, shape index: {}]   ;;  %s6308_s1 = inlined_call_operand.vmem [shape: bf16[256,576], index: 1, kind: input, shape index: {}]   ;;  %s6309_s2 = inlined_call_operand.vmem [shape: bf16[256,1152], index: 2, kind: input, shape index: {}]   ;;  %s6310_s3 = inlined_call_operand.vmem [shape: f32[1,128], index: 3, kind: input, shape index: {}]   ;;  %s6311_s4 = inlined_call_operand.hbm [shape: f32[2,256,128], index: 4, kind: output, shape index: {}]  }
   0x1   :  { %11 = vsyncpa [#allocation4 + $0x1], 0 }
   0x2   :  { %12 = vsyncpa [#allocation5], 0 }
   0x3   :  { %14 = vsyncpa [#allocation5 + $0x1], 0  ;;  %s5143_s15 = smov 0   ;;  %s5145_s16 = smov 0  }
   0x4   :  { %s5147_s17 = smov 0   ;;  %s5149_s18 = smov 0  }
   0x5 LB: > { %s5164_s19 = sadd.s32 4294967295, %s5110_s18   ;;  %s3544_s20 = sadd.s32 4294967294, %s5110_s18   ;;  %s5110_s18 = sphi %s5149_s18, %s6336_s18   ;;  %s5106_s17 = sphi %s5147_s17, %s6335_s17   ;;  %s5102_s16 = sphi %s5145_s16, %s6334_s16   ;;  %s5098_s15 = sphi %s5143_s15, %s6333_s15  }
   0x6   : > { %s5168_s21 = sadd.s32 1, %s5110_s18   ;;  %s27_s22 = sadd.s32 1, %s5106_s17 }
   0x7   : > { %s24_s23 = ssub.s32 %s5110_s18, %s5168_s21  ;;  %p34_p0 = scmp.ne.s32.totalorder %s5106_s17, %s5102_s16 }
   0x8   : > { %p25_p1 = scmp.eq.s32.totalorder %s24_s23, 0  ;;  %p35_p2 = scmp.eq.s32.totalorder %s5110_s18, 0 }
   0x9   : > { %p40_p3 = scmp.ne.s32.totalorder %s5102_s16, %s5098_s15  ;;  %p41_p4 = scmp.eq.s32.totalorder %s5164_s19, 0 }
   0xa   : > { %s5180_s24 = scalar_select %p25_p1, %s5106_s17, %s27_s22  }
   0xb   : > { %p5182_p5 = por %p35_p2, %p34_p0  ;;  %p5186_p6 = por %p41_p4, %p40_p3 }
   0xc   : > { %p127_p7 = scmp.eq.s32.totalorder %s5164_s19, 1  ;;  %p133_p8 = scmp.eq.s32.totalorder %s3544_s20, 1 }
   0xd   : > { %s6315_s26 = scalar_select %p5186_p6, 1, 0 }
   0xe   : > { %p4548_p10 = scmp.lt.s32.totalorder %s5110_s18, 2  ;;  %p5193_p11 = por %p127_p7, %p34_p0 }
   0xf   : > { %p5197_p12 = por %p133_p8, %p40_p3  ;;  %s162_s29 = sand.u32 1, %s5106_s17  }
  0x10   : > { %s6316_s27 = scalar_select %p5193_p11, 1, 0 }
  0x11   : > { %s6317_s28 = scalar_select %p5197_p12, 1, 0 }
  0x12   : > { %s3915_s30 = sshll.u32 %s5110_s18, 10  ;;  %s3547_s5 = sshll.u32 %s162_s29, 6 }
  0x13   : > { %s5206_s8 = scalar_lea.hbm %s6307_s0, %s3915_s30  ;;  %s166_s9 = scalar_lea.vmem [#allocation3], %s3547_s5 }
  0x14   : > { %s173_s10 = sshll.u32 %s166_s9, 4  ;;  %p5210_p13 = pnand %p4548_p10, %p5182_p5  ;;  %s5214_s10 = int_to_ptr.vmem [resolvable:$true] %s173_s10 }
  0x15   : > { %s5216_s12 = scalar_lea.sflag [#allocation4], %s162_s29  ;;  %s5018_s13 = scalar_lea.hbm %s5206_s8, 1024 }
  0x16   : > { %p5019_p0 = scmp.ne.s32.totalorder %s5206_s8, %s5018_s13  ;;  %p5020_p1 = pneg %p5210_p13 }
  0x17   : > { %s5023_s22 = scalar_lea.hbm %s6307_s0, 2048  ;;  %p5024_p4 = scmp.lt.s32.totalorder %s5206_s8, %s6307_s0 }
  0x18   : > { %p5021_p2 = pnand %p5020_p1, %p5019_p0  ;;  %p5025_p5 = scmp.lt.s32.totalorder %s5023_s22, %s5018_s13 }
  0x1a   : > { %p5022_p3 = pneg %p5021_p2  ;;  %p5026_p7 = por %p5025_p5, %p5024_p4 }
  0x1c   : > { %p5027_p8 = pnand %p5026_p7, %p5022_p3 }
  0x1e   : > { %5030 = shalt.err (!%p5027_p8)
}
  0x1f   : > { %s5031_s29 = scalar_lea.vmem %s5214_s10, 1024  ;;  %s5112_s30 = smov [#allocation3]  }
  0x20   : > { %p5032_p10 = scmp.ne.s32.totalorder %s5214_s10, %s5031_s29  ;;  %s5036_s5 = sshll.u32 %s5112_s30, 4  ;;  %s5037_s5 = int_to_ptr.vmem [resolvable:$false] %s5036_s5 }
  0x21   : > { %s5038_s6 = scalar_lea.vmem %s5037_s5, 2048  ;;  %p5039_p2 = scmp.lt.s32.totalorder %s5214_s10, %s5037_s5 }
  0x22   : > { %p5034_p9 = pnand %p5032_p10, %p5020_p1  ;;  %p5040_p12 = scmp.lt.s32.totalorder %s5038_s6, %s5031_s29 }
  0x24   : > { %p5035_p0 = pneg %p5034_p9  ;;  %p5041_p11 = por %p5040_p12, %p5039_p2 }
  0x26   : > { %p5042_p6 = pnand %p5041_p11, %p5035_p0 }
  0x28   : > { %5045 = shalt.err (!%p5042_p6)
}
  0x29   : > { %s5113_s7 = smov 128   ;;  %s5114_s9 = smov 8  }
  0x2a   : > { %4543 = dma.hbm_to_vmem [thread:$0]  (!%p5210_p13), %s5206_s8, 1024, %s5214_s10, %s5216_s12, %s5113_s7, %s5113_s7, %s5114_s9  }
  0x2b   : > { %p3550_p9 = scmp.ge.s32.totalorder %s5110_s18, 1  ;;  %p181_p1 = scmp.lt.s32.totalorder %s5110_s18, 3 }
  0x2d   : > { %p182_p3 = pnand %p3550_p9, %p181_p1 }
  0x2f   : > { %185 = sbr.rel (%p182_p3) target bundleno = 825 (0x339), region = 36 }
  0x34   : > { %s5240_s13 = sand.u32 1, %s5102_s16   ;;  %p6319_p6 = scmp.ne.s32.totalorder %s6315_s26, 0 }
  0x35   : > { %s3551_s14 = sshll.u32 %s5240_s13, 6  ;;  %s188_s20 = scalar_lea.sflag [#allocation4], %s5240_s13 }
  0x36   : > { %s5244_s22 = scalar_lea.vmem [#allocation3], %s3551_s14 }
  0x37   : > { %5089 = dma.done.wait (%p6319_p6), %s188_s20, 1024  }
  0x38   : > { %5091 = vsyncadd (%p6319_p6), %s188_s20, 4294966272  ;;  %v4586_v0 = vld [vmem:[%s6309_s2 + $0x1fc] ss:$36 sps:$4 sm:$0xff]   ;;  %v4588_v1 = vld [vmem:[%s6309_s2 + $0x204] ss:$36 sps:$4 sm:$0xff]   ;;  %vm2669_vm0 = vcmask 523264  }
  0x39   : > { %1161 = vmatprep.subr.bf16.mxu0 %v4586_v0  ;;  %v4590_v2 = vld [vmem:[%s6309_s2 + $0x1f8] ss:$36 sps:$4 sm:$0xff]   ;;  %v4591_v3 = vld [vmem:[%s6309_s2 + $0x200] ss:$36 sps:$4 sm:$0xff]   ;;  %1234 = vmatprep.subr.bf16.mxu1 %v4588_v1  ;;  %v4596_v6 = vld [vmem:[%s6309_s2 + $0x1b0] ss:$36 sps:$4 sm:$0xff]  }
  0x3a   : > { %v4592_v4 = vld [vmem:[%s6309_s2 + $0x1b4] ss:$36 sps:$4 sm:$0xff]   ;;  %1162 = vmatpush1.bf16.msra.mxu0 %v4590_v2  ;;  %1235 = vmatpush1.bf16.msra.mxu1 %v4591_v3  ;;  %v4594_v5 = vld [vmem:[%s6309_s2 + $0x1bc] ss:$36 sps:$4 sm:$0xff]   ;;  %v4598_v8 = vld [vmem:[%s6309_s2 + $0x16c] ss:$36 sps:$4 sm:$0xff]  }
  0x3b   : > { %1163 = vmatprep.subr.bf16.mxu0 %v4592_v4  ;;  %v4597_v7 = vld [vmem:[%s6309_s2 + $0x1b8] ss:$36 sps:$4 sm:$0xff]   ;;  %1236 = vmatprep.subr.bf16.mxu1 %v4594_v5  ;;  %v4602_v10 = vld [vmem:[%s6309_s2 + $0x168] ss:$36 sps:$4 sm:$0xff]   ;;  %v4603_v11 = vld [vmem:[%s6309_s2 + $0x170] ss:$36 sps:$4 sm:$0xff]  }
  0x3c   : > { %v4600_v9 = vld [vmem:[%s6309_s2 + $0x174] ss:$36 sps:$4 sm:$0xff]   ;;  %v4604_v12 = vld [vmem:[%s6309_s2 + $0x124] ss:$36 sps:$4 sm:$0xff]   ;;  %v4606_v13 = vld [vmem:[%s6309_s2 + $0x12c] ss:$36 sps:$4 sm:$0xff]  }
  0x3d   : > { %v4608_v14 = vld [vmem:[%s6309_s2 + $0x120] ss:$36 sps:$4 sm:$0xff]   ;;  %v4609_v15 = vld [vmem:[%s6309_s2 + $0x128] ss:$36 sps:$4 sm:$0xff]   ;;  %v4614_v18 = vld [vmem:[%s6309_s2 + $0xd8] ss:$36 sps:$4 sm:$0xff]  }
  0x3e   : > { %1164 = vmatpush1.bf16.msra.mxu0 %v4596_v6  ;;  %1237 = vmatpush1.bf16.msra.mxu1 %v4597_v7  ;;  %v4610_v16 = vld [vmem:[%s6309_s2 + $0xdc] ss:$36 sps:$4 sm:$0xff]   ;;  %v4612_v17 = vld [vmem:[%s6309_s2 + $0xe4] ss:$36 sps:$4 sm:$0xff]   ;;  %v4616_v20 = vld [vmem:[%s6309_s2 + $0x94] ss:$36 sps:$4 sm:$0xff]  }
  0x3f   : > { %1165 = vmatprep.subr.bf16.mxu0 %v4598_v8  ;;  %1238 = vmatprep.subr.bf16.mxu1 %v4600_v9  ;;  %v4615_v19 = vld [vmem:[%s6309_s2 + $0xe0] ss:$36 sps:$4 sm:$0xff]   ;;  %v4620_v22 = vld [vmem:[%s6309_s2 + $0x90] ss:$36 sps:$4 sm:$0xff]   ;;  %v4621_v23 = vld [vmem:[%s6309_s2 + $0x98] ss:$36 sps:$4 sm:$0xff]  }
  0x40   : > { %v4618_v21 = vld [vmem:[%s6309_s2 + $0x9c] ss:$36 sps:$4 sm:$0xff]   ;;  %v4622_v24 = vld [vmem:[%s6309_s2 + $0x4c] ss:$36 sps:$4 sm:$0xff]   ;;  %v4624_v25 = vld [vmem:[%s6309_s2 + $0x54] ss:$36 sps:$4 sm:$0xff]  }
  0x41   : > { %v4626_v26 = vld [vmem:[%s6309_s2 + $0x48] ss:$36 sps:$4 sm:$0xff]   ;;  %v4627_v27 = vld [vmem:[%s6309_s2 + $0x50] ss:$36 sps:$4 sm:$0xff]   ;;  %v4632_v30 = vld [vmem:[%s6309_s2] ss:$36 sps:$4 sm:$0xff]  }
  0x42   : > { %1166 = vmatpush1.bf16.msra.mxu0 %v4602_v10  ;;  %1239 = vmatpush1.bf16.msra.mxu1 %v4603_v11  ;;  %v4628_v28 = vld [vmem:[%s6309_s2 + $0x4] ss:$36 sps:$4 sm:$0xff]   ;;  %v4630_v29 = vld [vmem:[%s6309_s2 + $0xc] ss:$36 sps:$4 sm:$0xff]   ;;  %v4634_v32 = vld [vmem:[%s6309_s2 + $0x43c] ss:$36 sps:$4 sm:$0xff]  }
  0x43   : > { %1167 = vmatprep.subr.bf16.mxu0 %v4604_v12  ;;  %1240 = vmatprep.subr.bf16.mxu1 %v4606_v13  ;;  %v4633_v31 = vld [vmem:[%s6309_s2 + $0x8] ss:$36 sps:$4 sm:$0xff]   ;;  %v4638_v34 = vld [vmem:[%s6309_s2 + $0x438] ss:$36 sps:$4 sm:$0xff]   ;;  %v4639_v35 = vld [vmem:[%s6309_s2 + $0x440] ss:$36 sps:$4 sm:$0xff]  }
  0x44   : > { %v4636_v33 = vld [vmem:[%s6309_s2 + $0x444] ss:$36 sps:$4 sm:$0xff]   ;;  %v4640_v36 = vld [vmem:[%s6309_s2 + $0x3f4] ss:$36 sps:$4 sm:$0xff]   ;;  %v4642_v37 = vld [vmem:[%s6309_s2 + $0x3fc] ss:$36 sps:$4 sm:$0xff]  }
  0x45   : > { %v4644_v38 = vld [vmem:[%s6309_s2 + $0x3f0] ss:$36 sps:$4 sm:$0xff]   ;;  %v4645_v39 = vld [vmem:[%s6309_s2 + $0x3f8] ss:$36 sps:$4 sm:$0xff]   ;;  %v4650_v42 = vld [vmem:[%s6309_s2 + $0x3a8] ss:$36 sps:$4 sm:$0xff]  }
  0x46   : > { %1168 = vmatpush1.bf16.msra.mxu0 %v4608_v14  ;;  %1241 = vmatpush1.bf16.msra.mxu1 %v4609_v15  ;;  %v4646_v40 = vld [vmem:[%s6309_s2 + $0x3ac] ss:$36 sps:$4 sm:$0xff]   ;;  %v4648_v41 = vld [vmem:[%s6309_s2 + $0x3b4] ss:$36 sps:$4 sm:$0xff]   ;;  %v4652_v44 = vld [vmem:[%s6309_s2 + $0x364] ss:$36 sps:$4 sm:$0xff]  }
  0x47   : > { %1169 = vmatprep.subr.bf16.mxu0 %v4610_v16  ;;  %1242 = vmatprep.subr.bf16.mxu1 %v4612_v17  ;;  %v4651_v43 = vld [vmem:[%s6309_s2 + $0x3b0] ss:$36 sps:$4 sm:$0xff]   ;;  %v4656_v46 = vld [vmem:[%s6309_s2 + $0x360] ss:$36 sps:$4 sm:$0xff]   ;;  %v4657_v47 = vld [vmem:[%s6309_s2 + $0x368] ss:$36 sps:$4 sm:$0xff]  }
  0x48   : > { %v4654_v45 = vld [vmem:[%s6309_s2 + $0x36c] ss:$36 sps:$4 sm:$0xff]   ;;  %v4658_v49 = vld [vmem:[%s6309_s2 + $0x31c] ss:$36 sps:$4 sm:$0xff]   ;;  %v4660_v50 = vld [vmem:[%s6309_s2 + $0x324] ss:$36 sps:$4 sm:$0xff]  }
  0x49   : > { %v5395_v48 = vld [vmem:[%s5244_s22 + $0x4] ss:$8 sps:$4 sm:$0xff]   ;;  %v4662_v51 = vld [vmem:[%s6309_s2 + $0x318] ss:$36 sps:$4 sm:$0xff]   ;;  %v4668_v55 = vld [vmem:[%s6309_s2 + $0x2d0] ss:$36 sps:$4 sm:$0xff]  }
  0x4a   : > { %1170 = vmatpush1.bf16.msra.mxu0 %v4614_v18  ;;  %1243 = vmatpush1.bf16.msra.mxu1 %v4615_v19  ;;  %v4663_v52 = vld [vmem:[%s6309_s2 + $0x320] ss:$36 sps:$4 sm:$0xff]   ;;  %v4664_v53 = vld [vmem:[%s6309_s2 + $0x2d4] ss:$36 sps:$4 sm:$0xff]   ;;  %v4670_v57 = vld [vmem:[%s6309_s2 + $0x28c] ss:$36 sps:$4 sm:$0xff]  }
  0x4b   : > { %1171 = vmatprep.subr.bf16.mxu0 %v4616_v20  ;;  %1244 = vmatprep.subr.bf16.mxu1 %v4618_v21  ;;  %v4666_v54 = vld [vmem:[%s6309_s2 + $0x2dc] ss:$36 sps:$4 sm:$0xff]   ;;  %v4672_v58 = vld [vmem:[%s6309_s2 + $0x294] ss:$36 sps:$4 sm:$0xff]   ;;  %v4674_v59 = vld [vmem:[%s6309_s2 + $0x288] ss:$36 sps:$4 sm:$0xff]  }
  0x4c   : > { %1193 = vmatprep.mubr.bf16.mxu0 %v5395_v48  ;;  %1266 = vmatprep.mubr.bf16.mxu1 %v5395_v48  ;;  %v4669_v56 = vld [vmem:[%s6309_s2 + $0x2d8] ss:$36 sps:$4 sm:$0xff]   ;;  %v4675_v60 = vld [vmem:[%s6309_s2 + $0x290] ss:$36 sps:$4 sm:$0xff]   ;;  %v4676_v61 = vld [vmem:[%s6309_s2 + $0x244] ss:$36 sps:$4 sm:$0xff]  }
  0x4d   : > { %v4678_v62 = vld [vmem:[%s6309_s2 + $0x24c] ss:$36 sps:$4 sm:$0xff]   ;;  %v4680_v63 = vld [vmem:[%s6309_s2 + $0x240] ss:$36 sps:$4 sm:$0xff]   ;;  %v4690_v2 = vld [vmem:[%s6309_s2 + $0x214] ss:$36 sps:$4 sm:$0xff]  }
  0x4e   : > { %1172 = vmatpush1.bf16.msra.mxu0 %v4620_v22  ;;  %1245 = vmatpush1.bf16.msra.mxu1 %v4621_v23  ;;  %v4681_v0 = vld [vmem:[%s6309_s2 + $0x248] ss:$36 sps:$4 sm:$0xff]   ;;  %v4688_v5 = vld [vmem:[%s6309_s2 + $0x210] ss:$36 sps:$4 sm:$0xff]   ;;  %v4691_v9 = vld [vmem:[%s6309_s2 + $0x1c0] ss:$36 sps:$4 sm:$0xff]  }
  0x4f   : > { %1173 = vmatprep.subr.bf16.mxu0 %v4622_v24  ;;  %1246 = vmatprep.subr.bf16.mxu1 %v4624_v25  ;;  %v4687_v1 = vld [vmem:[%s6309_s2 + $0x20c] ss:$36 sps:$4 sm:$0xff]   ;;  %v5454_v3 = vld [vmem:[%s5244_s22] ss:$8 sps:$4 sm:$0xff]   ;;  %v5469_v8 = vld [vmem:[%s5244_s22 + $0x14] ss:$8 sps:$4 sm:$0xff]  }
  0x50   : > { %v4685_v4 = vld [vmem:[%s6309_s2 + $0x208] ss:$36 sps:$4 sm:$0xff]   ;;  %v4702_v11 = vld [vmem:[%s6309_s2 + $0x17c] ss:$36 sps:$4 sm:$0xff]   ;;  %v5488_v13 = vld [vmem:[%s5244_s22 + $0x10] ss:$8 sps:$4 sm:$0xff]  }
  0x51   : > { %v4693_v6 = vld [vmem:[%s6309_s2 + $0x1c4] ss:$36 sps:$4 sm:$0xff]   ;;  %v4696_v7 = vld [vmem:[%s6309_s2 + $0x1cc] ss:$36 sps:$4 sm:$0xff]   ;;  %v4700_v14 = vld [vmem:[%s6309_s2 + $0x178] ss:$36 sps:$4 sm:$0xff]  }
  0x52   : > { %1174 = vmatpush1.bf16.msra.mxu0 %v4626_v26  ;;  %1247 = vmatpush1.bf16.msra.mxu1 %v4627_v27  ;;  %v4694_v10 = vld [vmem:[%s6309_s2 + $0x1c8] ss:$36 sps:$4 sm:$0xff]   ;;  %v4703_v15 = vld [vmem:[%s6309_s2 + $0x180] ss:$36 sps:$4 sm:$0xff]   ;;  %v4708_v16 = vld [vmem:[%s6309_s2 + $0x134] ss:$36 sps:$4 sm:$0xff]  }
  0x53   : > { %1175 = vmatprep.subr.bf16.mxu0 %v4628_v28  ;;  %1248 = vmatprep.subr.bf16.mxu1 %v4630_v29  ;;  %v4705_v12 = vld [vmem:[%s6309_s2 + $0x184] ss:$36 sps:$4 sm:$0xff]   ;;  %v4711_v17 = vld [vmem:[%s6309_s2 + $0x13c] ss:$36 sps:$4 sm:$0xff]   ;;  %v4706_v19 = vld [vmem:[%s6309_s2 + $0x130] ss:$36 sps:$4 sm:$0xff]  }
  0x54   : > { %v5503_v18 = vld [vmem:[%s5244_s22 + $0x24] ss:$8 sps:$4 sm:$0xff]   ;;  %v4709_v20 = vld [vmem:[%s6309_s2 + $0x138] ss:$36 sps:$4 sm:$0xff]   ;;  %v5522_v23 = vld [vmem:[%s5244_s22 + $0x20] ss:$8 sps:$4 sm:$0xff]  }
  0x55   : > { %v4717_v21 = vld [vmem:[%s6309_s2 + $0xec] ss:$36 sps:$4 sm:$0xff]   ;;  %v4720_v22 = vld [vmem:[%s6309_s2 + $0xf4] ss:$36 sps:$4 sm:$0xff]   ;;  %v4723_v26 = vld [vmem:[%s6309_s2 + $0xa4] ss:$36 sps:$4 sm:$0xff]  }
  0x56   : > { %1176 = vmatpush1.bf16.msra.mxu0 %v4632_v30  ;;  %1249 = vmatpush1.bf16.msra.mxu1 %v4633_v31  ;;  %v4715_v24 = vld [vmem:[%s6309_s2 + $0xe8] ss:$36 sps:$4 sm:$0xff]   ;;  %v4718_v25 = vld [vmem:[%s6309_s2 + $0xf0] ss:$36 sps:$4 sm:$0xff]   ;;  %v4721_v29 = vld [vmem:[%s6309_s2 + $0xa0] ss:$36 sps:$4 sm:$0xff]  }
  0x57   : > { %1177 = vmatprep.subr.bf16.mxu0 %v4634_v32  ;;  %1250 = vmatprep.subr.bf16.mxu1 %v4636_v33  ;;  %v4726_v27 = vld [vmem:[%s6309_s2 + $0xac] ss:$36 sps:$4 sm:$0xff]   ;;  %v5537_v28 = vld [vmem:[%s5244_s22 + $0x34] ss:$8 sps:$4 sm:$0xff]   ;;  %v4735_v32 = vld [vmem:[%s6309_s2 + $0x64] ss:$36 sps:$4 sm:$0xff]  }
  0x58   : > { %v4724_v30 = vld [vmem:[%s6309_s2 + $0xa8] ss:$36 sps:$4 sm:$0xff]   ;;  %v4732_v31 = vld [vmem:[%s6309_s2 + $0x5c] ss:$36 sps:$4 sm:$0xff]   ;;  %v5556_v33 = vld [vmem:[%s5244_s22 + $0x30] ss:$8 sps:$4 sm:$0xff]  }
  0x59   : > { %s3552_s14 = sshll.u32 %s5240_s13, 8  ;;  %s3988_s8 = sshll.u32 %s5164_s19, 12 }
  0x5a   : > { %1178 = vmatpush2.bf16.msra.mxu0 %v4638_v34  ;;  %1251 = vmatpush2.bf16.msra.mxu1 %v4639_v35  ;;  %v4730_v34 = vld [vmem:[%s6309_s2 + $0x58] ss:$36 sps:$4 sm:$0xff]   ;;  %v4733_v35 = vld [vmem:[%s6309_s2 + $0x60] ss:$36 sps:$4 sm:$0xff]   ;;  %s6178_s20 = scalar_lea.vmem [#allocation6], %s3552_s14  ;;  %s6261_s23 = scalar_lea.hbm %s6311_s4, %s3988_s8 }
  0x5b   : > { %1179 = vmatprep.subr.bf16.mxu0 %v4640_v36  ;;  %1252 = vmatprep.subr.bf16.mxu1 %v4642_v37  ;;  %v4738_v36 = vld [vmem:[%s6309_s2 + $0x14] ss:$36 sps:$4 sm:$0xff]   ;;  %v4741_v37 = vld [vmem:[%s6309_s2 + $0x1c] ss:$36 sps:$4 sm:$0xff]   ;;  %s3471_s10 = sshll.u32 %s6178_s20, 4  ;;  %s3458_s25 = scalar_lea.sflag [#allocation5], %s5240_s13  ;;  %s6263_s10 = int_to_ptr.vmem [resolvable:$true] %s3471_s10 }
  0x5c   : > { %s5046_s19 = scalar_lea.vmem %s6263_s10, 4096  ;;  %p6330_p12 = scmp.ne.s32.totalorder %s6316_s27, 0 }
  0x5d   : > { %p5047_p11 = scmp.ne.s32.totalorder %s6263_s10, %s5046_s19  ;;  %s5115_s29 = smov [#allocation6]  }
  0x5e   : > { %1180 = vmatpush2.bf16.msra.mxu0 %v4644_v38  ;;  %1253 = vmatpush2.bf16.msra.mxu1 %v4645_v39  ;;  %v4736_v38 = vld [vmem:[%s6309_s2 + $0x10] ss:$36 sps:$4 sm:$0xff]   ;;  %v4739_v39 = vld [vmem:[%s6309_s2 + $0x18] ss:$36 sps:$4 sm:$0xff]   ;;  %s5050_s30 = sshll.u32 %s5115_s29, 4  ;;  %s5051_s30 = int_to_ptr.vmem [resolvable:$false] %s5050_s30 }
  0x5f   : > { %1181 = vmatprep.subr.bf16.mxu0 %v4646_v40  ;;  %1254 = vmatprep.subr.bf16.mxu1 %v4648_v41  ;;  %v4744_v40 = vld [vmem:[%s6309_s2 + $0x44c] ss:$36 sps:$4 sm:$0xff]   ;;  %v4747_v41 = vld [vmem:[%s6309_s2 + $0x454] ss:$36 sps:$4 sm:$0xff]   ;;  %p5048_p13 = pnand %p5047_p11, %p6330_p12  ;;  %s5052_s22 = scalar_lea.vmem %s5051_s30, 8192 }
  0x60   : > { %p5053_p5 = scmp.lt.s32.totalorder %s6263_s10, %s5051_s30  ;;  %p5054_p7 = scmp.lt.s32.totalorder %s5052_s22, %s5046_s19 }
  0x61   : > { %p5049_p4 = pneg %p5048_p13 }
  0x62   : > { %1182 = vmatpush2.bf16.msra.mxu0 %v4650_v42  ;;  %1255 = vmatpush2.bf16.msra.mxu1 %v4651_v43  ;;  %v4742_v42 = vld [vmem:[%s6309_s2 + $0x448] ss:$36 sps:$4 sm:$0xff]   ;;  %v4745_v43 = vld [vmem:[%s6309_s2 + $0x450] ss:$36 sps:$4 sm:$0xff]   ;;  %p5055_p8 = por %p5054_p7, %p5053_p5 }
  0x63   : > { %1183 = vmatprep.subr.bf16.mxu0 %v4652_v44  ;;  %1256 = vmatprep.subr.bf16.mxu1 %v4654_v45  ;;  %v4750_v44 = vld [vmem:[%s6309_s2 + $0x404] ss:$36 sps:$4 sm:$0xff]   ;;  %v4753_v45 = vld [vmem:[%s6309_s2 + $0x40c] ss:$36 sps:$4 sm:$0xff]  }
  0x64   : > { %p5056_p10 = pnand %p5055_p8, %p5049_p4 }
  0x66   : > { %1184 = vmatpush2.bf16.msra.mxu0 %v4656_v46  ;;  %1257 = vmatpush2.bf16.msra.mxu1 %v4657_v47  ;;  %v4748_v46 = vld [vmem:[%s6309_s2 + $0x400] ss:$36 sps:$4 sm:$0xff]   ;;  %v4751_v47 = vld [vmem:[%s6309_s2 + $0x408] ss:$36 sps:$4 sm:$0xff]  }
  0x67   : > { %1185 = vmatprep.subr.bf16.mxu0 %v4658_v49  ;;  %1258 = vmatprep.subr.bf16.mxu1 %v4660_v50  ;;  %v4756_v49 = vld [vmem:[%s6309_s2 + $0x3bc] ss:$36 sps:$4 sm:$0xff]   ;;  %v4759_v50 = vld [vmem:[%s6309_s2 + $0x3c4] ss:$36 sps:$4 sm:$0xff]  }
  0x6a   : > { %1186 = vmatpush2.bf16.msra.mxu0 %v4662_v51  ;;  %1259 = vmatpush2.bf16.msra.mxu1 %v4663_v52  ;;  %v4754_v51 = vld [vmem:[%s6309_s2 + $0x3b8] ss:$36 sps:$4 sm:$0xff]   ;;  %v4757_v52 = vld [vmem:[%s6309_s2 + $0x3c0] ss:$36 sps:$4 sm:$0xff]  }
  0x6b   : > { %1187 = vmatprep.subr.bf16.mxu0 %v4664_v53  ;;  %1260 = vmatprep.subr.bf16.mxu1 %v4666_v54  ;;  %v4762_v53 = vld [vmem:[%s6309_s2 + $0x374] ss:$36 sps:$4 sm:$0xff]   ;;  %v4765_v54 = vld [vmem:[%s6309_s2 + $0x37c] ss:$36 sps:$4 sm:$0xff]  }
  0x6e   : > { %1188 = vmatpush2.bf16.msra.mxu0 %v4668_v55  ;;  %1261 = vmatpush2.bf16.msra.mxu1 %v4669_v56  ;;  %v4760_v55 = vld [vmem:[%s6309_s2 + $0x370] ss:$36 sps:$4 sm:$0xff]   ;;  %v4763_v56 = vld [vmem:[%s6309_s2 + $0x378] ss:$36 sps:$4 sm:$0xff]  }
  0x6f   : > { %1189 = vmatprep.subr.bf16.mxu0 %v4670_v57  ;;  %1262 = vmatprep.subr.bf16.mxu1 %v4672_v58  ;;  %v4768_v57 = vld [vmem:[%s6309_s2 + $0x32c] ss:$36 sps:$4 sm:$0xff]   ;;  %v4771_v58 = vld [vmem:[%s6309_s2 + $0x334] ss:$36 sps:$4 sm:$0xff]  }
  0x72   : > { %1190 = vmatpush2.bf16.msra.mxu0 %v4674_v59  ;;  %1263 = vmatpush2.bf16.msra.mxu1 %v4675_v60  ;;  %v4766_v59 = vld [vmem:[%s6309_s2 + $0x328] ss:$36 sps:$4 sm:$0xff]   ;;  %v4769_v60 = vld [vmem:[%s6309_s2 + $0x330] ss:$36 sps:$4 sm:$0xff]  }
  0x73   : > { %1191 = vmatprep.subr.bf16.mxu0 %v4676_v61  ;;  %1264 = vmatprep.subr.bf16.mxu1 %v4678_v62  ;;  %v4774_v61 = vld [vmem:[%s6309_s2 + $0x2e4] ss:$36 sps:$4 sm:$0xff]   ;;  %v4777_v62 = vld [vmem:[%s6309_s2 + $0x2ec] ss:$36 sps:$4 sm:$0xff]  }
  0x76   : > { %1192 = vmatpush2.bf16.msra.mxu0 %v4680_v63  ;;  %1265 = vmatpush2.bf16.msra.mxu1 %v4681_v0  ;;  %v4772_v63 = vld [vmem:[%s6309_s2 + $0x2e0] ss:$36 sps:$4 sm:$0xff]   ;;  %v4775_v0 = vld [vmem:[%s6309_s2 + $0x2e8] ss:$36 sps:$4 sm:$0xff]  }
  0x77   : > { %1307 = vmatprep.subr.bf16.mxu0 %v4687_v1  ;;  %1380 = vmatprep.subr.bf16.mxu1 %v4690_v2  ;;  %v4780_v1 = vld [vmem:[%s6309_s2 + $0x29c] ss:$36 sps:$4 sm:$0xff]   ;;  %v4783_v2 = vld [vmem:[%s6309_s2 + $0x2a4] ss:$36 sps:$4 sm:$0xff]  }
  0x79   : > { %1194 = vmatmul.mubr.bf16.vlgmr.msra.gmra.mxu0 %v5454_v3  ;;  %1267 = vmatmul.mubr.bf16.vlgmr.msra.gmra.mxu1 %v5454_v3 }
  0x7a   : > { %1308 = vmatpush1.bf16.msra.mxu0 %v4685_v4  ;;  %1381 = vmatpush1.bf16.msra.mxu1 %v4688_v5  ;;  %v4778_v4 = vld [vmem:[%s6309_s2 + $0x298] ss:$36 sps:$4 sm:$0xff]   ;;  %v4781_v5 = vld [vmem:[%s6309_s2 + $0x2a0] ss:$36 sps:$4 sm:$0xff]  }
  0x7b   : > { %1309 = vmatprep.subr.bf16.mxu0 %v4693_v6  ;;  %1382 = vmatprep.subr.bf16.mxu1 %v4696_v7  ;;  %v4786_v6 = vld [vmem:[%s6309_s2 + $0x254] ss:$36 sps:$4 sm:$0xff]   ;;  %v4789_v7 = vld [vmem:[%s6309_s2 + $0x25c] ss:$36 sps:$4 sm:$0xff]  }
  0x7c   : > { %1276 = vmatprep.mubr.bf16.mxu1 %v5469_v8  ;;  %1203 = vmatprep.mubr.bf16.mxu0 %v5469_v8 }
  0x7e   : > { %1310 = vmatpush1.bf16.msra.mxu0 %v4691_v9  ;;  %1383 = vmatpush1.bf16.msra.mxu1 %v4694_v10  ;;  %v4784_v9 = vld [vmem:[%s6309_s2 + $0x250] ss:$36 sps:$4 sm:$0xff]   ;;  %v4787_v10 = vld [vmem:[%s6309_s2 + $0x258] ss:$36 sps:$4 sm:$0xff]  }
  0x7f   : > { %1311 = vmatprep.subr.bf16.mxu0 %v4702_v11  ;;  %1384 = vmatprep.subr.bf16.mxu1 %v4705_v12  ;;  %v4790_v11 = vld [vmem:[%s6309_s2 + $0x458] ss:$36 sps:$4 sm:$0xff]  }
  0x80   : > { %v4791_v12 = vld [vmem:[%s6309_s2 + $0x218] ss:$36 sps:$4 sm:$0xff]  }
  0x81   : > { %1277 = vmatmul.mubr.bf16.gmra.mxu1 %v5488_v13  ;;  %1204 = vmatmul.mubr.bf16.gmra.mxu0 %v5488_v13 }
  0x82   : > { %1312 = vmatpush1.bf16.msra.mxu0 %v4700_v14  ;;  %1385 = vmatpush1.bf16.msra.mxu1 %v4703_v15  ;;  %v4792_v14 = vld [vmem:[%s6309_s2 + $0x410] ss:$36 sps:$4 sm:$0xff]  }
  0x83   : > { %1313 = vmatprep.subr.bf16.mxu0 %v4708_v16  ;;  %1386 = vmatprep.subr.bf16.mxu1 %v4711_v17  ;;  %v4793_v15 = vld [vmem:[%s6309_s2 + $0x1d0] ss:$36 sps:$4 sm:$0xff]   ;;  %v4794_v16 = vld [vmem:[%s6309_s2 + $0x3c8] ss:$36 sps:$4 sm:$0xff]  }
  0x84   : > { %1286 = vmatprep.mubr.bf16.mxu1 %v5503_v18  ;;  %1213 = vmatprep.mubr.bf16.mxu0 %v5503_v18  ;;  %v4795_v17 = vld [vmem:[%s6309_s2 + $0x188] ss:$36 sps:$4 sm:$0xff]  }
  0x86   : > { %1314 = vmatpush1.bf16.msra.mxu0 %v4706_v19  ;;  %1387 = vmatpush1.bf16.msra.mxu1 %v4709_v20  ;;  %v4796_v19 = vld [vmem:[%s6309_s2 + $0x380] ss:$36 sps:$4 sm:$0xff]  }
  0x87   : > { %1315 = vmatprep.subr.bf16.mxu0 %v4717_v21  ;;  %1388 = vmatprep.subr.bf16.mxu1 %v4720_v22  ;;  %v4797_v20 = vld [vmem:[%s6309_s2 + $0x140] ss:$36 sps:$4 sm:$0xff]   ;;  %v4798_v21 = vld [vmem:[%s6309_s2 + $0x338] ss:$36 sps:$4 sm:$0xff]  }
  0x88   : > { %v4799_v22 = vld [vmem:[%s6309_s2 + $0xf8] ss:$36 sps:$4 sm:$0xff]  }
  0x89   : > { %1287 = vmatmul.mubr.bf16.gmra.mxu1 %v5522_v23  ;;  %1214 = vmatmul.mubr.bf16.gmra.mxu0 %v5522_v23 }
  0x8a   : > { %1316 = vmatpush1.bf16.msra.mxu0 %v4715_v24  ;;  %1389 = vmatpush1.bf16.msra.mxu1 %v4718_v25  ;;  %v4800_v24 = vld [vmem:[%s6309_s2 + $0x2f0] ss:$36 sps:$4 sm:$0xff]  }
  0x8b   : > { %1317 = vmatprep.subr.bf16.mxu0 %v4723_v26  ;;  %1390 = vmatprep.subr.bf16.mxu1 %v4726_v27  ;;  %v4801_v25 = vld [vmem:[%s6309_s2 + $0xb0] ss:$36 sps:$4 sm:$0xff]   ;;  %v4802_v26 = vld [vmem:[%s6309_s2 + $0x2a8] ss:$36 sps:$4 sm:$0xff]  }
  0x8c   : > { %1296 = vmatprep.mubr.bf16.mxu1 %v5537_v28  ;;  %1223 = vmatprep.mubr.bf16.mxu0 %v5537_v28  ;;  %v4803_v27 = vld [vmem:[%s6309_s2 + $0x68] ss:$36 sps:$4 sm:$0xff]  }
  0x8e   : > { %1318 = vmatpush1.bf16.msra.mxu0 %v4721_v29  ;;  %1391 = vmatpush1.bf16.msra.mxu1 %v4724_v30  ;;  %v4804_v29 = vld [vmem:[%s6309_s2 + $0x260] ss:$36 sps:$4 sm:$0xff]  }
  0x8f   : > { %1319 = vmatprep.subr.bf16.mxu0 %v4732_v31  ;;  %1392 = vmatprep.subr.bf16.mxu1 %v4735_v32  ;;  %v4805_v30 = vld [vmem:[%s6309_s2 + $0x20] ss:$36 sps:$4 sm:$0xff]  }
  0x91   : > { %1297 = vmatmul.mubr.bf16.gmra.mxu1 %v5556_v33  ;;  %1224 = vmatmul.mubr.bf16.gmra.mxu0 %v5556_v33 }
  0x92   : > { %1320 = vmatpush1.bf16.msra.mxu0 %v4730_v34  ;;  %1393 = vmatpush1.bf16.msra.mxu1 %v4733_v35 }
  0x93   : > { %1321 = vmatprep.subr.bf16.mxu0 %v4738_v36  ;;  %1394 = vmatprep.subr.bf16.mxu1 %v4741_v37 }
  0x94   : > { %1339 = vmatprep.mubr.bf16.mxu0 %v5395_v48  ;;  %1412 = vmatprep.mubr.bf16.mxu1 %v5395_v48 }
  0x96   : > { %1322 = vmatpush1.bf16.msra.mxu0 %v4736_v38  ;;  %1395 = vmatpush1.bf16.msra.mxu1 %v4739_v39 }
  0x97   : > { %1323 = vmatprep.subr.bf16.mxu0 %v4744_v40  ;;  %1396 = vmatprep.subr.bf16.mxu1 %v4747_v41 }
  0x9a   : > { %1324 = vmatpush2.bf16.msra.mxu0 %v4742_v42  ;;  %1397 = vmatpush2.bf16.msra.mxu1 %v4745_v43 }
  0x9b   : > { %1325 = vmatprep.subr.bf16.mxu0 %v4750_v44  ;;  %1398 = vmatprep.subr.bf16.mxu1 %v4753_v45 }
  0x9e   : > { %1326 = vmatpush2.bf16.msra.mxu0 %v4748_v46  ;;  %1399 = vmatpush2.bf16.msra.mxu1 %v4751_v47 }
  0x9f   : > { %1327 = vmatprep.subr.bf16.mxu0 %v4756_v49  ;;  %1400 = vmatprep.subr.bf16.mxu1 %v4759_v50 }
  0xa2   : > { %1328 = vmatpush2.bf16.msra.mxu0 %v4754_v51  ;;  %1401 = vmatpush2.bf16.msra.mxu1 %v4757_v52 }
  0xa3   : > { %1329 = vmatprep.subr.bf16.mxu0 %v4762_v53  ;;  %1402 = vmatprep.subr.bf16.mxu1 %v4765_v54 }
  0xa6   : > { %1330 = vmatpush2.bf16.msra.mxu0 %v4760_v55  ;;  %1403 = vmatpush2.bf16.msra.mxu1 %v4763_v56 }
  0xa7   : > { %1331 = vmatprep.subr.bf16.mxu0 %v4768_v57  ;;  %1404 = vmatprep.subr.bf16.mxu1 %v4771_v58 }
  0xaa   : > { %1332 = vmatpush2.bf16.msra.mxu0 %v4766_v59  ;;  %1405 = vmatpush2.bf16.msra.mxu1 %v4769_v60 }
  0xab   : > { %1333 = vmatprep.subr.bf16.mxu0 %v4774_v61  ;;  %1406 = vmatprep.subr.bf16.mxu1 %v4777_v62 }
  0xae   : > { %1334 = vmatpush2.bf16.msra.mxu0 %v4772_v63  ;;  %1407 = vmatpush2.bf16.msra.mxu1 %v4775_v0 }
  0xaf   : > { %1335 = vmatprep.subr.bf16.mxu0 %v4780_v1  ;;  %1408 = vmatprep.subr.bf16.mxu1 %v4783_v2 }
  0xb2   : > { %1336 = vmatpush2.bf16.msra.mxu0 %v4778_v4  ;;  %1409 = vmatpush2.bf16.msra.mxu1 %v4781_v5 }
  0xb3   : > { %1337 = vmatprep.subr.bf16.mxu0 %v4786_v6  ;;  %1410 = vmatprep.subr.bf16.mxu1 %v4789_v7 }
  0xb6   : > { %1338 = vmatpush2.bf16.msra.mxu0 %v4784_v9  ;;  %1411 = vmatpush2.bf16.msra.mxu1 %v4787_v10 }
  0xb7   : > { %4204 = vmatprep.subr.bf16.mxu0 %v4790_v11 }
  0xb9   : > { %1340 = vmatmul.mubr.bf16.vlgmr.msra.gmra.mxu0 %v5454_v3  ;;  %1413 = vmatmul.mubr.bf16.vlgmr.msra.gmra.mxu1 %v5454_v3 }
  0xba   : > { %4205 = vmatpush3.bf16.msra.mxu0 %v4791_v12  ;;  %1349 = vmatprep.mubr.bf16.mxu0 %v5469_v8 }
  0xbb   : > { %4206 = vmatprep.subr.bf16.mxu0 %v4792_v14  ;;  %1422 = vmatprep.mubr.bf16.mxu1 %v5469_v8 }
  0xbe   : > { %4207 = vmatpush3.bf16.msra.mxu0 %v4793_v15 }
  0xbf   : > { %4208 = vmatprep.subr.bf16.mxu0 %v4794_v16 }
  0xc1   : > { %1350 = vmatmul.mubr.bf16.gmra.mxu0 %v5488_v13  ;;  %1423 = vmatmul.mubr.bf16.gmra.mxu1 %v5488_v13 }
  0xc2   : > { %4209 = vmatpush3.bf16.msra.mxu0 %v4795_v17  ;;  %1359 = vmatprep.mubr.bf16.mxu0 %v5503_v18 }
  0xc3   : > { %4210 = vmatprep.subr.bf16.mxu0 %v4796_v19  ;;  %1432 = vmatprep.mubr.bf16.mxu1 %v5503_v18 }
  0xc6   : > { %4211 = vmatpush3.bf16.msra.mxu0 %v4797_v20 }
  0xc7   : > { %4212 = vmatprep.subr.bf16.mxu0 %v4798_v21 }
  0xc9   : > { %1360 = vmatmul.mubr.bf16.gmra.mxu0 %v5522_v23  ;;  %1433 = vmatmul.mubr.bf16.gmra.mxu1 %v5522_v23 }
  0xca   : > { %4213 = vmatpush3.bf16.msra.mxu0 %v4799_v22  ;;  %1369 = vmatprep.mubr.bf16.mxu0 %v5537_v28 }
  0xcb   : > { %4214 = vmatprep.subr.bf16.mxu0 %v4800_v24  ;;  %1442 = vmatprep.mubr.bf16.mxu1 %v5537_v28 }
  0xce   : > { %4215 = vmatpush3.bf16.msra.mxu0 %v4801_v25 }
  0xcf   : > { %4216 = vmatprep.subr.bf16.mxu0 %v4802_v26 }
  0xd1   : > { %1370 = vmatmul.mubr.bf16.gmra.mxu0 %v5556_v33  ;;  %1443 = vmatmul.mubr.bf16.gmra.mxu1 %v5556_v33 }
  0xd2   : > { %4217 = vmatpush3.bf16.msra.mxu0 %v4803_v27  ;;  %1485 = vmatprep.mubr.bf16.mxu0 %v5395_v48  ;;  %v4824_v48 = vld [vmem:[%s6308_s1 + $0x4] ss:$20 sps:$4 sm:$0xff]  }
  0xd3   : > { %4218 = vmatprep.subr.bf16.mxu0 %v4804_v29  ;;  %2750 = vmatprep.mubr.bf16.mxu1 %v4824_v48 }
  0xd6   : > { %4219 = vmatpush3.bf16.msra.mxu0 %v4805_v30 }
  0xd9   : > { %1486 = vmatmul.mubr.bf16.vlgmr.msra.gmra.mxu0 %v5454_v3 }
  0xda   : > { %1493 = vmatprep.mubr.bf16.mxu0 %v5469_v8 }
  0xe1   : > { %1494 = vmatmul.mubr.bf16.gmra.mxu0 %v5488_v13 }
  0xe2   : > { %1501 = vmatprep.mubr.bf16.mxu0 %v5503_v18 }
  0xe9   : > { %1502 = vmatmul.mubr.bf16.gmra.mxu0 %v5522_v23 }
  0xea   : > { %1509 = vmatprep.mubr.bf16.mxu0 %v5537_v28 }
  0xf1   : > { %1510 = vmatmul.mubr.bf16.gmra.mxu0 %v5556_v33  ;;  %v4866_v33 = vld [vmem:[%s6308_s1 + $0xc] ss:$20 sps:$4 sm:$0xff]  }
  0xf2   : > { %2911 = vmatprep.mubr.bf16.mxu0 %v4866_v33 }
 0x139   : > { %v1195_v31 = vpop.f32.mrf.mxu0  ;;  %v1268_v32 = vpop.f32.mrf.mxu1 }
 0x13b   : > { %v1197_v3 = vpop.f32.mrf.mxu0  ;;  %v1270_v34 = vpop.f32.mrf.mxu1 }
 0x13d   : > { %v1199_v8 = vpop.f32.mrf.mxu0  ;;  %v1272_v35 = vpop.f32.mrf.mxu1 }
 0x13e   : > { %v3992_v13 = vpack.c.bf16 %v1199_v8, %v1195_v31  ;;  %v4032_v36 = vpack.c.bf16 %v1272_v35, %v1268_v32 }
 0x13f   : > { %v1201_v18 = vpop.f32.mrf.mxu0  ;;  %v1274_v37 = vpop.f32.mrf.mxu1 }
 0x140   : > { %3993 = vst [vmem:[#allocation2] sm:$0xff] %v3992_v13   ;;  %4176 = vst [vmem:[#allocation2 + $0x40] sm:$0xff] %v4032_v36   ;;  %v4012_v23 = vpack.c.bf16 %v1201_v18, %v1197_v3  ;;  %v4052_v28 = vpack.c.bf16 %v1274_v37, %v1270_v34 }
 0x141   : > { %v1278_v38 = vpop.f32.mrf.mxu1  ;;  %v1205_v39 = vpop.f32.mrf.mxu0 }
 0x142   : > { %4172 = vst [vmem:[#allocation2 + $0x20] sm:$0xff] %v4012_v23   ;;  %4180 = vst [vmem:[#allocation2 + $0x60] sm:$0xff] %v4052_v28   ;;  %v4822_v28 = vld [vmem:[%s6308_s1] ss:$20 sps:$4 sm:$0xff]  }
 0x143   : > { %v1280_v40 = vpop.f32.mrf.mxu1  ;;  %v1207_v41 = vpop.f32.mrf.mxu0 }
 0x145   : > { %v1282_v42 = vpop.f32.mrf.mxu1  ;;  %v1209_v43 = vpop.f32.mrf.mxu0 }
 0x146   : > { %v4037_v44 = vpack.c.bf16 %v1282_v42, %v1278_v38  ;;  %v3997_v45 = vpack.c.bf16 %v1209_v43, %v1205_v39  ;;  %v4825_v39 = vld [vmem:[%s6308_s1 + $0x2c] ss:$20 sps:$4 sm:$0xff]  }
 0x147   : > { %v1284_v46 = vpop.f32.mrf.mxu1  ;;  %v1211_v47 = vpop.f32.mrf.mxu0  ;;  %v4820_v34 = vld [vmem:[#allocation2 + $0x40] sm:$0xff]  }
 0x148   : > { %4177 = vst [vmem:[#allocation2 + $0x48] sm:$0xff] %v4037_v44   ;;  %4169 = vst [vmem:[#allocation2 + $0x8] sm:$0xff] %v3997_v45   ;;  %v4057_v49 = vpack.c.bf16 %v1284_v46, %v1280_v40  ;;  %v4017_v50 = vpack.c.bf16 %v1211_v47, %v1207_v41  ;;  %v4821_v18 = vld [vmem:[#allocation2] sm:$0xff]  }
 0x149   : > { %v1288_v51 = vpop.f32.mrf.mxu1  ;;  %v1215_v52 = vpop.f32.mrf.mxu0  ;;  %v4812_v21 = vld [vmem:[#allocation2 + $0x60] sm:$0xff]  }
 0x14a   : > { %4181 = vst [vmem:[#allocation2 + $0x68] sm:$0xff] %v4057_v49   ;;  %4173 = vst [vmem:[#allocation2 + $0x28] sm:$0xff] %v4017_v50   ;;  %v4813_v24 = vld [vmem:[#allocation2 + $0x20] sm:$0xff]  }
 0x14b   : > { %v1290_v53 = vpop.f32.mrf.mxu1  ;;  %v1217_v54 = vpop.f32.mrf.mxu0 }
 0x14d   : > { %v1292_v55 = vpop.f32.mrf.mxu1  ;;  %v1219_v56 = vpop.f32.mrf.mxu0 }
 0x14e   : > { %v4042_v57 = vpack.c.bf16 %v1292_v55, %v1288_v51  ;;  %v4002_v58 = vpack.c.bf16 %v1219_v56, %v1215_v52  ;;  %v4827_v51 = vld [vmem:[%s6308_s1 + $0x28] ss:$20 sps:$4 sm:$0xff]  }
 0x14f   : > { %v1294_v59 = vpop.f32.mrf.mxu1  ;;  %v1221_v60 = vpop.f32.mrf.mxu0  ;;  %v4818_v29 = vld [vmem:[#allocation2 + $0x48] sm:$0xff]  }
 0x150   : > { %4178 = vst [vmem:[#allocation2 + $0x50] sm:$0xff] %v4042_v57   ;;  %4170 = vst [vmem:[#allocation2 + $0x10] sm:$0xff] %v4002_v58   ;;  %v4062_v61 = vpack.c.bf16 %v1294_v59, %v1290_v53  ;;  %v4022_v62 = vpack.c.bf16 %v1221_v60, %v1217_v54  ;;  %v4819_v31 = vld [vmem:[#allocation2 + $0x8] sm:$0xff]  }
 0x151   : > { %v1298_v63 = vpop.f32.mrf.mxu1  ;;  %v1225_v0 = vpop.f32.mrf.mxu0  ;;  %v4810_v19 = vld [vmem:[#allocation2 + $0x68] sm:$0xff]  }
 0x152   : > { %4182 = vst [vmem:[#allocation2 + $0x70] sm:$0xff] %v4062_v61   ;;  %4174 = vst [vmem:[#allocation2 + $0x30] sm:$0xff] %v4022_v62   ;;  %v4811_v20 = vld [vmem:[#allocation2 + $0x28] sm:$0xff]  }
 0x153   : > { %v1300_v1 = vpop.f32.mrf.mxu1  ;;  %v1227_v2 = vpop.f32.mrf.mxu0  ;;  %v4828_v54 = vld [vmem:[%s6308_s1 + $0x54] ss:$20 sps:$4 sm:$0xff]  }
 0x155   : > { %v1302_v4 = vpop.f32.mrf.mxu1  ;;  %v1229_v5 = vpop.f32.mrf.mxu0 }
 0x156   : > { %v4047_v6 = vpack.c.bf16 %v1302_v4, %v1298_v63  ;;  %v4007_v7 = vpack.c.bf16 %v1229_v5, %v1225_v0  ;;  %v4831_v5 = vld [vmem:[%s6308_s1 + $0x7c] ss:$20 sps:$4 sm:$0xff]  }
 0x157   : > { %v1304_v9 = vpop.f32.mrf.mxu1  ;;  %v1231_v10 = vpop.f32.mrf.mxu0  ;;  %v4816_v26 = vld [vmem:[#allocation2 + $0x50] sm:$0xff]  }
 0x158   : > { %4179 = vst [vmem:[#allocation2 + $0x58] sm:$0xff] %v4047_v6   ;;  %4171 = vst [vmem:[#allocation2 + $0x18] sm:$0xff] %v4007_v7   ;;  %v4067_v11 = vpack.c.bf16 %v1304_v9, %v1300_v1  ;;  %v4027_v12 = vpack.c.bf16 %v1231_v10, %v1227_v2  ;;  %v4817_v27 = vld [vmem:[#allocation2 + $0x10] sm:$0xff]  }
 0x159   : > { %v4808_v14 = vld [vmem:[#allocation2 + $0x70] sm:$0xff]  }
 0x15a   : > { %4183 = vst [vmem:[#allocation2 + $0x78] sm:$0xff] %v4067_v11   ;;  %4175 = vst [vmem:[#allocation2 + $0x38] sm:$0xff] %v4027_v12   ;;  %v4809_v17 = vld [vmem:[#allocation2 + $0x30] sm:$0xff]  }
 0x15b   : > { %v4830_v1 = vld [vmem:[%s6308_s1 + $0x50] ss:$20 sps:$4 sm:$0xff]  }
 0x15f   : > { %v4814_v22 = vld [vmem:[#allocation2 + $0x58] sm:$0xff]  }
 0x160   : > { %v4815_v25 = vld [vmem:[#allocation2 + $0x18] sm:$0xff]  }
 0x161   : > { %v4806_v15 = vld [vmem:[#allocation2 + $0x78] sm:$0xff]  }
 0x162   : > { %v4807_v16 = vld [vmem:[#allocation2 + $0x38] sm:$0xff]   ;;  %4244 = vmatprep.subr.bf16.mxu1 %v4806_v15 }
 0x163   : > { %4245 = vmatpush3.bf16.msra.mxu1 %v4807_v16 }
 0x164   : > { %4246 = vmatprep.subr.bf16.mxu1 %v4808_v14 }
 0x167   : > { %4247 = vmatpush3.bf16.msra.mxu1 %v4809_v17 }
 0x168   : > { %4248 = vmatprep.subr.bf16.mxu1 %v4810_v19  ;;  %v4833_v19 = vld [vmem:[%s6308_s1 + $0x78] ss:$20 sps:$4 sm:$0xff]  }
 0x16b   : > { %4249 = vmatpush3.bf16.msra.mxu1 %v4811_v20 }
 0x16c   : > { %4250 = vmatprep.subr.bf16.mxu1 %v4812_v21 }
 0x16f   : > { %4251 = vmatpush3.bf16.msra.mxu1 %v4813_v24 }
 0x170   : > { %4252 = vmatprep.subr.bf16.mxu1 %v4814_v22  ;;  %v4834_v22 = vld [vmem:[%s6308_s1 + $0xa4] ss:$20 sps:$4 sm:$0xff]  }
 0x173   : > { %4253 = vmatpush3.bf16.msra.mxu1 %v4815_v25 }
 0x174   : > { %4254 = vmatprep.subr.bf16.mxu1 %v4816_v26 }
 0x177   : > { %4255 = vmatpush3.bf16.msra.mxu1 %v4817_v27 }
 0x178   : > { %4256 = vmatprep.subr.bf16.mxu1 %v4818_v29 }
 0x179   : > { %v1341_v30 = vpop.f32.mrf.mxu0  ;;  %v1414_v48 = vpop.f32.mrf.mxu1 }
 0x17b   : > { %v1343_v32 = vpop.f32.mrf.mxu0  ;;  %v1416_v3 = vpop.f32.mrf.mxu1  ;;  %4257 = vmatpush3.bf16.msra.mxu1 %v4819_v31  ;;  %v4841_v31 = vld [vmem:[%s6308_s1 + $0xcc] ss:$20 sps:$4 sm:$0xff]  }
 0x17c   : > { %4258 = vmatprep.subr.bf16.mxu1 %v4820_v34 }
 0x17d   : > { %v1345_v8 = vpop.f32.mrf.mxu0  ;;  %v1418_v35 = vpop.f32.mrf.mxu1 }
 0x17e   : > { %v4072_v13 = vpack.c.bf16 %v1345_v8, %v1341_v30  ;;  %v4112_v36 = vpack.c.bf16 %v1418_v35, %v1414_v48  ;;  %v4836_v30 = vld [vmem:[%s6308_s1 + $0xa0] ss:$20 sps:$4 sm:$0xff]  }
 0x17f   : > { %v1347_v37 = vpop.f32.mrf.mxu0  ;;  %v1420_v23 = vpop.f32.mrf.mxu1  ;;  %4259 = vmatpush3.bf16.msra.mxu1 %v4821_v18 }
 0x180   : > { %4184 = vst [vmem:[#allocation2 + $0x80] sm:$0xff] %v4072_v13   ;;  %4192 = vst [vmem:[#allocation2 + $0xc0] sm:$0xff] %v4112_v36   ;;  %v4092_v33 = vpack.c.bf16 %v1347_v37, %v1343_v32  ;;  %v4132_v38 = vpack.c.bf16 %v1420_v23, %v1416_v3 }
 0x181   : > { %v1351_v40 = vpop.f32.mrf.mxu0  ;;  %v1424_v41 = vpop.f32.mrf.mxu1 }
 0x182   : > { %4188 = vst [vmem:[#allocation2 + $0xa0] sm:$0xff] %v4092_v33   ;;  %4196 = vst [vmem:[#allocation2 + $0xe0] sm:$0xff] %v4132_v38   ;;  %2751 = vmatmul.mubr.bf16.vlgmr.msra.gmra.mxu1 %v4822_v28  ;;  %v4843_v28 = vld [vmem:[%s6308_s1 + $0xc8] ss:$20 sps:$4 sm:$0xff]  }
 0x183   : > { %v1353_v42 = vpop.f32.mrf.mxu0  ;;  %v1426_v43 = vpop.f32.mrf.mxu1  ;;  %2758 = vmatprep.mubr.bf16.mxu1 %v4825_v39  ;;  %v4848_v39 = vld [vmem:[%s6308_s1 + $0xf4] ss:$20 sps:$4 sm:$0xff]  }
 0x185   : > { %v1355_v44 = vpop.f32.mrf.mxu0  ;;  %v1428_v45 = vpop.f32.mrf.mxu1 }
 0x186   : > { %v4077_v46 = vpack.c.bf16 %v1355_v44, %v1351_v40  ;;  %v4117_v47 = vpack.c.bf16 %v1428_v45, %v1424_v41 }
 0x187   : > { %v1357_v49 = vpop.f32.mrf.mxu0  ;;  %v1430_v50 = vpop.f32.mrf.mxu1 }
 0x188   : > { %4185 = vst [vmem:[#allocation2 + $0x88] sm:$0xff] %v4077_v46   ;;  %4193 = vst [vmem:[#allocation2 + $0xc8] sm:$0xff] %v4117_v47   ;;  %v4097_v52 = vpack.c.bf16 %v1357_v49, %v1353_v42  ;;  %v4137_v53 = vpack.c.bf16 %v1430_v50, %v1426_v43  ;;  %v4850_v50 = vld [vmem:[%s6308_s1 + $0xf0] ss:$20 sps:$4 sm:$0xff]  }
 0x189   : > { %v1361_v55 = vpop.f32.mrf.mxu0  ;;  %v1434_v56 = vpop.f32.mrf.mxu1  ;;  %v4846_v44 = vld [vmem:[#allocation2 + $0xe0] sm:$0xff]  }
 0x18a   : > { %4189 = vst [vmem:[#allocation2 + $0xa8] sm:$0xff] %v4097_v52   ;;  %4197 = vst [vmem:[#allocation2 + $0xe8] sm:$0xff] %v4137_v53   ;;  %2759 = vmatmul.mubr.bf16.gmra.mxu1 %v4827_v51  ;;  %v4847_v47 = vld [vmem:[#allocation2 + $0xa0] sm:$0xff]   ;;  %v4856_v53 = vld [vmem:[%s6308_s1 + $0x11c] ss:$20 sps:$4 sm:$0xff]  }
 0x18b   : > { %v1363_v57 = vpop.f32.mrf.mxu0  ;;  %v1436_v58 = vpop.f32.mrf.mxu1  ;;  %2766 = vmatprep.mubr.bf16.mxu1 %v4828_v54 }
 0x18d   : > { %v1365_v59 = vpop.f32.mrf.mxu0  ;;  %v1438_v60 = vpop.f32.mrf.mxu1 }
 0x18e   : > { %v4082_v61 = vpack.c.bf16 %v1365_v59, %v1361_v55  ;;  %v4122_v62 = vpack.c.bf16 %v1438_v60, %v1434_v56 }
 0x18f   : > { %v1367_v63 = vpop.f32.mrf.mxu0  ;;  %v1440_v0 = vpop.f32.mrf.mxu1 }
 0x190   : > { %4186 = vst [vmem:[#allocation2 + $0x90] sm:$0xff] %v4082_v61   ;;  %4194 = vst [vmem:[#allocation2 + $0xd0] sm:$0xff] %v4122_v62   ;;  %v4102_v2 = vpack.c.bf16 %v1367_v63, %v1363_v57  ;;  %v4142_v4 = vpack.c.bf16 %v1440_v0, %v1436_v58  ;;  %v4855_v63 = vld [vmem:[#allocation2 + $0xc8] sm:$0xff]  }
 0x191   : > { %v1371_v6 = vpop.f32.mrf.mxu0  ;;  %v1444_v7 = vpop.f32.mrf.mxu1  ;;  %v4844_v33 = vld [vmem:[#allocation2 + $0xe8] sm:$0xff]  }
 0x192   : > { %4190 = vst [vmem:[#allocation2 + $0xb0] sm:$0xff] %v4102_v2   ;;  %4198 = vst [vmem:[#allocation2 + $0xf0] sm:$0xff] %v4142_v4   ;;  %2767 = vmatmul.mubr.bf16.gmra.mxu1 %v4830_v1  ;;  %v4845_v42 = vld [vmem:[#allocation2 + $0xa8] sm:$0xff]   ;;  %v4862_v2 = vld [vmem:[%s6308_s1 + $0x144] ss:$20 sps:$4 sm:$0xff]  }
 0x193   : > { %v1373_v9 = vpop.f32.mrf.mxu0  ;;  %v1446_v10 = vpop.f32.mrf.mxu1  ;;  %2774 = vmatprep.mubr.bf16.mxu1 %v4831_v5  ;;  %v4858_v0 = vld [vmem:[%s6308_s1 + $0x118] ss:$20 sps:$4 sm:$0xff]  }
 0x194   : > { %v4859_v5 = vld [vmem:[#allocation2 + $0x88] sm:$0xff]  }
 0x195   : > { %v1375_v11 = vpop.f32.mrf.mxu0  ;;  %v1448_v12 = vpop.f32.mrf.mxu1 }
 0x196   : > { %v4087_v14 = vpack.c.bf16 %v1375_v11, %v1371_v6  ;;  %v4127_v15 = vpack.c.bf16 %v1448_v12, %v1444_v7  ;;  %v4860_v6 = vld [vmem:[#allocation2 + $0xc0] sm:$0xff]   ;;  %v4872_v12 = vld [vmem:[%s6308_s1 + $0x34] ss:$20 sps:$4 sm:$0xff]  }
 0x197   : > { %v1377_v16 = vpop.f32.mrf.mxu0  ;;  %v1450_v17 = vpop.f32.mrf.mxu1  ;;  %v4853_v58 = vld [vmem:[#allocation2 + $0xd0] sm:$0xff]   ;;  %v4861_v7 = vld [vmem:[#allocation2 + $0x80] sm:$0xff]  }
 0x198   : > { %4187 = vst [vmem:[#allocation2 + $0x98] sm:$0xff] %v4087_v14   ;;  %4195 = vst [vmem:[#allocation2 + $0xd8] sm:$0xff] %v4127_v15   ;;  %v4107_v20 = vpack.c.bf16 %v1377_v16, %v1373_v9  ;;  %v4147_v21 = vpack.c.bf16 %v1450_v17, %v1446_v10  ;;  %v4854_v61 = vld [vmem:[#allocation2 + $0x90] sm:$0xff]   ;;  %v4864_v9 = vld [vmem:[%s6308_s1 + $0x8] ss:$20 sps:$4 sm:$0xff]  }
 0x199   : > { %v4220_v24 = vpop.f32.mrf.mxu0  ;;  %v4839_v13 = vld [vmem:[#allocation2 + $0xf0] sm:$0xff]   ;;  %v4870_v11 = vld [vmem:[%s6308_s1 + $0x16c] ss:$20 sps:$4 sm:$0xff]   ;;  %v4874_v16 = vld [vmem:[%s6308_s1 + $0x168] ss:$20 sps:$4 sm:$0xff]  }
 0x19a   : > { %4191 = vst [vmem:[#allocation2 + $0xb8] sm:$0xff] %v4107_v20   ;;  %4199 = vst [vmem:[#allocation2 + $0xf8] sm:$0xff] %v4147_v21   ;;  %2775 = vmatmul.mubr.bf16.gmra.mxu1 %v4833_v19  ;;  %v4840_v37 = vld [vmem:[#allocation2 + $0xb0] sm:$0xff]  }
 0x19b   : > { %v4221_v25 = vpop.f32.mrf.mxu0  ;;  %2782 = vmatprep.mubr.bf16.mxu1 %v4834_v22  ;;  %v4867_v10 = vld [vmem:[%s6308_s1 + $0x140] ss:$20 sps:$4 sm:$0xff]   ;;  %v4875_v17 = vld [vmem:[%s6308_s1 + $0x30] ss:$20 sps:$4 sm:$0xff]  }
 0x19c   : > { %v4222_v27 = vadd.f32 %v4221_v25, %v4220_v24  ;;  %v4878_v20 = vld [vmem:[%s6308_s1 + $0x194] ss:$20 sps:$4 sm:$0xff]   ;;  %v4880_v21 = vld [vmem:[%s6308_s1 + $0x5c] ss:$20 sps:$4 sm:$0xff]   ;;  %v4883_v25 = vld [vmem:[%s6308_s1 + $0x58] ss:$20 sps:$4 sm:$0xff]  }
 0x19d   : > { %v4223_v26 = vpop.f32.mrf.mxu0  ;;  %v4882_v24 = vld [vmem:[%s6308_s1 + $0x190] ss:$20 sps:$4 sm:$0xff]  }
 0x19f   : > { %v4224_v29 = vpop.f32.mrf.mxu0  ;;  %v4851_v51 = vld [vmem:[#allocation2 + $0xd8] sm:$0xff]  }
 0x1a0   : > { %v4225_v48 = vadd.f32 %v4224_v29, %v4223_v26  ;;  %v4852_v56 = vld [vmem:[#allocation2 + $0x98] sm:$0xff]  }
 0x1a1   : > { %v4226_v32 = vpop.f32.mrf.mxu0  ;;  %v4837_v3 = vld [vmem:[#allocation2 + $0xf8] sm:$0xff]  }
 0x1a2   : > { %v4152_v34 = vpack.c.bf16 %v4225_v48, %v4222_v27  ;;  %v4838_v8 = vld [vmem:[#allocation2 + $0xb8] sm:$0xff]   ;;  %2783 = vmatmul.mubr.bf16.gmra.mxu1 %v4836_v30  ;;  %4356 = vmatprep.subr.bf16.mxu0 %v4837_v3  ;;  %v4889_v30 = vld [vmem:[%s6308_s1 + $0x80] ss:$20 sps:$4 sm:$0xff]  }
 0x1a3   : > { %v4227_v35 = vpop.f32.mrf.mxu0  ;;  %4357 = vmatpush3.bf16.msra.mxu0 %v4838_v8  ;;  %2790 = vmatprep.mubr.bf16.mxu1 %v4841_v31  ;;  %v4884_v26 = vld [vmem:[%s6308_s1 + $0x1bc] ss:$20 sps:$4 sm:$0xff]   ;;  %v4886_v27 = vld [vmem:[%s6308_s1 + $0x84] ss:$20 sps:$4 sm:$0xff]   ;;  %v4892_v31 = vld [vmem:[%s6308_s1 + $0xac] ss:$20 sps:$4 sm:$0xff]  }
 0x1a4   : > { %4200 = vst [vmem:[#allocation2 + $0x100] sm:$0xff] %v4152_v34   ;;  %4358 = vmatprep.subr.bf16.mxu0 %v4839_v13  ;;  %v4228_v18 = vadd.f32 %v4227_v35, %v4226_v32  ;;  %v4888_v29 = vld [vmem:[%s6308_s1 + $0x1b8] ss:$20 sps:$4 sm:$0xff]   ;;  %v4894_v32 = vld [vmem:[%s6308_s1 + $0x1e0] ss:$20 sps:$4 sm:$0xff]  }
 0x1a5   : > { %v4229_v36 = vpop.f32.mrf.mxu0  ;;  %v4890_v48 = vld [vmem:[%s6308_s1 + $0x1e4] ss:$20 sps:$4 sm:$0xff]   ;;  %v4895_v3 = vld [vmem:[%s6308_s1 + $0xa8] ss:$20 sps:$4 sm:$0xff]   ;;  %v4896_v34 = vld [vmem:[%s6308_s1 + $0x20c] ss:$20 sps:$4 sm:$0xff]  }
 0x1a6   : > { %v4898_v8 = vld [vmem:[%s6308_s1 + $0xd4] ss:$20 sps:$4 sm:$0xff]   ;;  %v4901_v13 = vld [vmem:[%s6308_s1 + $0xd0] ss:$20 sps:$4 sm:$0xff]  }
 0x1a7   : > { %v4230_v23 = vpop.f32.mrf.mxu0  ;;  %4359 = vmatpush3.bf16.msra.mxu0 %v4840_v37  ;;  %v4900_v35 = vld [vmem:[%s6308_s1 + $0x208] ss:$20 sps:$4 sm:$0xff]   ;;  %v4906_v37 = vld [vmem:[%s6308_s1 + $0x230] ss:$20 sps:$4 sm:$0xff]  }
 0x1a8   : > { %v4231_v38 = vadd.f32 %v4230_v23, %v4229_v36  ;;  %4360 = vmatprep.subr.bf16.mxu0 %v4844_v33  ;;  %v4902_v36 = vld [vmem:[%s6308_s1 + $0x234] ss:$20 sps:$4 sm:$0xff]   ;;  %v4907_v23 = vld [vmem:[%s6308_s1 + $0xf8] ss:$20 sps:$4 sm:$0xff]  }
 0x1a9   : > { %v4232_v40 = vpop.f32.mrf.mxu0  ;;  %v4910_v33 = vld [vmem:[%s6308_s1 + $0x124] ss:$20 sps:$4 sm:$0xff]  }
 0x1aa   : > { %v4157_v41 = vpack.c.bf16 %v4231_v38, %v4228_v18  ;;  %2791 = vmatmul.mubr.bf16.gmra.mxu1 %v4843_v28  ;;  %v4904_v18 = vld [vmem:[%s6308_s1 + $0xfc] ss:$20 sps:$4 sm:$0xff]   ;;  %v4912_v38 = vld [vmem:[%s6308_s1 + $0x258] ss:$20 sps:$4 sm:$0xff]  }
 0x1ab   : > { %v4233_v43 = vpop.f32.mrf.mxu0  ;;  %4361 = vmatpush3.bf16.msra.mxu0 %v4845_v42  ;;  %2798 = vmatprep.mubr.bf16.mxu1 %v4848_v39  ;;  %v4877_v22 = vld [vmem:[#allocation2 + $0x100] sm:$0xff]   ;;  %v4908_v28 = vld [vmem:[%s6308_s1 + $0x25c] ss:$20 sps:$4 sm:$0xff]  }
 0x1ac   : > { %4201 = vst [vmem:[#allocation2 + $0x108] sm:$0xff] %v4157_v41   ;;  %4362 = vmatprep.subr.bf16.mxu0 %v4846_v44  ;;  %v4234_v46 = vadd.f32 %v4233_v43, %v4232_v40  ;;  %v4913_v39 = vld [vmem:[%s6308_s1 + $0x120] ss:$20 sps:$4 sm:$0xff]   ;;  %v4916_v41 = vld [vmem:[%s6308_s1 + $0xb0] ss:$20 sps:$4 sm:$0xff]  }
 0x1ad   : > { %v4235_v45 = vpop.f32.mrf.mxu0  ;;  %v4914_v40 = vld [vmem:[%s6308_s1 + $0x14c] ss:$20 sps:$4 sm:$0xff]   ;;  %v4917_v42 = vld [vmem:[%s6308_s1 + $0x148] ss:$20 sps:$4 sm:$0xff]  }
 0x1ae   : > { %v4918_v43 = vld [vmem:[%s6308_s1 + $0xd8] ss:$20 sps:$4 sm:$0xff]   ;;  %v4919_v44 = vld [vmem:[%s6308_s1 + $0x174] ss:$20 sps:$4 sm:$0xff]  }
 0x1af   : > { %v4236_v49 = vpop.f32.mrf.mxu0  ;;  %4363 = vmatpush3.bf16.msra.mxu0 %v4847_v47  ;;  %v4923_v47 = vld [vmem:[%s6308_s1 + $0x128] ss:$20 sps:$4 sm:$0xff]  }
 0x1b0   : > { %v4237_v52 = vadd.f32 %v4236_v49, %v4235_v45  ;;  %4364 = vmatprep.subr.bf16.mxu0 %v4851_v51  ;;  %v4921_v45 = vld [vmem:[%s6308_s1 + $0x100] ss:$20 sps:$4 sm:$0xff]   ;;  %v4924_v49 = vld [vmem:[%s6308_s1 + $0x19c] ss:$20 sps:$4 sm:$0xff]   ;;  %v4927_v51 = vld [vmem:[%s6308_s1 + $0x198] ss:$20 sps:$4 sm:$0xff]  }
 0x1b1   : > { %v4238_v54 = vpop.f32.mrf.mxu0 }
 0x1b2   : > { %v4162_v55 = vpack.c.bf16 %v4237_v52, %v4234_v46  ;;  %2799 = vmatmul.mubr.bf16.gmra.mxu1 %v4850_v50  ;;  %v4922_v46 = vld [vmem:[%s6308_s1 + $0x170] ss:$20 sps:$4 sm:$0xff]   ;;  %v4928_v52 = vld [vmem:[%s6308_s1 + $0x178] ss:$20 sps:$4 sm:$0xff]  }
 0x1b3   : > { %v4239_v57 = vpop.f32.mrf.mxu0  ;;  %4365 = vmatpush3.bf16.msra.mxu0 %v4852_v56  ;;  %2806 = vmatprep.mubr.bf16.mxu1 %v4856_v53  ;;  %v4876_v19 = vld [vmem:[#allocation2 + $0x108] sm:$0xff]   ;;  %v4926_v50 = vld [vmem:[%s6308_s1 + $0x150] ss:$20 sps:$4 sm:$0xff]  }
 0x1b4   : > { %4202 = vst [vmem:[#allocation2 + $0x110] sm:$0xff] %v4162_v55   ;;  %4366 = vmatprep.subr.bf16.mxu0 %v4853_v58  ;;  %v4240_v60 = vadd.f32 %v4239_v57, %v4238_v54  ;;  %v4929_v53 = vld [vmem:[%s6308_s1 + $0x1c4] ss:$20 sps:$4 sm:$0xff]   ;;  %v4931_v54 = vld [vmem:[%s6308_s1 + $0x1a0] ss:$20 sps:$4 sm:$0xff]  }
 0x1b5   : > { %v4241_v59 = vpop.f32.mrf.mxu0  ;;  %v4932_v55 = vld [vmem:[%s6308_s1 + $0x1c0] ss:$20 sps:$4 sm:$0xff]   ;;  %v4933_v56 = vld [vmem:[%s6308_s1 + $0x1c8] ss:$20 sps:$4 sm:$0xff]   ;;  %v4937_v58 = vld [vmem:[%s6308_s1 + $0x1f0] ss:$20 sps:$4 sm:$0xff]  }
 0x1b6   : > { %v4934_v57 = vld [vmem:[%s6308_s1 + $0x1ec] ss:$20 sps:$4 sm:$0xff]  }
 0x1b7   : > { %v4242_v62 = vpop.f32.mrf.mxu0  ;;  %4367 = vmatpush3.bf16.msra.mxu0 %v4854_v61  ;;  %v4939_v61 = vld [vmem:[%s6308_s1 + $0x214] ss:$20 sps:$4 sm:$0xff]  }
 0x1b8   : > { %v4243_v1 = vadd.f32 %v4242_v62, %v4241_v59  ;;  %4368 = vmatprep.subr.bf16.mxu0 %v4855_v63  ;;  %v4936_v59 = vld [vmem:[%s6308_s1 + $0x1e8] ss:$20 sps:$4 sm:$0xff]   ;;  %v4945_v62 = vld [vmem:[%s6308_s1 + $0x240] ss:$20 sps:$4 sm:$0xff]   ;;  %v4941_v63 = vld [vmem:[%s6308_s1 + $0x210] ss:$20 sps:$4 sm:$0xff]  }
 0x1ba   : > { %v4167_v4 = vpack.c.bf16 %v4243_v1, %v4240_v60  ;;  %2807 = vmatmul.mubr.bf16.gmra.mxu1 %v4858_v0  ;;  %v4938_v60 = vld [vmem:[%s6308_s1 + $0x218] ss:$20 sps:$4 sm:$0xff]   ;;  %v4946_v0 = vld [vmem:[%s6308_s1 + $0x268] ss:$20 sps:$4 sm:$0xff]  }
 0x1bb   : > { %4369 = vmatpush3.bf16.msra.mxu0 %v4859_v5  ;;  %2814 = vmatprep.mubr.bf16.mxu1 %v4862_v2  ;;  %v4869_v14 = vld [vmem:[#allocation2 + $0x110] sm:$0xff]   ;;  %v4944_v2 = vld [vmem:[%s6308_s1 + $0x238] ss:$20 sps:$4 sm:$0xff]  }
 0x1bc   : > { %4203 = vst [vmem:[#allocation2 + $0x118] sm:$0xff] %v4167_v4   ;;  %4370 = vmatprep.subr.bf16.mxu0 %v4860_v6  ;;  %v4942_v1 = vld [vmem:[%s6308_s1 + $0x23c] ss:$20 sps:$4 sm:$0xff]   ;;  %v4947_v4 = vld [vmem:[%s6308_s1 + $0x264] ss:$20 sps:$4 sm:$0xff]  }
 0x1bd   : > { %v4949_v5 = vld [vmem:[%s6308_s1 + $0x260] ss:$20 sps:$4 sm:$0xff]   ;;  %v4950_v6 = vld [vmem:[%s6308_s1 + $0x10] ss:$20 sps:$4 sm:$0xff]  }
 0x1bf   : > { %4371 = vmatpush3.bf16.msra.mxu0 %v4861_v7  ;;  %v4951_v7 = vld [vmem:[%s6308_s1 + $0x38] ss:$20 sps:$4 sm:$0xff]  }
 0x1c2   : > { %2815 = vmatmul.mubr.bf16.gmra.mxu1 %v4867_v10  ;;  %2912 = vmatmul.mubr.bf16.vlgmr.msra.gmra.mxu0 %v4864_v9  ;;  %v4952_v9 = vld [vmem:[%s6308_s1 + $0x60] ss:$20 sps:$4 sm:$0xff]  }
 0x1c3   : > { %v4868_v15 = vld [vmem:[#allocation2 + $0x118] sm:$0xff]   ;;  %2822 = vmatprep.mubr.bf16.mxu1 %v4870_v11  ;;  %2919 = vmatprep.mubr.bf16.mxu0 %v4872_v12 }
 0x1c4   : > { %4488 = vmatprep.subr.bf16.mxu0 %v4868_v15  ;;  %4528 = vmatprep.subr.bf16.mxu1 %v4868_v15 }
 0x1c5   : > { %4489 = vmatpush3.bf16.msra.mxu0 %v4868_v15  ;;  %4532 = vmatpush3.bf16.msra.mxu1 %v4868_v15  ;;  %v4953_v15 = vld [vmem:[%s6308_s1 + $0x88] ss:$20 sps:$4 sm:$0xff]  }
 0x1c6   : > { %4490 = vmatprep.subr.bf16.mxu0 %v4869_v14  ;;  %4529 = vmatprep.subr.bf16.mxu1 %v4869_v14 }
 0x1c9   : > { %4491 = vmatpush3.bf16.msra.mxu0 %v4869_v14  ;;  %4533 = vmatpush3.bf16.msra.mxu1 %v4869_v14 }
 0x1ca   : > { %2823 = vmatmul.mubr.bf16.gmra.mxu1 %v4874_v16  ;;  %2920 = vmatmul.mubr.bf16.gmra.mxu0 %v4875_v17 }
 0x1cb   : > { %4492 = vmatprep.subr.bf16.mxu0 %v4876_v19  ;;  %4530 = vmatprep.subr.bf16.mxu1 %v4876_v19 }
 0x1cc   : > { %2830 = vmatprep.mubr.bf16.mxu1 %v4878_v20  ;;  %2927 = vmatprep.mubr.bf16.mxu0 %v4880_v21 }
 0x1cd   : > { %4493 = vmatpush3.bf16.msra.mxu0 %v4876_v19  ;;  %4534 = vmatpush3.bf16.msra.mxu1 %v4876_v19 }
 0x1ce   : > { %4494 = vmatprep.subr.bf16.mxu0 %v4877_v22  ;;  %4531 = vmatprep.subr.bf16.mxu1 %v4877_v22 }
 0x1d1   : > { %4495 = vmatpush3.bf16.msra.mxu0 %v4877_v22  ;;  %4535 = vmatpush3.bf16.msra.mxu1 %v4877_v22 }
 0x1d2   : > { %2831 = vmatmul.mubr.bf16.gmra.mxu1 %v4882_v24  ;;  %2928 = vmatmul.mubr.bf16.gmra.mxu0 %v4883_v25 }
 0x1d3   : > { %2838 = vmatprep.mubr.bf16.mxu1 %v4884_v26  ;;  %2935 = vmatprep.mubr.bf16.mxu0 %v4886_v27 }
 0x1da   : > { %2839 = vmatmul.mubr.bf16.gmra.mxu1 %v4888_v29  ;;  %2936 = vmatmul.mubr.bf16.gmra.mxu0 %v4889_v30 }
 0x1db   : > { %2846 = vmatprep.mubr.bf16.mxu1 %v4890_v48  ;;  %2943 = vmatprep.mubr.bf16.mxu0 %v4892_v31 }
 0x1e2   : > { %2847 = vmatmul.mubr.bf16.gmra.mxu1 %v4894_v32  ;;  %2944 = vmatmul.mubr.bf16.gmra.mxu0 %v4895_v3 }
 0x1e3   : > { %2854 = vmatprep.mubr.bf16.mxu1 %v4896_v34  ;;  %2951 = vmatprep.mubr.bf16.mxu0 %v4898_v8 }
 0x1ea   : > { %2855 = vmatmul.mubr.bf16.gmra.mxu1 %v4900_v35  ;;  %2952 = vmatmul.mubr.bf16.gmra.mxu0 %v4901_v13 }
 0x1eb   : > { %2862 = vmatprep.mubr.bf16.mxu1 %v4902_v36  ;;  %2959 = vmatprep.mubr.bf16.mxu0 %v4904_v18 }
 0x1f2   : > { %2863 = vmatmul.mubr.bf16.gmra.mxu1 %v4906_v37  ;;  %2960 = vmatmul.mubr.bf16.gmra.mxu0 %v4907_v23 }
 0x1f3   : > { %2870 = vmatprep.mubr.bf16.mxu1 %v4908_v28  ;;  %2967 = vmatprep.mubr.bf16.mxu0 %v4910_v33 }
 0x1fa   : > { %2871 = vmatmul.mubr.bf16.gmra.mxu1 %v4912_v38  ;;  %2968 = vmatmul.mubr.bf16.gmra.mxu0 %v4913_v39 }
 0x1fb   : > { %2975 = vmatprep.mubr.bf16.mxu0 %v4914_v40  ;;  %4504 = vmatprep.mubr.msk.bf16.mxu1 %vm2669_vm0, %v4916_v41 }
 0x202   : > { %2976 = vmatmul.mubr.bf16.gmra.mxu0 %v4917_v42  ;;  %4505 = vmatmul.mubr.msk.bf16.vlgmr.msra.gmra.mxu1 %vm2669_vm0, %v4918_v43 }
 0x203   : > { %2983 = vmatprep.mubr.bf16.mxu0 %v4919_v44  ;;  %4508 = vmatprep.mubr.msk.bf16.mxu1 %vm2669_vm0, %v4921_v45 }
 0x20a   : > { %2984 = vmatmul.mubr.bf16.gmra.mxu0 %v4922_v46  ;;  %4509 = vmatmul.mubr.msk.bf16.gmra.mxu1 %vm2669_vm0, %v4923_v47 }
 0x20b   : > { %2991 = vmatprep.mubr.bf16.mxu0 %v4924_v49  ;;  %4512 = vmatprep.mubr.msk.bf16.mxu1 %vm2669_vm0, %v4926_v50 }
 0x212   : > { %2992 = vmatmul.mubr.bf16.gmra.mxu0 %v4927_v51  ;;  %4513 = vmatmul.mubr.msk.bf16.gmra.mxu1 %vm2669_vm0, %v4928_v52 }
 0x213   : > { %2999 = vmatprep.mubr.bf16.mxu0 %v4929_v53  ;;  %4516 = vmatprep.mubr.msk.bf16.mxu1 %vm2669_vm0, %v4931_v54 }
 0x21a   : > { %3000 = vmatmul.mubr.bf16.gmra.mxu0 %v4932_v55  ;;  %4517 = vmatmul.mubr.msk.bf16.gmra.mxu1 %vm2669_vm0, %v4933_v56 }
 0x21b   : > { %3007 = vmatprep.mubr.bf16.mxu0 %v4934_v57  ;;  %4520 = vmatprep.mubr.msk.bf16.mxu1 %vm2669_vm0, %v4937_v58  ;;  %v6031_v57 = vld [vmem:[%s6310_s3] ss:$0 sm:$0xff] }
 0x222   : > { %3008 = vmatmul.mubr.bf16.gmra.mxu0 %v4936_v59  ;;  %4521 = vmatmul.mubr.msk.bf16.gmra.mxu1 %vm2669_vm0, %v4938_v60 }
 0x223   : > { %3015 = vmatprep.mubr.bf16.mxu0 %v4939_v61  ;;  %4524 = vmatprep.mubr.msk.bf16.mxu1 %vm2669_vm0, %v4945_v62 }
 0x22a   : > { %3016 = vmatmul.mubr.bf16.gmra.mxu0 %v4941_v63  ;;  %4525 = vmatmul.mubr.msk.bf16.gmra.mxu1 %vm2669_vm0, %v4946_v0 }
 0x22b   : > { %3023 = vmatprep.mubr.bf16.mxu0 %v4942_v1 }
 0x232   : > { %3024 = vmatmul.mubr.bf16.gmra.mxu0 %v4944_v2 }
 0x233   : > { %3031 = vmatprep.mubr.bf16.mxu0 %v4947_v4 }
 0x23a   : > { %3032 = vmatmul.mubr.bf16.gmra.mxu0 %v4949_v5 }
 0x23b   : > { %4496 = vmatprep.mubr.msk.bf16.mxu0 %vm2669_vm0, %v4950_v6 }
 0x242   : > { %v4260_v10 = vpop.f32.mrf.mxu1  ;;  %4497 = vmatmul.mubr.msk.bf16.vlgmr.msra.gmra.mxu0 %vm2669_vm0, %v4951_v7 }
 0x243   : > { %4500 = vmatprep.mubr.msk.bf16.mxu0 %vm2669_vm0, %v4952_v9 }
 0x244   : > { %v4261_v11 = vpop.f32.mrf.mxu1 }
 0x245   : > { %v4262_v12 = vadd.f32 %v4261_v11, %v4260_v10 }
 0x246   : > { %v4263_v14 = vpop.f32.mrf.mxu1 }
 0x247   : > { %v2753_v62 = vadd.f32 %v4262_v12, %v6031_v57 }
 0x248   : > { %v4264_v16 = vpop.f32.mrf.mxu1 }
 0x249   : > { %v4265_v17 = vadd.f32 %v4264_v16, %v4263_v14 }
 0x24a   : > { %v4266_v19 = vpop.f32.mrf.mxu1  ;;  %4501 = vmatmul.mubr.msk.bf16.gmra.mxu0 %vm2669_vm0, %v4953_v15 }
 0x24b   : > { %v2756_v7 = vadd.f32 %v4265_v17, %v6031_v57 }
 0x24c   : > { %v4267_v20 = vpop.f32.mrf.mxu1 }
 0x24d   : > { %v4268_v21 = vadd.f32 %v4267_v20, %v4266_v19 }
 0x24e   : > { %v4269_v22 = vpop.f32.mrf.mxu1 }
 0x24f   : > { %v2761_v19 = vadd.f32 %v4268_v21, %v6031_v57 }
 0x250   : > { %v4270_v24 = vpop.f32.mrf.mxu1 }
 0x251   : > { %v6002_v25 = vadd.f32 %v4270_v24, %v4269_v22 }
 0x252   : > { %v4272_v26 = vpop.f32.mrf.mxu1 }
 0x254   : > { %v4273_v27 = vpop.f32.mrf.mxu1 }
 0x255   : > { %v6004_v29 = vadd.f32 %v4273_v27, %v4272_v26 }
 0x256   : > { %v4275_v30 = vpop.f32.mrf.mxu1 }
 0x258   : > { %v4276_v48 = vpop.f32.mrf.mxu1 }
 0x259   : > { %v6006_v31 = vadd.f32 %v4276_v48, %v4275_v30  ;;  %v2764_v48 = vadd.f32 %v6002_v25, %v6031_v57 }
 0x25a   : > { %v4278_v32 = vpop.f32.mrf.mxu1 }
 0x25c   : > { %v4279_v3 = vpop.f32.mrf.mxu1 }
 0x25d   : > { %v6008_v34 = vadd.f32 %v4279_v3, %v4278_v32 }
 0x25e   : > { %v4281_v8 = vpop.f32.mrf.mxu1 }
 0x260   : > { %v4282_v35 = vpop.f32.mrf.mxu1 }
 0x261   : > { %v6010_v13 = vadd.f32 %v4282_v35, %v4281_v8 }
 0x262   : > { %v4284_v36 = vpop.f32.mrf.mxu1 }
 0x264   : > { %v4285_v18 = vpop.f32.mrf.mxu1 }
 0x265   : > { %v6012_v37 = vadd.f32 %v4285_v18, %v4284_v36 }
 0x266   : > { %v4287_v23 = vpop.f32.mrf.mxu1 }
 0x268   : > { %v4288_v28 = vpop.f32.mrf.mxu1 }
 0x269   : > { %v6014_v33 = vadd.f32 %v4288_v28, %v4287_v23  ;;  %v2769_v23 = vadd.f32 %v6004_v29, %v6031_v57 }
 0x26a   : > { %v4290_v38 = vpop.f32.mrf.mxu1 }
 0x26c   : > { %v4291_v39 = vpop.f32.mrf.mxu1 }
 0x26d   : > { %v6016_v40 = vadd.f32 %v4291_v39, %v4290_v38 }
 0x26e   : > { %v4293_v41 = vpop.f32.mrf.mxu1 }
 0x270   : > { %v4294_v42 = vpop.f32.mrf.mxu1 }
 0x271   : > { %v6018_v43 = vadd.f32 %v4294_v42, %v4293_v41 }
 0x272   : > { %v4296_v44 = vpop.f32.mrf.mxu1 }
 0x274   : > { %v4297_v45 = vpop.f32.mrf.mxu1 }
 0x275   : > { %v6020_v46 = vadd.f32 %v4297_v45, %v4296_v44  ;;  %v2772_v45 = vadd.f32 %v6006_v31, %v6031_v57 }
 0x276   : > { %v4299_v47 = vpop.f32.mrf.mxu1 }
 0x278   : > { %v4300_v49 = vpop.f32.mrf.mxu1 }
 0x279   : > { %v6022_v50 = vadd.f32 %v4300_v49, %v4299_v47 }
 0x27a   : > { %v4302_v51 = vpop.f32.mrf.mxu1 }
 0x27c   : > { %v4303_v52 = vpop.f32.mrf.mxu1 }
 0x27d   : > { %v6024_v53 = vadd.f32 %v4303_v52, %v4302_v51 }
 0x27e   : > { %v4305_v54 = vpop.f32.mrf.mxu1 }
 0x280   : > { %v4306_v55 = vpop.f32.mrf.mxu1 }
 0x281   : > { %v6026_v56 = vadd.f32 %v4306_v55, %v4305_v54 }
 0x282   : > { %v4308_v58 = vpop.f32.mrf.mxu1  ;;  %v4372_v59 = vpop.f32.mrf.mxu0 }
 0x284   : > { %v4309_v60 = vpop.f32.mrf.mxu1  ;;  %v4373_v61 = vpop.f32.mrf.mxu0 }
 0x285   : > { %v6034_v63 = vadd.f32 %v4309_v60, %v4308_v58  ;;  %v4374_v0 = vadd.f32 %v4373_v61, %v4372_v59  ;;  %v2777_v58 = vadd.f32 %v6008_v34, %v6031_v57 }
 0x286   : > { %v4311_v1 = vpop.f32.mrf.mxu1  ;;  %v4375_v2 = vpop.f32.mrf.mxu0 }
 0x287   : > { %v6036_v4 = vadd.f32 %v4374_v0, %v2753_v62 }
 0x288   : > { %v4312_v5 = vpop.f32.mrf.mxu1  ;;  %v4376_v6 = vpop.f32.mrf.mxu0 }
 0x289   : > { %v6039_v9 = vadd.f32 %v4312_v5, %v4311_v1  ;;  %v4377_v10 = vadd.f32 %v4376_v6, %v4375_v2  ;;  %v2780_v1 = vadd.f32 %v6010_v13, %v6031_v57 }
 0x28a   : > { %v4314_v11 = vpop.f32.mrf.mxu1  ;;  %v4378_v14 = vpop.f32.mrf.mxu0 }
 0x28b   : > { %v6041_v15 = vadd.f32 %v4377_v10, %v2756_v7 }
 0x28c   : > { %v4315_v16 = vpop.f32.mrf.mxu1  ;;  %v4379_v12 = vpop.f32.mrf.mxu0 }
 0x28d   : > { %6320 = vst [vmem:[#allocation9_spill] sm:$0xff] %v6041_v15  ;;  %v6044_v20 = vadd.f32 %v4315_v16, %v4314_v11  ;;  %v4380_v22 = vadd.f32 %v4379_v12, %v4378_v14 }
 0x28e   : > { %v4317_v24 = vpop.f32.mrf.mxu1  ;;  %v4381_v26 = vpop.f32.mrf.mxu0 }
 0x28f   : > { %v6046_v27 = vadd.f32 %v4380_v22, %v2761_v19 }
 0x290   : > { %v4318_v30 = vpop.f32.mrf.mxu1  ;;  %v4382_v17 = vpop.f32.mrf.mxu0 }
 0x291   : > { %v6050_v32 = vadd.f32 %v4318_v30, %v4317_v24  ;;  %v4383_v3 = vadd.f32 %v4382_v17, %v4381_v26 }
 0x292   : > { %v4320_v8 = vpop.f32.mrf.mxu1  ;;  %v4384_v35 = vpop.f32.mrf.mxu0 }
 0x293   : > { %v6052_v36 = vadd.f32 %v4383_v3, %v2764_v48 }
 0x294   : > { %v4321_v21 = vpop.f32.mrf.mxu1  ;;  %v4385_v18 = vpop.f32.mrf.mxu0 }
 0x295   : > { %v6056_v28 = vadd.f32 %v4321_v21, %v4320_v8  ;;  %v4386_v38 = vadd.f32 %v4385_v18, %v4384_v35 }
 0x296   : > { %v4323_v39 = vpop.f32.mrf.mxu1  ;;  %v4387_v41 = vpop.f32.mrf.mxu0 }
 0x297   : > { %v6058_v42 = vadd.f32 %v4386_v38, %v2769_v23 }
 0x298   : > { %v4324_v25 = vpop.f32.mrf.mxu1  ;;  %v4388_v44 = vpop.f32.mrf.mxu0 }
 0x299   : > { %6321 = vst [vmem:[#allocation10_spill] sm:$0xff] %v6058_v42  ;;  %v6062_v47 = vadd.f32 %v4324_v25, %v4323_v39  ;;  %v4389_v49 = vadd.f32 %v4388_v44, %v4387_v41 }
 0x29a   : > { %v6064_v51 = vpop.f32.mrf.mxu1  ;;  %v4390_v52 = vpop.f32.mrf.mxu0 }
 0x29b   : > { %v6066_v54 = vadd.f32 %v4389_v49, %v2772_v45 }
 0x29c   : > { %v6068_v29 = vpop.f32.mrf.mxu1  ;;  %v4391_v55 = vpop.f32.mrf.mxu0 }
 0x29d   : > { %6322 = vst [vmem:[#allocation11_spill] sm:$0xff] %v6066_v54  ;;  %v4392_v59 = vadd.f32 %v4391_v55, %v4390_v52  ;;  %v2788_v54 = vadd.f32 %v6014_v33, %v6031_v57 }
 0x29e   : > { %v6072_v60 = vpop.f32.mrf.mxu1  ;;  %v4393_v61 = vpop.f32.mrf.mxu0 }
 0x29f   : > { %v6074_v62 = vadd.f32 %v4392_v59, %v2777_v58  ;;  %v2793_v58 = vadd.f32 %v6016_v40, %v6031_v57  ;;  %v2804_v40 = vadd.f32 %v6022_v50, %v6031_v57 }
 0x2a0   : > { %v6076_v31 = vpop.f32.mrf.mxu1  ;;  %v4394_v0 = vpop.f32.mrf.mxu0 }
 0x2a1   : > { %6323 = vst [vmem:[#allocation12_spill] sm:$0xff] %v6074_v62  ;;  %v4395_v2 = vadd.f32 %v4394_v0, %v4393_v61  ;;  %v2785_v61 = vadd.f32 %v6012_v37, %v6031_v57  ;;  %v2809_v37 = vadd.f32 %v6024_v53, %v6031_v57  ;;  %v6144_v53 = vadd.f32 %v6050_v32, %v6031_v57 }
 0x2a2   : > { %v6080_v5 = vpop.f32.mrf.mxu1  ;;  %v4396_v6 = vpop.f32.mrf.mxu0 }
 0x2a3   : > { %v6082_v7 = vadd.f32 %v4395_v2, %v2780_v1 }
 0x2a4   : > { %v6084_v10 = vpop.f32.mrf.mxu1  ;;  %v4397_v34 = vpop.f32.mrf.mxu0 }
 0x2a5   : > { %6324 = vst [vmem:[#allocation13_spill] sm:$0xff] %v6082_v7  ;;  %v4398_v59 = vadd.f32 %v4397_v34, %v4396_v6  ;;  %v2812_v6 = vadd.f32 %v6026_v56, %v6031_v57  ;;  %v6132_v34 = vadd.f32 %v6034_v63, %v6031_v57  ;;  %v4328_v56 = vadd.f32 %v6068_v29, %v6064_v51 }
 0x2a6   : > { %v6086_v11 = vpop.f32.mrf.mxu1  ;;  %v4399_v14 = vpop.f32.mrf.mxu0 }
 0x2a8   : > { %v6088_v16 = vpop.f32.mrf.mxu1  ;;  %v4400_v12 = vpop.f32.mrf.mxu0 }
 0x2a9   : > { %v4401_v63 = vadd.f32 %v4400_v12, %v4399_v14 }
 0x2aa   : > { %v6090_v19 = vpop.f32.mrf.mxu1  ;;  %v4402_v22 = vpop.f32.mrf.mxu0 }
 0x2ac   : > { %v6092_v24 = vpop.f32.mrf.mxu1  ;;  %v4403_v13 = vpop.f32.mrf.mxu0 }
 0x2ad   : > { %v4404_v49 = vadd.f32 %v4403_v13, %v4402_v22  ;;  %v2796_v22 = vadd.f32 %v6018_v43, %v6031_v57  ;;  %v2801_v13 = vadd.f32 %v6020_v46, %v6031_v57  ;;  %v6136_v43 = vadd.f32 %v6039_v9, %v6031_v57 }
 0x2ae   : > { %v6094_v26 = vpop.f32.mrf.mxu1  ;;  %v4405_v30 = vpop.f32.mrf.mxu0  ;;  %v6140_v46 = vadd.f32 %v6044_v20, %v6031_v57  ;;  %v6150_v20 = vadd.f32 %v6056_v28, %v6031_v57 }
 0x2af   : > { %v2954_v7 = vadd.f32 %v4404_v49, %v2793_v58 }
 0x2b0   : > { %v6096_v17 = vpop.f32.mrf.mxu1  ;;  %v4406_v48 = vpop.f32.mrf.mxu0 }
 0x2b1   : > { %v4407_v0 = vadd.f32 %v4406_v48, %v4405_v30  ;;  %v2946_v48 = vadd.f32 %v4398_v59, %v2785_v61 }
 0x2b2   : > { %v6098_v3 = vpop.f32.mrf.mxu1  ;;  %v4408_v8 = vpop.f32.mrf.mxu0 }
 0x2b3   : > { %v2957_v42 = vadd.f32 %v4407_v0, %v2796_v22  ;;  %v2949_v22 = vadd.f32 %v4401_v63, %v2788_v54 }
 0x2b4   : > { %v6100_v35 = vpop.f32.mrf.mxu1  ;;  %v4409_v21 = vpop.f32.mrf.mxu0 }
 0x2b5   : > { %v4410_v32 = vadd.f32 %v4409_v21, %v4408_v8 }
 0x2b6   : > { %v6102_v18 = vpop.f32.mrf.mxu1  ;;  %v4411_v23 = vpop.f32.mrf.mxu0 }
 0x2b8   : > { %v6104_v38 = vpop.f32.mrf.mxu1  ;;  %v4412_v39 = vpop.f32.mrf.mxu0 }
 0x2b9   : > { %v4413_v59 = vadd.f32 %v4412_v39, %v4411_v23 }
 0x2ba   : > { %v6106_v41 = vpop.f32.mrf.mxu1  ;;  %v4414_v25 = vpop.f32.mrf.mxu0 }
 0x2bc   : > { %v6108_v44 = vpop.f32.mrf.mxu1  ;;  %v4415_v45 = vpop.f32.mrf.mxu0 }
 0x2bd   : > { %v4416_v62 = vadd.f32 %v4415_v45, %v4414_v25  ;;  %v6157_v25 = vadd.f32 %v4328_v56, %v6031_v57  ;;  %v4331_v45 = vadd.f32 %v6076_v31, %v6072_v60 }
 0x2be   : > { %v6110_v52 = vpop.f32.mrf.mxu1  ;;  %v4417_v55 = vpop.f32.mrf.mxu0 }
 0x2bf   : > { %v2970_v21 = vadd.f32 %v4416_v62, %v2809_v37 }
 0x2c0   : > { %v6116_v1 = vpop.f32.mrf.mxu1  ;;  %v4418_v2 = vpop.f32.mrf.mxu0 }
 0x2c1   : > { %v4419_v23 = vadd.f32 %v4418_v2, %v4417_v55 }
 0x2c2   : > { %v4420_v33 = vpop.f32.mrf.mxu0  ;;  %v4506_v30 = vpop.f32.mrf.mxu1 }
 0x2c3   : > { %v3115_v50 = vadd.f32 %v4506_v30, %v2954_v7  ;;  %v6154_v7 = vadd.f32 %v6062_v47, %v6031_v57 }
 0x2c4   : > { %v4421_v49 = vpop.f32.mrf.mxu0  ;;  %v3106_v58 = vpop.f32.mrf.mxu1 }
 0x2c5   : > { %vm3211_vm1 = vcmp.ge.f32.partialorder %v3115_v50, 0.0  ;;  %v3243_v9 = vmul.f32 0.01, %v3115_v50  ;;  %v3107_v15 = vadd.f32 %v3106_v58, %v2946_v48  ;;  %v4422_v55 = vadd.f32 %v4421_v49, %v4420_v33 }
 0x2c6   : > { %v4423_v61 = vpop.f32.mrf.mxu0  ;;  %v4507_v51 = vpop.f32.mrf.mxu1 }
 0x2c7   : > { %v3275_v29 = vsel %vm3211_vm1, %v3115_v50, %v3243_v9  ;;  %vm3209_vm2 = vcmp.ge.f32.partialorder %v3107_v15, 0.0  ;;  %v3241_v14 = vmul.f32 0.01, %v3107_v15  ;;  %v3118_v12 = vadd.f32 %v4507_v51, %v2957_v42 }
 0x2c8   : > { %v3307_v28 = vmul.f32 0.5, %v3275_v29  ;;  %v4424_v0 = vpop.f32.mrf.mxu0  ;;  %v3109_v30 = vpop.f32.mrf.mxu1  ;;  %v2962_v9 = vadd.f32 %v4410_v32, %v2801_v13  ;;  %v2965_v51 = vadd.f32 %v4413_v59, %v2804_v40 }
 0x2c9   : > { %v3273_v47 = vsel %vm3209_vm2, %v3107_v15, %v3241_v14  ;;  %vm3212_vm3 = vcmp.ge.f32.partialorder %v3118_v12, 0.0  ;;  %v3244_v8 = vmul.f32 0.01, %v3118_v12  ;;  %v3110_v50 = vadd.f32 %v3109_v30, %v2949_v22 }
 0x2ca   : > { %4954 = vtanh.f32 %v3307_v28  ;;  %v3305_v39 = vmul.f32 0.5, %v3273_v47  ;;  %v4426_v48 = vpop.f32.mrf.mxu0  ;;  %v4510_v42 = vpop.f32.mrf.mxu1  ;;  %v2973_v14 = vadd.f32 %v4419_v23, %v2812_v6  ;;  %v4425_v40 = vadd.f32 %v4424_v0, %v4423_v61 }
 0x2cb   : > { %v3276_v58 = vsel %vm3212_vm3, %v3118_v12, %v3244_v8  ;;  %v3131_v56 = vadd.f32 %v4510_v42, %v2970_v21  ;;  %vm3210_vm4 = vcmp.ge.f32.partialorder %v3110_v50, 0.0  ;;  %v3242_v31 = vmul.f32 0.01, %v3110_v50 }
 0x2cc   : > { %4956 = vtanh.f32 %v3305_v39  ;;  %v3308_v60 = vmul.f32 0.5, %v3276_v58  ;;  %v4427_v54 = vpop.f32.mrf.mxu0  ;;  %v3122_v63 = vpop.f32.mrf.mxu1  ;;  %v2978_v58 = vadd.f32 %v4422_v55, %v6132_v34 }
 0x2cd   : > { %vm3215_vm5 = vcmp.ge.f32.partialorder %v3131_v56, 0.0  ;;  %v3247_v15 = vmul.f32 0.01, %v3131_v56  ;;  %v4428_v29 = vadd.f32 %v4427_v54, %v4426_v48  ;;  %v3123_v62 = vadd.f32 %v3122_v63, %v2962_v9 }
 0x2ce   : > { %4958 = vtanh.f32 %v3308_v60  ;;  %v3274_v2 = vsel %vm3210_vm4, %v3110_v50, %v3242_v31  ;;  %v4429_v37 = vpop.f32.mrf.mxu0  ;;  %v4511_v28 = vpop.f32.mrf.mxu1  ;;  %v6163_v48 = vadd.f32 %v4331_v45, %v6031_v57  ;;  %v4334_v54 = vadd.f32 %v6084_v10, %v6080_v5 }
 0x2cf   : > { %v3306_v12 = vmul.f32 0.5, %v3274_v2  ;;  %v3279_v22 = vsel %vm3215_vm5, %v3131_v56, %v3247_v15  ;;  %vm3213_vm6 = vcmp.ge.f32.partialorder %v3123_v62, 0.0  ;;  %v3245_v13 = vmul.f32 0.01, %v3123_v62 }
 0x2d0   : > { %v3311_v32 = vmul.f32 0.5, %v3279_v22  ;;  %v3134_v59 = vadd.f32 %v4511_v28, %v2973_v14  ;;  %v4430_v30 = vpop.f32.mrf.mxu0  ;;  %v3125_v47 = vpop.f32.mrf.mxu1  ;;  %v2986_v8 = vadd.f32 %v4428_v29, %v6140_v46 }
 0x2d1   : > { %4960 = vtanh.f32 %v3306_v12  ;;  %v3277_v21 = vsel %vm3213_vm6, %v3123_v62, %v3245_v13  ;;  %v4431_v39 = vadd.f32 %v4430_v30, %v4429_v37  ;;  %v3126_v33 = vadd.f32 %v3125_v47, %v2965_v51 }
 0x2d2   : > { %4962 = vtanh.f32 %v3311_v32  ;;  %v3309_v49 = vmul.f32 0.5, %v3277_v21  ;;  %vm3216_vm7 = vcmp.ge.f32.partialorder %v3134_v59, 0.0  ;;  %v3248_v6 = vmul.f32 0.01, %v3134_v59  ;;  %v4432_v23 = vpop.f32.mrf.mxu0  ;;  %v4514_v50 = vpop.f32.mrf.mxu1 }
 0x2d3   : > { %vm3214_vm8 = vcmp.ge.f32.partialorder %v3126_v33, 0.0  ;;  %v3246_v61 = vmul.f32 0.01, %v3126_v33  ;;  %v3147_v0 = vadd.f32 %v4514_v50, %v2986_v8  ;;  %v2989_v9 = vadd.f32 %v4431_v39, %v6144_v53 }
 0x2d4   : > { %4964 = vtanh.f32 %v3309_v49  ;;  %v3280_v42 = vsel %vm3216_vm7, %v3134_v59, %v3248_v6  ;;  %v4433_v46 = vpop.f32.mrf.mxu0  ;;  %v3138_v56 = vpop.f32.mrf.mxu1  ;;  %v2981_v62 = vadd.f32 %v4425_v40, %v6136_v43  ;;  %v6172_v8 = vadd.f32 %v4334_v54, %v6031_v57 }
 0x2d5   : > { %v3312_v51 = vmul.f32 0.5, %v3280_v42  ;;  %v3278_v60 = vsel %vm3214_vm8, %v3126_v33, %v3246_v61  ;;  %vm3219_vm9 = vcmp.ge.f32.partialorder %v3147_v0, 0.0  ;;  %v3251_v31 = vmul.f32 0.01, %v3147_v0 }
 0x2d6   : > { %v3310_v45 = vmul.f32 0.5, %v3278_v60  ;;  %v3139_v63 = vadd.f32 %v3138_v56, %v2978_v58  ;;  %v4435_v15 = vpop.f32.mrf.mxu0  ;;  %v4515_v29 = vpop.f32.mrf.mxu1  ;;  %v4434_v55 = vadd.f32 %v4433_v46, %v4432_v23 }
 0x2d7   : > { %v4955_v2 = vpop.eup %4954  ;;  %4966 = vtanh.f32 %v3312_v51  ;;  %v3283_v34 = vsel %vm3219_vm9, %v3147_v0, %v3251_v31  ;;  %v3150_v37 = vadd.f32 %v4515_v29, %v2989_v9 }
 0x2d8   : > { %v3371_v53 = vmul.f32 0.5, %v4955_v2  ;;  %4968 = vtanh.f32 %v3310_v45  ;;  %v3315_v14 = vmul.f32 0.5, %v3283_v34  ;;  %vm3217_vm10 = vcmp.ge.f32.partialorder %v3139_v63, 0.0  ;;  %v4436_v28 = vpop.f32.mrf.mxu0  ;;  %v3141_v12 = vpop.f32.mrf.mxu1 }
 0x2d9   : > { %v4957_v22 = vpop.eup %4956  ;;  %v3249_v5 = vmul.f32 0.01, %v3139_v63  ;;  %vm3220_vm11 = vcmp.ge.f32.partialorder %v3150_v37, 0.0  ;;  %v3252_v10 = vmul.f32 0.01, %v3150_v37  ;;  %v4437_v13 = vadd.f32 %v4436_v28, %v4435_v15 }
 0x2da   : > { %v3403_v32 = vadd.f32 0.5, %v3371_v53  ;;  %v3369_v59 = vmul.f32 0.5, %v4957_v22  ;;  %4970 = vtanh.f32 %v3315_v14  ;;  %v3142_v43 = vadd.f32 %v3141_v12, %v2981_v62  ;;  %v4438_v40 = vpop.f32.mrf.mxu0  ;;  %v4518_v30 = vpop.f32.mrf.mxu1 }
 0x2db   : > { %v4959_v47 = vpop.eup %4958  ;;  %v3281_v21 = vsel %vm3217_vm10, %v3139_v63, %v3249_v5  ;;  %v3284_v39 = vsel %vm3220_vm11, %v3150_v37, %v3252_v10  ;;  %v2994_v33 = vadd.f32 %v4434_v55, %v6150_v20  ;;  %v4337_v20 = vadd.f32 %v6088_v16, %v6086_v11 }
 0x2dc   : > { %3435 = vst [vmem:[%s6178_s20 + $0x50] sm:$0xff] %v3403_v32  ;;  %v3401_v49 = vadd.f32 0.5, %v3369_v59  ;;  %v3372_v6 = vmul.f32 0.5, %v4959_v47  ;;  %v3313_v23 = vmul.f32 0.5, %v3281_v21  ;;  %v3316_v50 = vmul.f32 0.5, %v3284_v39  ;;  %v4439_v61 = vpop.f32.mrf.mxu0  ;;  %v3154_v0 = vpop.f32.mrf.mxu1 }
 0x2dd   : > { %vm3218_vm12 = vcmp.ge.f32.partialorder %v3142_v43, 0.0  ;;  %v3250_v42 = vmul.f32 0.01, %v3142_v43  ;;  %v4440_v46 = vadd.f32 %v4439_v61, %v4438_v40  ;;  %v3155_v58 = vadd.f32 %v3154_v0, %v2994_v33 }
 0x2de   : > { %v4961_v56 = vpop.eup %4960  ;;  %3433 = vst [vmem:[%s6178_s20 + $0x40] sm:$0xff] %v3401_v49  ;;  %v3404_v9 = vadd.f32 0.5, %v3372_v6  ;;  %4972 = vtanh.f32 %v3313_v23  ;;  %v4441_v51 = vpop.f32.mrf.mxu0  ;;  %v2997_v31 = vadd.f32 %v4437_v13, %v6154_v7  ;;  %v2852_v59 = vadd.f32 %v4337_v20, %v6031_v57 }
 0x2df   : > { %v4519_v60 = vpop.f32.mrf.mxu1  ;;  %v4963_v54 = vpop.eup %4962  ;;  %v3370_v45 = vmul.f32 0.5, %v4961_v56  ;;  %4974 = vtanh.f32 %v3316_v50  ;;  %v3282_v63 = vsel %vm3218_vm12, %v3142_v43, %v3250_v42  ;;  %v3002_v15 = vadd.f32 %v4440_v46, %v6157_v25 }
 0x2e0   : > { %3436 = vst [vmem:[%s6178_s20 + $0x58] sm:$0xff] %v3404_v9  ;;  %v3375_v29 = vmul.f32 0.5, %v4963_v54  ;;  %v3314_v62 = vmul.f32 0.5, %v3282_v63  ;;  %vm3221_vm13 = vcmp.ge.f32.partialorder %v3155_v58, 0.0  ;;  %v3253_v2 = vmul.f32 0.01, %v3155_v58  ;;  %v4442_v11 = vpop.f32.mrf.mxu0 }
 0x2e1   : > { %v3157_v16 = vpop.f32.mrf.mxu1  ;;  %v4965_v34 = vpop.eup %4964  ;;  %v3402_v55 = vadd.f32 0.5, %v3370_v45  ;;  %v3163_v37 = vadd.f32 %v4518_v30, %v3002_v15  ;;  %v4443_v53 = vadd.f32 %v4442_v11, %v4441_v51 }
 0x2e2   : > { %v3158_v7 = vadd.f32 %v3157_v16, %v2997_v31  ;;  %v3407_v14 = vadd.f32 0.5, %v3375_v29  ;;  %v3373_v28 = vmul.f32 0.5, %v4965_v34  ;;  %4976 = vtanh.f32 %v3314_v62  ;;  %v4444_v22 = vpop.f32.mrf.mxu0 }
 0x2e3   : > { %v3285_v12 = vsel %vm3221_vm13, %v3155_v58, %v3253_v2  ;;  %v6187_v25 = vpop.f32.mrf.mxu1  ;;  %3434 = vst [vmem:[%s6178_s20 + $0x48] sm:$0xff] %v3402_v55  ;;  %vm3223_vm14 = vcmp.ge.f32.partialorder %v3163_v37, 0.0  ;;  %v3255_v5 = vmul.f32 0.01, %v3163_v37  ;;  %v3005_v13 = vadd.f32 %v4443_v53, %v6163_v48 }
 0x2e4   : > { %v3317_v10 = vmul.f32 0.5, %v3285_v12  ;;  %v4967_v32 = vpop.eup %4966  ;;  %3439 = vst [vmem:[%s6178_s20 + $0x70] sm:$0xff] %v3407_v14  ;;  %v3405_v43 = vadd.f32 0.5, %v3373_v28  ;;  %vm3222_vm15 = vcmp.ge.f32.partialorder %v3158_v7, 0.0  ;;  %v3254_v40 = vmul.f32 0.01, %v3158_v7  ;;  %v4445_v30 = vpop.f32.mrf.mxu0 }
 0x2e5   : > { %v3170_v47 = vpop.f32.mrf.mxu1  ;;  %v4969_v21 = vpop.eup %4968  ;;  %v3376_v39 = vmul.f32 0.5, %v4967_v32  ;;  %v3287_v33 = vsel %vm3223_vm14, %v3163_v37, %v3255_v5  ;;  %v3166_v49 = vadd.f32 %v4519_v60, %v3005_v13  ;;  %v4446_v48 = vadd.f32 %v4445_v30, %v4444_v22 }
 0x2e6   : > { %4978 = vtanh.f32 %v3317_v10  ;;  %3437 = vst [vmem:[%s6178_s20 + $0x60] sm:$0xff] %v3405_v43  ;;  %v3374_v6 = vmul.f32 0.5, %v4969_v21  ;;  %v3319_v23 = vmul.f32 0.5, %v3287_v33  ;;  %v3286_v50 = vsel %vm3222_vm15, %v3158_v7, %v3254_v40  ;;  %v4447_v61 = vpop.f32.mrf.mxu0 }
 0x2e7   : > { %v6194_v0 = vpop.f32.mrf.mxu1  ;;  %v4971_v42 = vpop.eup %4970  ;;  %v3408_v46 = vadd.f32 0.5, %v3376_v39  ;;  %vm3224_vm0 = vcmp.ge.f32.partialorder %v3166_v49, 0.0  ;;  %v3256_v58 = vmul.f32 0.01, %v3166_v49  ;;  %v3318_v56 = vmul.f32 0.5, %v3286_v50 }
 0x2e8   : > { %v3406_v20 = vadd.f32 0.5, %v3374_v6  ;;  %v3379_v9 = vmul.f32 0.5, %v4971_v42  ;;  %4980 = vtanh.f32 %v3319_v23  ;;  %v4448_v51 = vpop.f32.mrf.mxu0  ;;  %v3010_v60 = vadd.f32 %v4446_v48, %v6172_v8 }
 0x2e9   : > { %v4340_v31 = vadd.f32 %v6092_v24, %v6090_v19  ;;  %3440 = vst [vmem:[%s6178_s20 + $0x78] sm:$0xff] %v3408_v46  ;;  %v3288_v54 = vsel %vm3224_vm0, %v3166_v49, %v3256_v58  ;;  %4982 = vtanh.f32 %v3318_v56  ;;  %v4449_v45 = vadd.f32 %v4448_v51, %v4447_v61  ;;  %v3173_v2 = vpop.f32.mrf.mxu1 }
 0x2ea   : > { %3438 = vst [vmem:[%s6178_s20 + $0x68] sm:$0xff] %v3406_v20  ;;  %v3411_v63 = vadd.f32 0.5, %v3379_v9  ;;  %v3320_v15 = vmul.f32 0.5, %v3288_v54  ;;  %v3171_v29 = vadd.f32 %v3170_v47, %v3010_v60  ;;  %v4450_v62 = vpop.f32.mrf.mxu0  ;;  %v4343_v14 = vadd.f32 %v6096_v17, %v6094_v26 }
 0x2eb   : > { %v4973_v11 = vpop.eup %4972  ;;  %v3013_v16 = vadd.f32 %v4449_v45, %v2852_v59  ;;  %v2857_v19 = vadd.f32 %v4340_v31, %v6031_v57  ;;  %v6205_v5 = vpop.f32.mrf.mxu1  ;;  %v4346_v43 = vadd.f32 %v6100_v35, %v6098_v3  ;;  %v4349_v61 = vadd.f32 %v6104_v38, %v6102_v18 }
 0x2ec   : > { %v4975_v34 = vpop.eup %4974  ;;  %3443 = vst [vmem:[%s6178_s20 + $0x90] sm:$0xff] %v3411_v63  ;;  %v3377_v55 = vmul.f32 0.5, %v4973_v11  ;;  %4984 = vtanh.f32 %v3320_v15  ;;  %vm3225_vm1 = vcmp.ge.f32.partialorder %v3171_v29, 0.0  ;;  %v3257_v8 = vmul.f32 0.01, %v3171_v29  ;;  %v4451_v37 = vpop.f32.mrf.mxu0 }
 0x2ed   : > { %v3380_v24 = vmul.f32 0.5, %v4975_v34  ;;  %v4452_v53 = vadd.f32 %v4451_v37, %v4450_v62  ;;  %v3174_v7 = vadd.f32 %v3173_v2, %v3013_v16  ;;  %v2860_v39 = vadd.f32 %v4343_v14, %v6031_v57  ;;  %v3186_v23 = vpop.f32.mrf.mxu1 }
 0x2ee   : > { %v3409_v28 = vadd.f32 0.5, %v3377_v55  ;;  %v3289_v12 = vsel %vm3225_vm1, %v3171_v29, %v3257_v8  ;;  %v4453_v22 = vpop.f32.mrf.mxu0  ;;  %v2865_v48 = vadd.f32 %v4346_v43, %v6031_v57  ;;  %v4352_v18 = vadd.f32 %v6108_v44, %v6106_v41 }
 0x2ef   : > { %v4977_v10 = vpop.eup %4976  ;;  %v3412_v13 = vadd.f32 0.5, %v3380_v24  ;;  %v3321_v32 = vmul.f32 0.5, %v3289_v12  ;;  %v3018_v59 = vadd.f32 %v4452_v53, %v2857_v19  ;;  %vm3226_vm2 = vcmp.ge.f32.partialorder %v3174_v7, 0.0  ;;  %v6218_v45 = vpop.f32.mrf.mxu1 }
 0x2f0   : > { %3441 = vst [vmem:[%s6178_s20 + $0x80] sm:$0xff] %v3409_v28  ;;  %v3378_v40 = vmul.f32 0.5, %v4977_v10  ;;  %v3258_v30 = vmul.f32 0.01, %v3174_v7  ;;  %v4454_v47 = vpop.f32.mrf.mxu0  ;;  %v2868_v11 = vadd.f32 %v4349_v61, %v6031_v57  ;;  %v2873_v53 = vadd.f32 %v4352_v18, %v6031_v57  ;;  %v6325_v18 = vld [vmem:[#allocation9_spill] sm:$0xff] }
 0x2f1   : > { %3444 = vst [vmem:[%s6178_s20 + $0x98] sm:$0xff] %v3412_v13  ;;  %4986 = vtanh.f32 %v3321_v32  ;;  %v3179_v26 = vadd.f32 %v6187_v25, %v3018_v59  ;;  %v4455_v17 = vadd.f32 %v4454_v47, %v4453_v22  ;;  %v3189_v41 = vpop.f32.mrf.mxu1 }
 0x2f2   : > { %v3410_v33 = vadd.f32 0.5, %v3378_v40  ;;  %v3290_v49 = vsel %vm3226_vm2, %v3174_v7, %v3258_v30  ;;  %v4456_v6 = vpop.f32.mrf.mxu0  ;;  %v4355_v7 = vadd.f32 %v6116_v1, %v6110_v52 }
 0x2f3   : > { %v4979_v21 = vpop.eup %4978  ;;  %vm3227_vm3 = vcmp.ge.f32.partialorder %v3179_v26, 0.0  ;;  %v3259_v3 = vmul.f32 0.01, %v3179_v26  ;;  %v3322_v35 = vmul.f32 0.5, %v3290_v49  ;;  %v3021_v25 = vadd.f32 %v4455_v17, %v2860_v39 }
 0x2f4   : > { %v3381_v50 = vmul.f32 0.5, %v4979_v21  ;;  %3442 = vst [vmem:[%s6178_s20 + $0x88] sm:$0xff] %v3410_v33  ;;  %v4457_v42 = vpop.f32.mrf.mxu0  ;;  %v2876_v47 = vadd.f32 %v4355_v7, %v6031_v57 }
 0x2f5   : > { %v4981_v46 = vpop.eup %4980  ;;  %v3291_v56 = vsel %vm3227_vm3, %v3179_v26, %v3259_v3  ;;  %4988 = vtanh.f32 %v3322_v35  ;;  %v4458_v20 = vadd.f32 %v4457_v42, %v4456_v6  ;;  %v3182_v31 = vadd.f32 %v6194_v0, %v3021_v25 }
 0x2f6   : > { %v3413_v58 = vadd.f32 0.5, %v3381_v50  ;;  %v4983_v9 = vpop.eup %4982  ;;  %v3383_v51 = vmul.f32 0.5, %v4981_v46  ;;  %v3323_v60 = vmul.f32 0.5, %v3291_v56  ;;  %v4459_v54 = vpop.f32.mrf.mxu0 }
 0x2f7   : > { %v3382_v38 = vmul.f32 0.5, %v4983_v9  ;;  %v3026_v63 = vadd.f32 %v4458_v20, %v2865_v48  ;;  %vm3228_vm4 = vcmp.ge.f32.partialorder %v3182_v31, 0.0  ;;  %v3260_v29 = vmul.f32 0.01, %v3182_v31 }
 0x2f8   : > { %3445 = vst [vmem:[%s6178_s20 + $0xa0] sm:$0xff] %v3413_v58  ;;  %v3415_v15 = vadd.f32 0.5, %v3383_v51  ;;  %4990 = vtanh.f32 %v3323_v60  ;;  %v4460_v62 = vpop.f32.mrf.mxu0 }
 0x2f9   : > { %v4985_v2 = vpop.eup %4984  ;;  %v3414_v0 = vadd.f32 0.5, %v3382_v38  ;;  %v4461_v16 = vadd.f32 %v4460_v62, %v4459_v54  ;;  %v3187_v34 = vadd.f32 %v3186_v23, %v3026_v63  ;;  %v3292_v8 = vsel %vm3228_vm4, %v3182_v31, %v3260_v29 }
 0x2fa   : > { %3447 = vst [vmem:[%s6178_s20 + $0xb0] sm:$0xff] %v3415_v15  ;;  %v3384_v55 = vmul.f32 0.5, %v4985_v2  ;;  %v4462_v37 = vpop.f32.mrf.mxu0  ;;  %v3324_v44 = vmul.f32 0.5, %v3292_v8 }
 0x2fb   : > { %3446 = vst [vmem:[%s6178_s20 + $0xa8] sm:$0xff] %v3414_v0  ;;  %vm3229_vm5 = vcmp.ge.f32.partialorder %v3187_v34, 0.0  ;;  %v3261_v19 = vmul.f32 0.01, %v3187_v34  ;;  %v3029_v24 = vadd.f32 %v4461_v16, %v2868_v11  ;;  %v6326_v16 = vld [vmem:[#allocation12_spill] sm:$0xff] }
 0x2fc   : > { %v3416_v14 = vadd.f32 0.5, %v3384_v55  ;;  %v4463_v28 = vpop.f32.mrf.mxu0  ;;  %4992 = vtanh.f32 %v3324_v44 }
 0x2fd   : > { %v3293_v12 = vsel %vm3229_vm5, %v3187_v34, %v3261_v19  ;;  %v4464_v22 = vadd.f32 %v4463_v28, %v4462_v37  ;;  %v3190_v10 = vadd.f32 %v3189_v41, %v3029_v24 }
 0x2fe   : > { %v4987_v13 = vpop.eup %4986  ;;  %3448 = vst [vmem:[%s6178_s20 + $0xb8] sm:$0xff] %v3416_v14  ;;  %v3325_v32 = vmul.f32 0.5, %v3293_v12  ;;  %v4465_v59 = vpop.f32.mrf.mxu0  ;;  %v6327_v14 = vld [vmem:[#allocation10_spill] sm:$0xff]  ;;  %v6328_v12 = vld [vmem:[#allocation13_spill] sm:$0xff] }
 0x2ff   : > { %v3385_v43 = vmul.f32 0.5, %v4987_v13  ;;  %v3034_v40 = vadd.f32 %v4464_v22, %v2873_v53  ;;  %vm3230_vm6 = vcmp.ge.f32.partialorder %v3190_v10, 0.0  ;;  %v3262_v30 = vmul.f32 0.01, %v3190_v10 }
 0x300   : > { %4994 = vtanh.f32 %v3325_v32  ;;  %v4466_v26 = vpop.f32.mrf.mxu0 }
 0x301   : > { %v3417_v52 = vadd.f32 0.5, %v3385_v43  ;;  %v3195_v1 = vadd.f32 %v6205_v5, %v3034_v40  ;;  %v3294_v17 = vsel %vm3230_vm6, %v3190_v10, %v3262_v30  ;;  %v4467_v21 = vadd.f32 %v4466_v26, %v4465_v59  ;;  %v6329_v26 = vld [vmem:[#allocation11_spill] sm:$0xff] }
 0x302   : > { %v4989_v39 = vpop.eup %4988  ;;  %v3326_v33 = vmul.f32 0.5, %v3294_v17  ;;  %v4498_v49 = vpop.f32.mrf.mxu0 }
 0x303   : > { %3449 = vst [vmem:[%s6178_s20 + $0xc0] sm:$0xff] %v3417_v52  ;;  %v3386_v6 = vmul.f32 0.5, %v4989_v39  ;;  %vm3231_vm7 = vcmp.ge.f32.partialorder %v3195_v1, 0.0  ;;  %v3263_v23 = vmul.f32 0.01, %v3195_v1  ;;  %v3037_v50 = vadd.f32 %v4467_v21, %v2876_v47 }
 0x304   : > { %4996 = vtanh.f32 %v3326_v33  ;;  %v3083_v3 = vadd.f32 %v4498_v49, %v6046_v27  ;;  %v3074_v57 = vpop.f32.mrf.mxu0 }
 0x305   : > { %v4991_v35 = vpop.eup %4990  ;;  %v3418_v48 = vadd.f32 0.5, %v3386_v6  ;;  %v3295_v61 = vsel %vm3231_vm7, %v3195_v1, %v3263_v23  ;;  %v3198_v5 = vadd.f32 %v6218_v45, %v3037_v50  ;;  %v3075_v25 = vadd.f32 %v3074_v57, %v6036_v4 }
 0x306   : > { %v3387_v42 = vmul.f32 0.5, %v4991_v35  ;;  %v3327_v46 = vmul.f32 0.5, %v3295_v61  ;;  %vm3203_vm8 = vcmp.ge.f32.partialorder %v3083_v3, 0.0  ;;  %v3235_v58 = vmul.f32 0.01, %v3083_v3  ;;  %v4499_v56 = vpop.f32.mrf.mxu0 }
 0x307   : > { %3450 = vst [vmem:[%s6178_s20 + $0xc8] sm:$0xff] %v3418_v48  ;;  %vm3232_vm9 = vcmp.ge.f32.partialorder %v3198_v5, 0.0  ;;  %v3264_v20 = vmul.f32 0.01, %v3198_v5  ;;  %vm3201_vm10 = vcmp.ge.f32.partialorder %v3075_v25, 0.0  ;;  %v3086_v60 = vadd.f32 %v4499_v56, %v6052_v36 }
 0x308   : > { %v3233_v9 = vmul.f32 0.01, %v3075_v25  ;;  %v3419_v27 = vadd.f32 0.5, %v3387_v42  ;;  %4998 = vtanh.f32 %v3327_v46  ;;  %v3267_v51 = vsel %vm3203_vm8, %v3083_v3, %v3235_v58  ;;  %v3077_v31 = vpop.f32.mrf.mxu0 }
 0x309   : > { %v3296_v54 = vsel %vm3232_vm9, %v3198_v5, %v3264_v20  ;;  %v3299_v45 = vmul.f32 0.5, %v3267_v51  ;;  %v3078_v38 = vadd.f32 %v3077_v31, %v6325_v18  ;;  %v4993_v63 = vpop.eup %4992  ;;  %vm3204_vm11 = vcmp.ge.f32.partialorder %v3086_v60, 0.0 }
 0x30a   : > { %v3265_v4 = vsel %vm3201_vm10, %v3075_v25, %v3233_v9  ;;  %3451 = vst [vmem:[%s6178_s20 + $0xd0] sm:$0xff] %v3419_v27  ;;  %v3328_v15 = vmul.f32 0.5, %v3296_v54  ;;  %v3236_v62 = vmul.f32 0.01, %v3086_v60  ;;  %v4502_v2 = vpop.f32.mrf.mxu0  ;;  %v3388_v11 = vmul.f32 0.5, %v4993_v63 }
 0x30b   : > { %v3297_v29 = vmul.f32 0.5, %v3265_v4  ;;  %5000 = vtanh.f32 %v3299_v45  ;;  %vm3202_vm12 = vcmp.ge.f32.partialorder %v3078_v38, 0.0  ;;  %v3234_v0 = vmul.f32 0.01, %v3078_v38 }
 0x30c   : > { %5002 = vtanh.f32 %v3328_v15  ;;  %v3268_v36 = vsel %vm3204_vm11, %v3086_v60, %v3236_v62  ;;  %v3099_v34 = vadd.f32 %v4502_v2, %v6326_v16  ;;  %v3090_v55 = vpop.f32.mrf.mxu0  ;;  %v3420_v37 = vadd.f32 0.5, %v3388_v11 }
 0x30d   : > { %v4995_v8 = vpop.eup %4994  ;;  %5004 = vtanh.f32 %v3297_v29  ;;  %v3300_v41 = vmul.f32 0.5, %v3268_v36  ;;  %v3266_v44 = vsel %vm3202_vm12, %v3078_v38, %v3234_v0  ;;  %v3091_v28 = vadd.f32 %v3090_v55, %v6327_v14 }
 0x30e   : > { %v3389_v19 = vmul.f32 0.5, %v4995_v8  ;;  %v3298_v24 = vmul.f32 0.5, %v3266_v44  ;;  %vm3207_vm13 = vcmp.ge.f32.partialorder %v3099_v34, 0.0  ;;  %v3239_v53 = vmul.f32 0.01, %v3099_v34  ;;  %v4503_v7 = vpop.f32.mrf.mxu0  ;;  %3452 = vst [vmem:[%s6178_s20 + $0xd8] sm:$0xff] %v3420_v37 }
 0x30f   : > { %5006 = vtanh.f32 %v3300_v41  ;;  %v3102_v22 = vadd.f32 %v4503_v7, %v6328_v12  ;;  %vm3205_vm14 = vcmp.ge.f32.partialorder %v3091_v28, 0.0  ;;  %v3237_v40 = vmul.f32 0.01, %v3091_v28 }
 0x310   : > { %v3421_v10 = vadd.f32 0.5, %v3389_v19  ;;  %5008 = vtanh.f32 %v3298_v24  ;;  %v3271_v13 = vsel %vm3207_vm13, %v3099_v34, %v3239_v53  ;;  %v3093_v32 = vpop.f32.mrf.mxu0 }
 0x311   : > { %v4997_v59 = vpop.eup %4996  ;;  %v3303_v43 = vmul.f32 0.5, %v3271_v13  ;;  %vm3208_vm15 = vcmp.ge.f32.partialorder %v3102_v22, 0.0  ;;  %v3240_v47 = vmul.f32 0.01, %v3102_v22  ;;  %v3094_v52 = vadd.f32 %v3093_v32, %v6329_v26 }
 0x312   : > { %3453 = vst [vmem:[%s6178_s20 + $0xe0] sm:$0xff] %v3421_v10  ;;  %v3390_v30 = vmul.f32 0.5, %v4997_v59  ;;  %v3269_v1 = vsel %vm3205_vm14, %v3091_v28, %v3237_v40 }
 0x313   : > { %5010 = vtanh.f32 %v3303_v43  ;;  %v3301_v21 = vmul.f32 0.5, %v3269_v1  ;;  %v3272_v39 = vsel %vm3208_vm15, %v3102_v22, %v3240_v47  ;;  %vm3206_vm0 = vcmp.ge.f32.partialorder %v3094_v52, 0.0 }
 0x314   : > { %v3422_v17 = vadd.f32 0.5, %v3390_v30  ;;  %v3304_v49 = vmul.f32 0.5, %v3272_v39  ;;  %v3238_v6 = vmul.f32 0.01, %v3094_v52 }
 0x315   : > { %v4999_v33 = vpop.eup %4998  ;;  %5012 = vtanh.f32 %v3301_v21 }
 0x316   : > { %v3391_v23 = vmul.f32 0.5, %v4999_v33  ;;  %3454 = vst [vmem:[%s6178_s20 + $0xe8] sm:$0xff] %v3422_v17  ;;  %5014 = vtanh.f32 %v3304_v49  ;;  %v3270_v50 = vsel %vm3206_vm0, %v3094_v52, %v3238_v6 }
 0x317   : > { %v3302_v35 = vmul.f32 0.5, %v3270_v50 }
 0x318   : > { %v5001_v3 = vpop.eup %5000  ;;  %v3423_v57 = vadd.f32 0.5, %v3391_v23 }
 0x319   : > { %v5003_v48 = vpop.eup %5002  ;;  %v3363_v61 = vmul.f32 0.5, %v5001_v3  ;;  %5016 = vtanh.f32 %v3302_v35 }
 0x31a   : > { %v5005_v5 = vpop.eup %5004  ;;  %3455 = vst [vmem:[%s6178_s20 + $0xf0] sm:$0xff] %v3423_v57  ;;  %v3392_v25 = vmul.f32 0.5, %v5003_v48 }
 0x31b   : > { %v3395_v42 = vadd.f32 0.5, %v3363_v61  ;;  %v3361_v46 = vmul.f32 0.5, %v5005_v5 }
 0x31c   : > { %v5007_v58 = vpop.eup %5006  ;;  %v3424_v56 = vadd.f32 0.5, %v3392_v25 }
 0x31d   : > { %v5009_v20 = vpop.eup %5008  ;;  %3427 = vst [vmem:[%s6178_s20 + $0x10] sm:$0xff] %v3395_v42  ;;  %v3393_v9 = vadd.f32 0.5, %v3361_v46  ;;  %v3364_v27 = vmul.f32 0.5, %v5007_v58 }
 0x31e   : > { %3456 = vst [vmem:[%s6178_s20 + $0xf8] sm:$0xff] %v3424_v56  ;;  %v3362_v51 = vmul.f32 0.5, %v5009_v20 }
 0x31f   : > { %3425 = vst [vmem:[%s6178_s20] sm:$0xff] %v3393_v9  ;;  %v3396_v60 = vadd.f32 0.5, %v3364_v27 }
 0x320   : > { %v5011_v31 = vpop.eup %5010  ;;  %v3394_v54 = vadd.f32 0.5, %v3362_v51 }
 0x321   : > { %3428 = vst [vmem:[%s6178_s20 + $0x18] sm:$0xff] %v3396_v60  ;;  %v3367_v45 = vmul.f32 0.5, %v5011_v31 }
 0x322   : > { %3426 = vst [vmem:[%s6178_s20 + $0x8] sm:$0xff] %v3394_v54  ;;  %v5013_v4 = vpop.eup %5012 }
 0x323   : > { %v3399_v18 = vadd.f32 0.5, %v3367_v45  ;;  %v5015_v38 = vpop.eup %5014  ;;  %v3365_v63 = vmul.f32 0.5, %v5013_v4 }
 0x324   : > { %v3368_v15 = vmul.f32 0.5, %v5015_v38 }
 0x325   : > { %3431 = vst [vmem:[%s6178_s20 + $0x30] sm:$0xff] %v3399_v18  ;;  %v3397_v29 = vadd.f32 0.5, %v3365_v63 }
 0x326   : > { %v5017_v62 = vpop.eup %5016  ;;  %v3400_v2 = vadd.f32 0.5, %v3368_v15 }
 0x327   : > { %3429 = vst [vmem:[%s6178_s20 + $0x20] sm:$0xff] %v3397_v29  ;;  %v3366_v11 = vmul.f32 0.5, %v5017_v62 }
 0x328   : > { %3432 = vst [vmem:[%s6178_s20 + $0x38] sm:$0xff] %v3400_v2 }
 0x329   : > { %v3398_v0 = vadd.f32 0.5, %v3366_v11 }
 0x32b   : > { %3430 = vst [vmem:[%s6178_s20 + $0x28] sm:$0xff] %v3398_v0 }
 0x32c   : > { %5059 = shalt.err (!%p5056_p10)
}
 0x32d   : > { %s5060_s26 = scalar_lea.hbm %s6261_s23, 4096  ;;  %s5064_s7 = scalar_lea.hbm %s6311_s4, 8192 }
 0x32e   : > { %p5061_p0 = scmp.ne.s32.totalorder %s6261_s23, %s5060_s26  ;;  %p5065_p1 = scmp.lt.s32.totalorder %s6261_s23, %s6311_s4 }
 0x32f   : > { %p5066_p3 = scmp.lt.s32.totalorder %s5064_s7, %s5060_s26 }
 0x330   : > { %p5062_p2 = pnand %p5061_p0, %p6330_p12 }
 0x331   : > { %p5067_p6 = por %p5066_p3, %p5065_p1 }
 0x332   : > { %p5063_p9 = pneg %p5062_p2 }
 0x334   : > { %p5068_p11 = pnand %p5067_p6, %p5063_p9 }
 0x336   : > { %5071 = shalt.err (!%p5068_p11)
}
 0x337   : > { %s5116_s20 = smov 128   ;;  %s5117_s8 = smov 8  }
 0x338   : > { %4538 = dma.vmem_to_hbm [thread:$0]  (%p6330_p12), %s6263_s10, 4096, %s6261_s23, %s3458_s25, %s5116_s20, %s5116_s20, %s5117_s8  }
 0x339 PF: > { %s3486_s11 = sand.u32 1, %s5098_s15   ;;  %p6331_p13 = scmp.ne.s32.totalorder %s6317_s28, 0 }
 0x33a   : > { %p6332_p4 = scmp.ge.s32.totalorder %s5110_s18, 2  ;;  %s3487_s12 = scalar_lea.sflag [#allocation5], %s3486_s11 }
 0x33c   : > { %p4545_p5 = pnand %p6332_p4, %p6331_p13 }
 0x33e   : > { %p4546_p7 = pneg %p4545_p5 }
 0x340   : > { %5093 = dma.done.wait (%p4546_p7), %s3487_s12, 4096  }
 0x341   : > { %5095 = vsyncadd (%p4546_p7), %s3487_s12, 4294963200  ;;  %p17_p8 = scmp.ge.s32.totalorder %s5168_s21, 4   ;;  %s6333_s15 = smov %s5102_s16 }
 0x342   : > { %s6334_s16 = smov %s5106_s17  ;;  %s6335_s17 = smov %s5180_s24 }
 0x343   : > { %s6336_s18 = smov %s5168_s21  ;;  %19 = sbr.rel (!%p17_p8) target bundleno = 5 (0x5), region = 81 }
 0x348   :  { %3492 = vsyncpa [#allocation4], 1 }
 0x349   :  { %3494 = vsyncpa [#allocation4 + $0x1], 1 }
 0x34a   :  { %3495 = vsyncpa [#allocation5], 1 }
 0x34b   :  { %3497 = vsyncpa [#allocation5 + $0x1], 1 }

// kernel: tpu_custom_call.1
= control target key start
LH: loop header
LB: loop body
LE: loop exit
PB: predicated region body
PF: predicated region fallthrough
CT: control target
= control target key end

     0   :  { %9 = vsyncpa [#allocation4], 0  ;;  %s6307_s0 = inlined_call_operand.hbm [shape: bf16[2,64,256], index: 0, kind: input, shape index: {}]   ;;  %s6308_s1 = inlined_call_operand.vmem [shape: bf16[256,576], index: 1, kind: input, shape index: {}]   ;;  %s6309_s2 = inlined_call_operand.vmem [shape: bf16[256,1152], index: 2, kind: input, shape index: {}]   ;;  %s6310_s3 = inlined_call_operand.vmem [shape: f32[1,128], index: 3, kind: input, shape index: {}]   ;;  %s6311_s4 = inlined_call_operand.hbm [shape: f32[2,256,128], index: 4, kind: output, shape index: {}]  }
   0x1   :  { %11 = vsyncpa [#allocation4 + $0x1], 0 }
   0x2   :  { %12 = vsyncpa [#allocation5], 0 }
   0x3   :  { %14 = vsyncpa [#allocation5 + $0x1], 0  ;;  %s5143_s15 = smov 0   ;;  %s5145_s16 = smov 0  }
   0x4   :  { %s5147_s17 = smov 0   ;;  %s5149_s18 = smov 0  }
   0x5 LB: > { %s5164_s19 = sadd.s32 4294967295, %s5110_s18   ;;  %s3544_s20 = sadd.s32 4294967294, %s5110_s18   ;;  %s5110_s18 = sphi %s5149_s18, %s6336_s18   ;;  %s5106_s17 = sphi %s5147_s17, %s6335_s17   ;;  %s5102_s16 = sphi %s5145_s16, %s6334_s16   ;;  %s5098_s15 = sphi %s5143_s15, %s6333_s15  }
   0x6   : > { %s5168_s21 = sadd.s32 1, %s5110_s18   ;;  %s27_s22 = sadd.s32 1, %s5106_s17 }
   0x7   : > { %s24_s23 = ssub.s32 %s5110_s18, %s5168_s21  ;;  %p34_p0 = scmp.ne.s32.totalorder %s5106_s17, %s5102_s16 }
   0x8   : > { %p25_p1 = scmp.eq.s32.totalorder %s24_s23, 0  ;;  %p35_p2 = scmp.eq.s32.totalorder %s5110_s18, 0 }
   0x9   : > { %p40_p3 = scmp.ne.s32.totalorder %s5102_s16, %s5098_s15  ;;  %p41_p4 = scmp.eq.s32.totalorder %s5164_s19, 0 }
   0xa   : > { %s5180_s24 = scalar_select %p25_p1, %s5106_s17, %s27_s22  }
   0xb   : > { %p5182_p5 = por %p35_p2, %p34_p0  ;;  %p5186_p6 = por %p41_p4, %p40_p3 }
   0xc   : > { %p127_p7 = scmp.eq.s32.totalorder %s5164_s19, 1  ;;  %p133_p8 = scmp.eq.s32.totalorder %s3544_s20, 1 }
   0xd   : > { %s6315_s26 = scalar_select %p5186_p6, 1, 0 }
   0xe   : > { %p4548_p10 = scmp.lt.s32.totalorder %s5110_s18, 2  ;;  %p5193_p11 = por %p127_p7, %p34_p0 }
   0xf   : > { %p5197_p12 = por %p133_p8, %p40_p3  ;;  %s162_s29 = sand.u32 1, %s5106_s17  }
  0x10   : > { %s6316_s27 = scalar_select %p5193_p11, 1, 0 }
  0x11   : > { %s6317_s28 = scalar_select %p5197_p12, 1, 0 }
  0x12   : > { %s3915_s30 = sshll.u32 %s5110_s18, 10  ;;  %s3547_s5 = sshll.u32 %s162_s29, 6 }
  0x13   : > { %s5206_s8 = scalar_lea.hbm %s6307_s0, %s3915_s30  ;;  %s166_s9 = scalar_lea.vmem [#allocation3], %s3547_s5 }
  0x14   : > { %s173_s10 = sshll.u32 %s166_s9, 4  ;;  %p5210_p13 = pnand %p4548_p10, %p5182_p5  ;;  %s5214_s10 = int_to_ptr.vmem [resolvable:$true] %s173_s10 }
  0x15   : > { %s5216_s12 = scalar_lea.sflag [#allocation4], %s162_s29  ;;  %s5018_s13 = scalar_lea.hbm %s5206_s8, 1024 }
  0x16   : > { %p5019_p0 = scmp.ne.s32.totalorder %s5206_s8, %s5018_s13  ;;  %p5020_p1 = pneg %p5210_p13 }
  0x17   : > { %s5023_s22 = scalar_lea.hbm %s6307_s0, 2048  ;;  %p5024_p4 = scmp.lt.s32.totalorder %s5206_s8, %s6307_s0 }
  0x18   : > { %p5021_p2 = pnand %p5020_p1, %p5019_p0  ;;  %p5025_p5 = scmp.lt.s32.totalorder %s5023_s22, %s5018_s13 }
  0x1a   : > { %p5022_p3 = pneg %p5021_p2  ;;  %p5026_p7 = por %p5025_p5, %p5024_p4 }
  0x1c   : > { %p5027_p8 = pnand %p5026_p7, %p5022_p3 }
  0x1e   : > { %5030 = shalt.err (!%p5027_p8)
}
  0x1f   : > { %s5031_s29 = scalar_lea.vmem %s5214_s10, 1024  ;;  %s5112_s30 = smov [#allocation3]  }
  0x20   : > { %p5032_p10 = scmp.ne.s32.totalorder %s5214_s10, %s5031_s29  ;;  %s5036_s5 = sshll.u32 %s5112_s30, 4  ;;  %s5037_s5 = int_to_ptr.vmem [resolvable:$false] %s5036_s5 }
  0x21   : > { %s5038_s6 = scalar_lea.vmem %s5037_s5, 2048  ;;  %p5039_p2 = scmp.lt.s32.totalorder %s5214_s10, %s5037_s5 }
  0x22   : > { %p5034_p9 = pnand %p5032_p10, %p5020_p1  ;;  %p5040_p12 = scmp.lt.s32.totalorder %s5038_s6, %s5031_s29 }
  0x24   : > { %p5035_p0 = pneg %p5034_p9  ;;  %p5041_p11 = por %p5040_p12, %p5039_p2 }
  0x26   : > { %p5042_p6 = pnand %p5041_p11, %p5035_p0 }
  0x28   : > { %5045 = shalt.err (!%p5042_p6)
}
  0x29   : > { %s5113_s7 = smov 128   ;;  %s5114_s9 = smov 8  }
  0x2a   : > { %4543 = dma.hbm_to_vmem [thread:$0]  (!%p5210_p13), %s5206_s8, 1024, %s5214_s10, %s5216_s12, %s5113_s7, %s5113_s7, %s5114_s9  }
  0x2b   : > { %p3550_p9 = scmp.ge.s32.totalorder %s5110_s18, 1  ;;  %p181_p1 = scmp.lt.s32.totalorder %s5110_s18, 3 }
  0x2d   : > { %p182_p3 = pnand %p3550_p9, %p181_p1 }
  0x2f   : > { %185 = sbr.rel (%p182_p3) target bundleno = 825 (0x339), region = 36 }
  0x34   : > { %s5240_s13 = sand.u32 1, %s5102_s16   ;;  %p6319_p6 = scmp.ne.s32.totalorder %s6315_s26, 0 }
  0x35   : > { %s3551_s14 = sshll.u32 %s5240_s13, 6  ;;  %s188_s20 = scalar_lea.sflag [#allocation4], %s5240_s13 }
  0x36   : > { %s5244_s22 = scalar_lea.vmem [#allocation3], %s3551_s14 }
  0x37   : > { %5089 = dma.done.wait (%p6319_p6), %s188_s20, 1024  }
  0x38   : > { %5091 = vsyncadd (%p6319_p6), %s188_s20, 4294966272  ;;  %v4586_v0 = vld [vmem:[%s6309_s2 + $0x1fc] ss:$36 sps:$4 sm:$0xff]   ;;  %v4588_v1 = vld [vmem:[%s6309_s2 + $0x204] ss:$36 sps:$4 sm:$0xff]   ;;  %vm2669_vm0 = vcmask 523264  }
  0x39   : > { %1161 = vmatprep.subr.bf16.mxu0 %v4586_v0  ;;  %v4590_v2 = vld [vmem:[%s6309_s2 + $0x1f8] ss:$36 sps:$4 sm:$0xff]   ;;  %v4591_v3 = vld [vmem:[%s6309_s2 + $0x200] ss:$36 sps:$4 sm:$0xff]   ;;  %1234 = vmatprep.subr.bf16.mxu1 %v4588_v1  ;;  %v4596_v6 = vld [vmem:[%s6309_s2 + $0x1b0] ss:$36 sps:$4 sm:$0xff]  }
  0x3a   : > { %v4592_v4 = vld [vmem:[%s6309_s2 + $0x1b4] ss:$36 sps:$4 sm:$0xff]   ;;  %1162 = vmatpush1.bf16.msra.mxu0 %v4590_v2  ;;  %1235 = vmatpush1.bf16.msra.mxu1 %v4591_v3  ;;  %v4594_v5 = vld [vmem:[%s6309_s2 + $0x1bc] ss:$36 sps:$4 sm:$0xff]   ;;  %v4598_v8 = vld [vmem:[%s6309_s2 + $0x16c] ss:$36 sps:$4 sm:$0xff]  }
  0x3b   : > { %1163 = vmatprep.subr.bf16.mxu0 %v4592_v4  ;;  %v4597_v7 = vld [vmem:[%s6309_s2 + $0x1b8] ss:$36 sps:$4 sm:$0xff]   ;;  %1236 = vmatprep.subr.bf16.mxu1 %v4594_v5  ;;  %v4602_v10 = vld [vmem:[%s6309_s2 + $0x168] ss:$36 sps:$4 sm:$0xff]   ;;  %v4603_v11 = vld [vmem:[%s6309_s2 + $0x170] ss:$36 sps:$4 sm:$0xff]  }
  0x3c   : > { %v4600_v9 = vld [vmem:[%s6309_s2 + $0x174] ss:$36 sps:$4 sm:$0xff]   ;;  %v4604_v12 = vld [vmem:[%s6309_s2 + $0x124] ss:$36 sps:$4 sm:$0xff]   ;;  %v4606_v13 = vld [vmem:[%s6309_s2 + $0x12c] ss:$36 sps:$4 sm:$0xff]  }
  0x3d   : > { %v4608_v14 = vld [vmem:[%s6309_s2 + $0x120] ss:$36 sps:$4 sm:$0xff]   ;;  %v4609_v15 = vld [vmem:[%s6309_s2 + $0x128] ss:$36 sps:$4 sm:$0xff]   ;;  %v4614_v18 = vld [vmem:[%s6309_s2 + $0xd8] ss:$36 sps:$4 sm:$0xff]  }
  0x3e   : > { %1164 = vmatpush1.bf16.msra.mxu0 %v4596_v6  ;;  %1237 = vmatpush1.bf16.msra.mxu1 %v4597_v7  ;;  %v4610_v16 = vld [vmem:[%s6309_s2 + $0xdc] ss:$36 sps:$4 sm:$0xff]   ;;  %v4612_v17 = vld [vmem:[%s6309_s2 + $0xe4] ss:$36 sps:$4 sm:$0xff]   ;;  %v4616_v20 = vld [vmem:[%s6309_s2 + $0x94] ss:$36 sps:$4 sm:$0xff]  }
  0x3f   : > { %1165 = vmatprep.subr.bf16.mxu0 %v4598_v8  ;;  %1238 = vmatprep.subr.bf16.mxu1 %v4600_v9  ;;  %v4615_v19 = vld [vmem:[%s6309_s2 + $0xe0] ss:$36 sps:$4 sm:$0xff]   ;;  %v4620_v22 = vld [vmem:[%s6309_s2 + $0x90] ss:$36 sps:$4 sm:$0xff]   ;;  %v4621_v23 = vld [vmem:[%s6309_s2 + $0x98] ss:$36 sps:$4 sm:$0xff]  }
  0x40   : > { %v4618_v21 = vld [vmem:[%s6309_s2 + $0x9c] ss:$36 sps:$4 sm:$0xff]   ;;  %v4622_v24 = vld [vmem:[%s6309_s2 + $0x4c] ss:$36 sps:$4 sm:$0xff]   ;;  %v4624_v25 = vld [vmem:[%s6309_s2 + $0x54] ss:$36 sps:$4 sm:$0xff]  }
  0x41   : > { %v4626_v26 = vld [vmem:[%s6309_s2 + $0x48] ss:$36 sps:$4 sm:$0xff]   ;;  %v4627_v27 = vld [vmem:[%s6309_s2 + $0x50] ss:$36 sps:$4 sm:$0xff]   ;;  %v4632_v30 = vld [vmem:[%s6309_s2] ss:$36 sps:$4 sm:$0xff]  }
  0x42   : > { %1166 = vmatpush1.bf16.msra.mxu0 %v4602_v10  ;;  %1239 = vmatpush1.bf16.msra.mxu1 %v4603_v11  ;;  %v4628_v28 = vld [vmem:[%s6309_s2 + $0x4] ss:$36 sps:$4 sm:$0xff]   ;;  %v4630_v29 = vld [vmem:[%s6309_s2 + $0xc] ss:$36 sps:$4 sm:$0xff]   ;;  %v4634_v32 = vld [vmem:[%s6309_s2 + $0x43c] ss:$36 sps:$4 sm:$0xff]  }
  0x43   : > { %1167 = vmatprep.subr.bf16.mxu0 %v4604_v12  ;;  %1240 = vmatprep.subr.bf16.mxu1 %v4606_v13  ;;  %v4633_v31 = vld [vmem:[%s6309_s2 + $0x8] ss:$36 sps:$4 sm:$0xff]   ;;  %v4638_v34 = vld [vmem:[%s6309_s2 + $0x438] ss:$36 sps:$4 sm:$0xff]   ;;  %v4639_v35 = vld [vmem:[%s6309_s2 + $0x440] ss:$36 sps:$4 sm:$0xff]  }
  0x44   : > { %v4636_v33 = vld [vmem:[%s6309_s2 + $0x444] ss:$36 sps:$4 sm:$0xff]   ;;  %v4640_v36 = vld [vmem:[%s6309_s2 + $0x3f4] ss:$36 sps:$4 sm:$0xff]   ;;  %v4642_v37 = vld [vmem:[%s6309_s2 + $0x3fc] ss:$36 sps:$4 sm:$0xff]  }
  0x45   : > { %v4644_v38 = vld [vmem:[%s6309_s2 + $0x3f0] ss:$36 sps:$4 sm:$0xff]   ;;  %v4645_v39 = vld [vmem:[%s6309_s2 + $0x3f8] ss:$36 sps:$4 sm:$0xff]   ;;  %v4650_v42 = vld [vmem:[%s6309_s2 + $0x3a8] ss:$36 sps:$4 sm:$0xff]  }
  0x46   : > { %1168 = vmatpush1.bf16.msra.mxu0 %v4608_v14  ;;  %1241 = vmatpush1.bf16.msra.mxu1 %v4609_v15  ;;  %v4646_v40 = vld [vmem:[%s6309_s2 + $0x3ac] ss:$36 sps:$4 sm:$0xff]   ;;  %v4648_v41 = vld [vmem:[%s6309_s2 + $0x3b4] ss:$36 sps:$4 sm:$0xff]   ;;  %v4652_v44 = vld [vmem:[%s6309_s2 + $0x364] ss:$36 sps:$4 sm:$0xff]  }
  0x47   : > { %1169 = vmatprep.subr.bf16.mxu0 %v4610_v16  ;;  %1242 = vmatprep.subr.bf16.mxu1 %v4612_v17  ;;  %v4651_v43 = vld [vmem:[%s6309_s2 + $0x3b0] ss:$36 sps:$4 sm:$0xff]   ;;  %v4656_v46 = vld [vmem:[%s6309_s2 + $0x360] ss:$36 sps:$4 sm:$0xff]   ;;  %v4657_v47 = vld [vmem:[%s6309_s2 + $0x368] ss:$36 sps:$4 sm:$0xff]  }
  0x48   : > { %v4654_v45 = vld [vmem:[%s6309_s2 + $0x36c] ss:$36 sps:$4 sm:$0xff]   ;;  %v4658_v49 = vld [vmem:[%s6309_s2 + $0x31c] ss:$36 sps:$4 sm:$0xff]   ;;  %v4660_v50 = vld [vmem:[%s6309_s2 + $0x324] ss:$36 sps:$4 sm:$0xff]  }
  0x49   : > { %v5395_v48 = vld [vmem:[%s5244_s22 + $0x4] ss:$8 sps:$4 sm:$0xff]   ;;  %v4662_v51 = vld [vmem:[%s6309_s2 + $0x318] ss:$36 sps:$4 sm:$0xff]   ;;  %v4668_v55 = vld [vmem:[%s6309_s2 + $0x2d0] ss:$36 sps:$4 sm:$0xff]  }
  0x4a   : > { %1170 = vmatpush1.bf16.msra.mxu0 %v4614_v18  ;;  %1243 = vmatpush1.bf16.msra.mxu1 %v4615_v19  ;;  %v4663_v52 = vld [vmem:[%s6309_s2 + $0x320] ss:$36 sps:$4 sm:$0xff]   ;;  %v4664_v53 = vld [vmem:[%s6309_s2 + $0x2d4] ss:$36 sps:$4 sm:$0xff]   ;;  %v4670_v57 = vld [vmem:[%s6309_s2 + $0x28c] ss:$36 sps:$4 sm:$0xff]  }
  0x4b   : > { %1171 = vmatprep.subr.bf16.mxu0 %v4616_v20  ;;  %1244 = vmatprep.subr.bf16.mxu1 %v4618_v21  ;;  %v4666_v54 = vld [vmem:[%s6309_s2 + $0x2dc] ss:$36 sps:$4 sm:$0xff]   ;;  %v4672_v58 = vld [vmem:[%s6309_s2 + $0x294] ss:$36 sps:$4 sm:$0xff]   ;;  %v4674_v59 = vld [vmem:[%s6309_s2 + $0x288] ss:$36 sps:$4 sm:$0xff]  }
  0x4c   : > { %1193 = vmatprep.mubr.bf16.mxu0 %v5395_v48  ;;  %1266 = vmatprep.mubr.bf16.mxu1 %v5395_v48  ;;  %v4669_v56 = vld [vmem:[%s6309_s2 + $0x2d8] ss:$36 sps:$4 sm:$0xff]   ;;  %v4675_v60 = vld [vmem:[%s6309_s2 + $0x290] ss:$36 sps:$4 sm:$0xff]   ;;  %v4676_v61 = vld [vmem:[%s6309_s2 + $0x244] ss:$36 sps:$4 sm:$0xff]  }
  0x4d   : > { %v4678_v62 = vld [vmem:[%s6309_s2 + $0x24c] ss:$36 sps:$4 sm:$0xff]   ;;  %v4680_v63 = vld [vmem:[%s6309_s2 + $0x240] ss:$36 sps:$4 sm:$0xff]   ;;  %v4690_v2 = vld [vmem:[%s6309_s2 + $0x214] ss:$36 sps:$4 sm:$0xff]  }
  0x4e   : > { %1172 = vmatpush1.bf16.msra.mxu0 %v4620_v22  ;;  %1245 = vmatpush1.bf16.msra.mxu1 %v4621_v23  ;;  %v4681_v0 = vld [vmem:[%s6309_s2 + $0x248] ss:$36 sps:$4 sm:$0xff]   ;;  %v4688_v5 = vld [vmem:[%s6309_s2 + $0x210] ss:$36 sps:$4 sm:$0xff]   ;;  %v4691_v9 = vld [vmem:[%s6309_s2 + $0x1c0] ss:$36 sps:$4 sm:$0xff]  }
  0x4f   : > { %1173 = vmatprep.subr.bf16.mxu0 %v4622_v24  ;;  %1246 = vmatprep.subr.bf16.mxu1 %v4624_v25  ;;  %v4687_v1 = vld [vmem:[%s6309_s2 + $0x20c] ss:$36 sps:$4 sm:$0xff]   ;;  %v5454_v3 = vld [vmem:[%s5244_s22] ss:$8 sps:$4 sm:$0xff]   ;;  %v5469_v8 = vld [vmem:[%s5244_s22 + $0x14] ss:$8 sps:$4 sm:$0xff]  }
  0x50   : > { %v4685_v4 = vld [vmem:[%s6309_s2 + $0x208] ss:$36 sps:$4 sm:$0xff]   ;;  %v4702_v11 = vld [vmem:[%s6309_s2 + $0x17c] ss:$36 sps:$4 sm:$0xff]   ;;  %v5488_v13 = vld [vmem:[%s5244_s22 + $0x10] ss:$8 sps:$4 sm:$0xff]  }
  0x51   : > { %v4693_v6 = vld [vmem:[%s6309_s2 + $0x1c4] ss:$36 sps:$4 sm:$0xff]   ;;  %v4696_v7 = vld [vmem:[%s6309_s2 + $0x1cc] ss:$36 sps:$4 sm:$0xff]   ;;  %v4700_v14 = vld [vmem:[%s6309_s2 + $0x178] ss:$36 sps:$4 sm:$0xff]  }
  0x52   : > { %1174 = vmatpush1.bf16.msra.mxu0 %v4626_v26  ;;  %1247 = vmatpush1.bf16.msra.mxu1 %v4627_v27  ;;  %v4694_v10 = vld [vmem:[%s6309_s2 + $0x1c8] ss:$36 sps:$4 sm:$0xff]   ;;  %v4703_v15 = vld [vmem:[%s6309_s2 + $0x180] ss:$36 sps:$4 sm:$0xff]   ;;  %v4708_v16 = vld [vmem:[%s6309_s2 + $0x134] ss:$36 sps:$4 sm:$0xff]  }
  0x53   : > { %1175 = vmatprep.subr.bf16.mxu0 %v4628_v28  ;;  %1248 = vmatprep.subr.bf16.mxu1 %v4630_v29  ;;  %v4705_v12 = vld [vmem:[%s6309_s2 + $0x184] ss:$36 sps:$4 sm:$0xff]   ;;  %v4711_v17 = vld [vmem:[%s6309_s2 + $0x13c] ss:$36 sps:$4 sm:$0xff]   ;;  %v4706_v19 = vld [vmem:[%s6309_s2 + $0x130] ss:$36 sps:$4 sm:$0xff]  }
  0x54   : > { %v5503_v18 = vld [vmem:[%s5244_s22 + $0x24] ss:$8 sps:$4 sm:$0xff]   ;;  %v4709_v20 = vld [vmem:[%s6309_s2 + $0x138] ss:$36 sps:$4 sm:$0xff]   ;;  %v5522_v23 = vld [vmem:[%s5244_s22 + $0x20] ss:$8 sps:$4 sm:$0xff]  }
  0x55   : > { %v4717_v21 = vld [vmem:[%s6309_s2 + $0xec] ss:$36 sps:$4 sm:$0xff]   ;;  %v4720_v22 = vld [vmem:[%s6309_s2 + $0xf4] ss:$36 sps:$4 sm:$0xff]   ;;  %v4723_v26 = vld [vmem:[%s6309_s2 + $0xa4] ss:$36 sps:$4 sm:$0xff]  }
  0x56   : > { %1176 = vmatpush1.bf16.msra.mxu0 %v4632_v30  ;;  %1249 = vmatpush1.bf16.msra.mxu1 %v4633_v31  ;;  %v4715_v24 = vld [vmem:[%s6309_s2 + $0xe8] ss:$36 sps:$4 sm:$0xff]   ;;  %v4718_v25 = vld [vmem:[%s6309_s2 + $0xf0] ss:$36 sps:$4 sm:$0xff]   ;;  %v4721_v29 = vld [vmem:[%s6309_s2 + $0xa0] ss:$36 sps:$4 sm:$0xff]  }
  0x57   : > { %1177 = vmatprep.subr.bf16.mxu0 %v4634_v32  ;;  %1250 = vmatprep.subr.bf16.mxu1 %v4636_v33  ;;  %v4726_v27 = vld [vmem:[%s6309_s2 + $0xac] ss:$36 sps:$4 sm:$0xff]   ;;  %v5537_v28 = vld [vmem:[%s5244_s22 + $0x34] ss:$8 sps:$4 sm:$0xff]   ;;  %v4735_v32 = vld [vmem:[%s6309_s2 + $0x64] ss:$36 sps:$4 sm:$0xff]  }
  0x58   : > { %v4724_v30 = vld [vmem:[%s6309_s2 + $0xa8] ss:$36 sps:$4 sm:$0xff]   ;;  %v4732_v31 = vld [vmem:[%s6309_s2 + $0x5c] ss:$36 sps:$4 sm:$0xff]   ;;  %v5556_v33 = vld [vmem:[%s5244_s22 + $0x30] ss:$8 sps:$4 sm:$0xff]  }
  0x59   : > { %s3552_s14 = sshll.u32 %s5240_s13, 8  ;;  %s3988_s8 = sshll.u32 %s5164_s19, 12 }
  0x5a   : > { %1178 = vmatpush2.bf16.msra.mxu0 %v4638_v34  ;;  %1251 = vmatpush2.bf16.msra.mxu1 %v4639_v35  ;;  %v4730_v34 = vld [vmem:[%s6309_s2 + $0x58] ss:$36 sps:$4 sm:$0xff]   ;;  %v4733_v35 = vld [vmem:[%s6309_s2 + $0x60] ss:$36 sps:$4 sm:$0xff]   ;;  %s6178_s20 = scalar_lea.vmem [#allocation6], %s3552_s14  ;;  %s6261_s23 = scalar_lea.hbm %s6311_s4, %s3988_s8 }
  0x5b   : > { %1179 = vmatprep.subr.bf16.mxu0 %v4640_v36  ;;  %1252 = vmatprep.subr.bf16.mxu1 %v4642_v37  ;;  %v4738_v36 = vld [vmem:[%s6309_s2 + $0x14] ss:$36 sps:$4 sm:$0xff]   ;;  %v4741_v37 = vld [vmem:[%s6309_s2 + $0x1c] ss:$36 sps:$4 sm:$0xff]   ;;  %s3471_s10 = sshll.u32 %s6178_s20, 4  ;;  %s3458_s25 = scalar_lea.sflag [#allocation5], %s5240_s13  ;;  %s6263_s10 = int_to_ptr.vmem [resolvable:$true] %s3471_s10 }
  0x5c   : > { %s5046_s19 = scalar_lea.vmem %s6263_s10, 4096  ;;  %p6330_p12 = scmp.ne.s32.totalorder %s6316_s27, 0 }
  0x5d   : > { %p5047_p11 = scmp.ne.s32.totalorder %s6263_s10, %s5046_s19  ;;  %s5115_s29 = smov [#allocation6]  }
  0x5e   : > { %1180 = vmatpush2.bf16.msra.mxu0 %v4644_v38  ;;  %1253 = vmatpush2.bf16.msra.mxu1 %v4645_v39  ;;  %v4736_v38 = vld [vmem:[%s6309_s2 + $0x10] ss:$36 sps:$4 sm:$0xff]   ;;  %v4739_v39 = vld [vmem:[%s6309_s2 + $0x18] ss:$36 sps:$4 sm:$0xff]   ;;  %s5050_s30 = sshll.u32 %s5115_s29, 4  ;;  %s5051_s30 = int_to_ptr.vmem [resolvable:$false] %s5050_s30 }
  0x5f   : > { %1181 = vmatprep.subr.bf16.mxu0 %v4646_v40  ;;  %1254 = vmatprep.subr.bf16.mxu1 %v4648_v41  ;;  %v4744_v40 = vld [vmem:[%s6309_s2 + $0x44c] ss:$36 sps:$4 sm:$0xff]   ;;  %v4747_v41 = vld [vmem:[%s6309_s2 + $0x454] ss:$36 sps:$4 sm:$0xff]   ;;  %p5048_p13 = pnand %p5047_p11, %p6330_p12  ;;  %s5052_s22 = scalar_lea.vmem %s5051_s30, 8192 }
  0x60   : > { %p5053_p5 = scmp.lt.s32.totalorder %s6263_s10, %s5051_s30  ;;  %p5054_p7 = scmp.lt.s32.totalorder %s5052_s22, %s5046_s19 }
  0x61   : > { %p5049_p4 = pneg %p5048_p13 }
  0x62   : > { %1182 = vmatpush2.bf16.msra.mxu0 %v4650_v42  ;;  %1255 = vmatpush2.bf16.msra.mxu1 %v4651_v43  ;;  %v4742_v42 = vld [vmem:[%s6309_s2 + $0x448] ss:$36 sps:$4 sm:$0xff]   ;;  %v4745_v43 = vld [vmem:[%s6309_s2 + $0x450] ss:$36 sps:$4 sm:$0xff]   ;;  %p5055_p8 = por %p5054_p7, %p5053_p5 }
  0x63   : > { %1183 = vmatprep.subr.bf16.mxu0 %v4652_v44  ;;  %1256 = vmatprep.subr.bf16.mxu1 %v4654_v45  ;;  %v4750_v44 = vld [vmem:[%s6309_s2 + $0x404] ss:$36 sps:$4 sm:$0xff]   ;;  %v4753_v45 = vld [vmem:[%s6309_s2 + $0x40c] ss:$36 sps:$4 sm:$0xff]  }
  0x64   : > { %p5056_p10 = pnand %p5055_p8, %p5049_p4 }
  0x66   : > { %1184 = vmatpush2.bf16.msra.mxu0 %v4656_v46  ;;  %1257 = vmatpush2.bf16.msra.mxu1 %v4657_v47  ;;  %v4748_v46 = vld [vmem:[%s6309_s2 + $0x400] ss:$36 sps:$4 sm:$0xff]   ;;  %v4751_v47 = vld [vmem:[%s6309_s2 + $0x408] ss:$36 sps:$4 sm:$0xff]  }
  0x67   : > { %1185 = vmatprep.subr.bf16.mxu0 %v4658_v49  ;;  %1258 = vmatprep.subr.bf16.mxu1 %v4660_v50  ;;  %v4756_v49 = vld [vmem:[%s6309_s2 + $0x3bc] ss:$36 sps:$4 sm:$0xff]   ;;  %v4759_v50 = vld [vmem:[%s6309_s2 + $0x3c4] ss:$36 sps:$4 sm:$0xff]  }
  0x6a   : > { %1186 = vmatpush2.bf16.msra.mxu0 %v4662_v51  ;;  %1259 = vmatpush2.bf16.msra.mxu1 %v4663_v52  ;;  %v4754_v51 = vld [vmem:[%s6309_s2 + $0x3b8] ss:$36 sps:$4 sm:$0xff]   ;;  %v4757_v52 = vld [vmem:[%s6309_s2 + $0x3c0] ss:$36 sps:$4 sm:$0xff]  }
  0x6b   : > { %1187 = vmatprep.subr.bf16.mxu0 %v4664_v53  ;;  %1260 = vmatprep.subr.bf16.mxu1 %v4666_v54  ;;  %v4762_v53 = vld [vmem:[%s6309_s2 + $0x374] ss:$36 sps:$4 sm:$0xff]   ;;  %v4765_v54 = vld [vmem:[%s6309_s2 + $0x37c] ss:$36 sps:$4 sm:$0xff]  }
  0x6e   : > { %1188 = vmatpush2.bf16.msra.mxu0 %v4668_v55  ;;  %1261 = vmatpush2.bf16.msra.mxu1 %v4669_v56  ;;  %v4760_v55 = vld [vmem:[%s6309_s2 + $0x370] ss:$36 sps:$4 sm:$0xff]   ;;  %v4763_v56 = vld [vmem:[%s6309_s2 + $0x378] ss:$36 sps:$4 sm:$0xff]  }
  0x6f   : > { %1189 = vmatprep.subr.bf16.mxu0 %v4670_v57  ;;  %1262 = vmatprep.subr.bf16.mxu1 %v4672_v58  ;;  %v4768_v57 = vld [vmem:[%s6309_s2 + $0x32c] ss:$36 sps:$4 sm:$0xff]   ;;  %v4771_v58 = vld [vmem:[%s6309_s2 + $0x334] ss:$36 sps:$4 sm:$0xff]  }
  0x72   : > { %1190 = vmatpush2.bf16.msra.mxu0 %v4674_v59  ;;  %1263 = vmatpush2.bf16.msra.mxu1 %v4675_v60  ;;  %v4766_v59 = vld [vmem:[%s6309_s2 + $0x328] ss:$36 sps:$4 sm:$0xff]   ;;  %v4769_v60 = vld [vmem:[%s6309_s2 + $0x330] ss:$36 sps:$4 sm:$0xff]  }
  0x73   : > { %1191 = vmatprep.subr.bf16.mxu0 %v4676_v61  ;;  %1264 = vmatprep.subr.bf16.mxu1 %v4678_v62  ;;  %v4774_v61 = vld [vmem:[%s6309_s2 + $0x2e4] ss:$36 sps:$4 sm:$0xff]   ;;  %v4777_v62 = vld [vmem:[%s6309_s2 + $0x2ec] ss:$36 sps:$4 sm:$0xff]  }
  0x76   : > { %1192 = vmatpush2.bf16.msra.mxu0 %v4680_v63  ;;  %1265 = vmatpush2.bf16.msra.mxu1 %v4681_v0  ;;  %v4772_v63 = vld [vmem:[%s6309_s2 + $0x2e0] ss:$36 sps:$4 sm:$0xff]   ;;  %v4775_v0 = vld [vmem:[%s6309_s2 + $0x2e8] ss:$36 sps:$4 sm:$0xff]  }
  0x77   : > { %1307 = vmatprep.subr.bf16.mxu0 %v4687_v1  ;;  %1380 = vmatprep.subr.bf16.mxu1 %v4690_v2  ;;  %v4780_v1 = vld [vmem:[%s6309_s2 + $0x29c] ss:$36 sps:$4 sm:$0xff]   ;;  %v4783_v2 = vld [vmem:[%s6309_s2 + $0x2a4] ss:$36 sps:$4 sm:$0xff]  }
  0x79   : > { %1194 = vmatmul.mubr.bf16.vlgmr.msra.gmra.mxu0 %v5454_v3  ;;  %1267 = vmatmul.mubr.bf16.vlgmr.msra.gmra.mxu1 %v5454_v3 }
  0x7a   : > { %1308 = vmatpush1.bf16.msra.mxu0 %v4685_v4  ;;  %1381 = vmatpush1.bf16.msra.mxu1 %v4688_v5  ;;  %v4778_v4 = vld [vmem:[%s6309_s2 + $0x298] ss:$36 sps:$4 sm:$0xff]   ;;  %v4781_v5 = vld [vmem:[%s6309_s2 + $0x2a0] ss:$36 sps:$4 sm:$0xff]  }
  0x7b   : > { %1309 = vmatprep.subr.bf16.mxu0 %v4693_v6  ;;  %1382 = vmatprep.subr.bf16.mxu1 %v4696_v7  ;;  %v4786_v6 = vld [vmem:[%s6309_s2 + $0x254] ss:$36 sps:$4 sm:$0xff]   ;;  %v4789_v7 = vld [vmem:[%s6309_s2 + $0x25c] ss:$36 sps:$4 sm:$0xff]  }
  0x7c   : > { %1276 = vmatprep.mubr.bf16.mxu1 %v5469_v8  ;;  %1203 = vmatprep.mubr.bf16.mxu0 %v5469_v8 }
  0x7e   : > { %1310 = vmatpush1.bf16.msra.mxu0 %v4691_v9  ;;  %1383 = vmatpush1.bf16.msra.mxu1 %v4694_v10  ;;  %v4784_v9 = vld [vmem:[%s6309_s2 + $0x250] ss:$36 sps:$4 sm:$0xff]   ;;  %v4787_v10 = vld [vmem:[%s6309_s2 + $0x258] ss:$36 sps:$4 sm:$0xff]  }
  0x7f   : > { %1311 = vmatprep.subr.bf16.mxu0 %v4702_v11  ;;  %1384 = vmatprep.subr.bf16.mxu1 %v4705_v12  ;;  %v4790_v11 = vld [vmem:[%s6309_s2 + $0x458] ss:$36 sps:$4 sm:$0xff]  }
  0x80   : > { %v4791_v12 = vld [vmem:[%s6309_s2 + $0x218] ss:$36 sps:$4 sm:$0xff]  }
  0x81   : > { %1277 = vmatmul.mubr.bf16.gmra.mxu1 %v5488_v13  ;;  %1204 = vmatmul.mubr.bf16.gmra.mxu0 %v5488_v13 }
  0x82   : > { %1312 = vmatpush1.bf16.msra.mxu0 %v4700_v14  ;;  %1385 = vmatpush1.bf16.msra.mxu1 %v4703_v15  ;;  %v4792_v14 = vld [vmem:[%s6309_s2 + $0x410] ss:$36 sps:$4 sm:$0xff]  }
  0x83   : > { %1313 = vmatprep.subr.bf16.mxu0 %v4708_v16  ;;  %1386 = vmatprep.subr.bf16.mxu1 %v4711_v17  ;;  %v4793_v15 = vld [vmem:[%s6309_s2 + $0x1d0] ss:$36 sps:$4 sm:$0xff]   ;;  %v4794_v16 = vld [vmem:[%s6309_s2 + $0x3c8] ss:$36 sps:$4 sm:$0xff]  }
  0x84   : > { %1286 = vmatprep.mubr.bf16.mxu1 %v5503_v18  ;;  %1213 = vmatprep.mubr.bf16.mxu0 %v5503_v18  ;;  %v4795_v17 = vld [vmem:[%s6309_s2 + $0x188] ss:$36 sps:$4 sm:$0xff]  }
  0x86   : > { %1314 = vmatpush1.bf16.msra.mxu0 %v4706_v19  ;;  %1387 = vmatpush1.bf16.msra.mxu1 %v4709_v20  ;;  %v4796_v19 = vld [vmem:[%s6309_s2 + $0x380] ss:$36 sps:$4 sm:$0xff]  }
  0x87   : > { %1315 = vmatprep.subr.bf16.mxu0 %v4717_v21  ;;  %1388 = vmatprep.subr.bf16.mxu1 %v4720_v22  ;;  %v4797_v20 = vld [vmem:[%s6309_s2 + $0x140] ss:$36 sps:$4 sm:$0xff]   ;;  %v4798_v21 = vld [vmem:[%s6309_s2 + $0x338] ss:$36 sps:$4 sm:$0xff]  }
  0x88   : > { %v4799_v22 = vld [vmem:[%s6309_s2 + $0xf8] ss:$36 sps:$4 sm:$0xff]  }
  0x89   : > { %1287 = vmatmul.mubr.bf16.gmra.mxu1 %v5522_v23  ;;  %1214 = vmatmul.mubr.bf16.gmra.mxu0 %v5522_v23 }
  0x8a   : > { %1316 = vmatpush1.bf16.msra.mxu0 %v4715_v24  ;;  %1389 = vmatpush1.bf16.msra.mxu1 %v4718_v25  ;;  %v4800_v24 = vld [vmem:[%s6309_s2 + $0x2f0] ss:$36 sps:$4 sm:$0xff]  }
  0x8b   : > { %1317 = vmatprep.subr.bf16.mxu0 %v4723_v26  ;;  %1390 = vmatprep.subr.bf16.mxu1 %v4726_v27  ;;  %v4801_v25 = vld [vmem:[%s6309_s2 + $0xb0] ss:$36 sps:$4 sm:$0xff]   ;;  %v4802_v26 = vld [vmem:[%s6309_s2 + $0x2a8] ss:$36 sps:$4 sm:$0xff]  }
  0x8c   : > { %1296 = vmatprep.mubr.bf16.mxu1 %v5537_v28  ;;  %1223 = vmatprep.mubr.bf16.mxu0 %v5537_v28  ;;  %v4803_v27 = vld [vmem:[%s6309_s2 + $0x68] ss:$36 sps:$4 sm:$0xff]  }
  0x8e   : > { %1318 = vmatpush1.bf16.msra.mxu0 %v4721_v29  ;;  %1391 = vmatpush1.bf16.msra.mxu1 %v4724_v30  ;;  %v4804_v29 = vld [vmem:[%s6309_s2 + $0x260] ss:$36 sps:$4 sm:$0xff]  }
  0x8f   : > { %1319 = vmatprep.subr.bf16.mxu0 %v4732_v31  ;;  %1392 = vmatprep.subr.bf16.mxu1 %v4735_v32  ;;  %v4805_v30 = vld [vmem:[%s6309_s2 + $0x20] ss:$36 sps:$4 sm:$0xff]  }
  0x91   : > { %1297 = vmatmul.mubr.bf16.gmra.mxu1 %v5556_v33  ;;  %1224 = vmatmul.mubr.bf16.gmra.mxu0 %v5556_v33 }
  0x92   : > { %1320 = vmatpush1.bf16.msra.mxu0 %v4730_v34  ;;  %1393 = vmatpush1.bf16.msra.mxu1 %v4733_v35 }
  0x93   : > { %1321 = vmatprep.subr.bf16.mxu0 %v4738_v36  ;;  %1394 = vmatprep.subr.bf16.mxu1 %v4741_v37 }
  0x94   : > { %1339 = vmatprep.mubr.bf16.mxu0 %v5395_v48  ;;  %1412 = vmatprep.mubr.bf16.mxu1 %v5395_v48 }
  0x96   : > { %1322 = vmatpush1.bf16.msra.mxu0 %v4736_v38  ;;  %1395 = vmatpush1.bf16.msra.mxu1 %v4739_v39 }
  0x97   : > { %1323 = vmatprep.subr.bf16.mxu0 %v4744_v40  ;;  %1396 = vmatprep.subr.bf16.mxu1 %v4747_v41 }
  0x9a   : > { %1324 = vmatpush2.bf16.msra.mxu0 %v4742_v42  ;;  %1397 = vmatpush2.bf16.msra.mxu1 %v4745_v43 }
  0x9b   : > { %1325 = vmatprep.subr.bf16.mxu0 %v4750_v44  ;;  %1398 = vmatprep.subr.bf16.mxu1 %v4753_v45 }
  0x9e   : > { %1326 = vmatpush2.bf16.msra.mxu0 %v4748_v46  ;;  %1399 = vmatpush2.bf16.msra.mxu1 %v4751_v47 }
  0x9f   : > { %1327 = vmatprep.subr.bf16.mxu0 %v4756_v49  ;;  %1400 = vmatprep.subr.bf16.mxu1 %v4759_v50 }
  0xa2   : > { %1328 = vmatpush2.bf16.msra.mxu0 %v4754_v51  ;;  %1401 = vmatpush2.bf16.msra.mxu1 %v4757_v52 }
  0xa3   : > { %1329 = vmatprep.subr.bf16.mxu0 %v4762_v53  ;;  %1402 = vmatprep.subr.bf16.mxu1 %v4765_v54 }
  0xa6   : > { %1330 = vmatpush2.bf16.msra.mxu0 %v4760_v55  ;;  %1403 = vmatpush2.bf16.msra.mxu1 %v4763_v56 }
  0xa7   : > { %1331 = vmatprep.subr.bf16.mxu0 %v4768_v57  ;;  %1404 = vmatprep.subr.bf16.mxu1 %v4771_v58 }
  0xaa   : > { %1332 = vmatpush2.bf16.msra.mxu0 %v4766_v59  ;;  %1405 = vmatpush2.bf16.msra.mxu1 %v4769_v60 }
  0xab   : > { %1333 = vmatprep.subr.bf16.mxu0 %v4774_v61  ;;  %1406 = vmatprep.subr.bf16.mxu1 %v4777_v62 }
  0xae   : > { %1334 = vmatpush2.bf16.msra.mxu0 %v4772_v63  ;;  %1407 = vmatpush2.bf16.msra.mxu1 %v4775_v0 }
  0xaf   : > { %1335 = vmatprep.subr.bf16.mxu0 %v4780_v1  ;;  %1408 = vmatprep.subr.bf16.mxu1 %v4783_v2 }
  0xb2   : > { %1336 = vmatpush2.bf16.msra.mxu0 %v4778_v4  ;;  %1409 = vmatpush2.bf16.msra.mxu1 %v4781_v5 }
  0xb3   : > { %1337 = vmatprep.subr.bf16.mxu0 %v4786_v6  ;;  %1410 = vmatprep.subr.bf16.mxu1 %v4789_v7 }
  0xb6   : > { %1338 = vmatpush2.bf16.msra.mxu0 %v4784_v9  ;;  %1411 = vmatpush2.bf16.msra.mxu1 %v4787_v10 }
  0xb7   : > { %4204 = vmatprep.subr.bf16.mxu0 %v4790_v11 }
  0xb9   : > { %1340 = vmatmul.mubr.bf16.vlgmr.msra.gmra.mxu0 %v5454_v3  ;;  %1413 = vmatmul.mubr.bf16.vlgmr.msra.gmra.mxu1 %v5454_v3 }
  0xba   : > { %4205 = vmatpush3.bf16.msra.mxu0 %v4791_v12  ;;  %1349 = vmatprep.mubr.bf16.mxu0 %v5469_v8 }
  0xbb   : > { %4206 = vmatprep.subr.bf16.mxu0 %v4792_v14  ;;  %1422 = vmatprep.mubr.bf16.mxu1 %v5469_v8 }
  0xbe   : > { %4207 = vmatpush3.bf16.msra.mxu0 %v4793_v15 }
  0xbf   : > { %4208 = vmatprep.subr.bf16.mxu0 %v4794_v16 }
  0xc1   : > { %1350 = vmatmul.mubr.bf16.gmra.mxu0 %v5488_v13  ;;  %1423 = vmatmul.mubr.bf16.gmra.mxu1 %v5488_v13 }
  0xc2   : > { %4209 = vmatpush3.bf16.msra.mxu0 %v4795_v17  ;;  %1359 = vmatprep.mubr.bf16.mxu0 %v5503_v18 }
  0xc3   : > { %4210 = vmatprep.subr.bf16.mxu0 %v4796_v19  ;;  %1432 = vmatprep.mubr.bf16.mxu1 %v5503_v18 }
  0xc6   : > { %4211 = vmatpush3.bf16.msra.mxu0 %v4797_v20 }
  0xc7   : > { %4212 = vmatprep.subr.bf16.mxu0 %v4798_v21 }
  0xc9   : > { %1360 = vmatmul.mubr.bf16.gmra.mxu0 %v5522_v23  ;;  %1433 = vmatmul.mubr.bf16.gmra.mxu1 %v5522_v23 }
  0xca   : > { %4213 = vmatpush3.bf16.msra.mxu0 %v4799_v22  ;;  %1369 = vmatprep.mubr.bf16.mxu0 %v5537_v28 }
  0xcb   : > { %4214 = vmatprep.subr.bf16.mxu0 %v4800_v24  ;;  %1442 = vmatprep.mubr.bf16.mxu1 %v5537_v28 }
  0xce   : > { %4215 = vmatpush3.bf16.msra.mxu0 %v4801_v25 }
  0xcf   : > { %4216 = vmatprep.subr.bf16.mxu0 %v4802_v26 }
  0xd1   : > { %1370 = vmatmul.mubr.bf16.gmra.mxu0 %v5556_v33  ;;  %1443 = vmatmul.mubr.bf16.gmra.mxu1 %v5556_v33 }
  0xd2   : > { %4217 = vmatpush3.bf16.msra.mxu0 %v4803_v27  ;;  %1485 = vmatprep.mubr.bf16.mxu0 %v5395_v48  ;;  %v4824_v48 = vld [vmem:[%s6308_s1 + $0x4] ss:$20 sps:$4 sm:$0xff]  }
  0xd3   : > { %4218 = vmatprep.subr.bf16.mxu0 %v4804_v29  ;;  %2750 = vmatprep.mubr.bf16.mxu1 %v4824_v48 }
  0xd6   : > { %4219 = vmatpush3.bf16.msra.mxu0 %v4805_v30 }
  0xd9   : > { %1486 = vmatmul.mubr.bf16.vlgmr.msra.gmra.mxu0 %v5454_v3 }
  0xda   : > { %1493 = vmatprep.mubr.bf16.mxu0 %v5469_v8 }
  0xe1   : > { %1494 = vmatmul.mubr.bf16.gmra.mxu0 %v5488_v13 }
  0xe2   : > { %1501 = vmatprep.mubr.bf16.mxu0 %v5503_v18 }
  0xe9   : > { %1502 = vmatmul.mubr.bf16.gmra.mxu0 %v5522_v23 }
  0xea   : > { %1509 = vmatprep.mubr.bf16.mxu0 %v5537_v28 }
  0xf1   : > { %1510 = vmatmul.mubr.bf16.gmra.mxu0 %v5556_v33  ;;  %v4866_v33 = vld [vmem:[%s6308_s1 + $0xc] ss:$20 sps:$4 sm:$0xff]  }
  0xf2   : > { %2911 = vmatprep.mubr.bf16.mxu0 %v4866_v33 }
 0x139   : > { %v1195_v31 = vpop.f32.mrf.mxu0  ;;  %v1268_v32 = vpop.f32.mrf.mxu1 }
 0x13b   : > { %v1197_v3 = vpop.f32.mrf.mxu0  ;;  %v1270_v34 = vpop.f32.mrf.mxu1 }
 0x13d   : > { %v1199_v8 = vpop.f32.mrf.mxu0  ;;  %v1272_v35 = vpop.f32.mrf.mxu1 }
 0x13e   : > { %v3992_v13 = vpack.c.bf16 %v1199_v8, %v1195_v31  ;;  %v4032_v36 = vpack.c.bf16 %v1272_v35, %v1268_v32 }
 0x13f   : > { %v1201_v18 = vpop.f32.mrf.mxu0  ;;  %v1274_v37 = vpop.f32.mrf.mxu1 }
 0x140   : > { %3993 = vst [vmem:[#allocation2] sm:$0xff] %v3992_v13   ;;  %4176 = vst [vmem:[#allocation2 + $0x40] sm:$0xff] %v4032_v36   ;;  %v4012_v23 = vpack.c.bf16 %v1201_v18, %v1197_v3  ;;  %v4052_v28 = vpack.c.bf16 %v1274_v37, %v1270_v34 }
 0x141   : > { %v1278_v38 = vpop.f32.mrf.mxu1  ;;  %v1205_v39 = vpop.f32.mrf.mxu0 }
 0x142   : > { %4172 = vst [vmem:[#allocation2 + $0x20] sm:$0xff] %v4012_v23   ;;  %4180 = vst [vmem:[#allocation2 + $0x60] sm:$0xff] %v4052_v28   ;;  %v4822_v28 = vld [vmem:[%s6308_s1] ss:$20 sps:$4 sm:$0xff]  }
 0x143   : > { %v1280_v40 = vpop.f32.mrf.mxu1  ;;  %v1207_v41 = vpop.f32.mrf.mxu0 }
 0x145   : > { %v1282_v42 = vpop.f32.mrf.mxu1  ;;  %v1209_v43 = vpop.f32.mrf.mxu0 }
 0x146   : > { %v4037_v44 = vpack.c.bf16 %v1282_v42, %v1278_v38  ;;  %v3997_v45 = vpack.c.bf16 %v1209_v43, %v1205_v39  ;;  %v4825_v39 = vld [vmem:[%s6308_s1 + $0x2c] ss:$20 sps:$4 sm:$0xff]  }
 0x147   : > { %v1284_v46 = vpop.f32.mrf.mxu1  ;;  %v1211_v47 = vpop.f32.mrf.mxu0  ;;  %v4820_v34 = vld [vmem:[#allocation2 + $0x40] sm:$0xff]  }
 0x148   : > { %4177 = vst [vmem:[#allocation2 + $0x48] sm:$0xff] %v4037_v44   ;;  %4169 = vst [vmem:[#allocation2 + $0x8] sm:$0xff] %v3997_v45   ;;  %v4057_v49 = vpack.c.bf16 %v1284_v46, %v1280_v40  ;;  %v4017_v50 = vpack.c.bf16 %v1211_v47, %v1207_v41  ;;  %v4821_v18 = vld [vmem:[#allocation2] sm:$0xff]  }
 0x149   : > { %v1288_v51 = vpop.f32.mrf.mxu1  ;;  %v1215_v52 = vpop.f32.mrf.mxu0  ;;  %v4812_v21 = vld [vmem:[#allocation2 + $0x60] sm:$0xff]  }
 0x14a   : > { %4181 = vst [vmem:[#allocation2 + $0x68] sm:$0xff] %v4057_v49   ;;  %4173 = vst [vmem:[#allocation2 + $0x28] sm:$0xff] %v4017_v50   ;;  %v4813_v24 = vld [vmem:[#allocation2 + $0x20] sm:$0xff]  }
 0x14b   : > { %v1290_v53 = vpop.f32.mrf.mxu1  ;;  %v1217_v54 = vpop.f32.mrf.mxu0 }
 0x14d   : > { %v1292_v55 = vpop.f32.mrf.mxu1  ;;  %v1219_v56 = vpop.f32.mrf.mxu0 }
 0x14e   : > { %v4042_v57 = vpack.c.bf16 %v1292_v55, %v1288_v51  ;;  %v4002_v58 = vpack.c.bf16 %v1219_v56, %v1215_v52  ;;  %v4827_v51 = vld [vmem:[%s6308_s1 + $0x28] ss:$20 sps:$4 sm:$0xff]  }
 0x14f   : > { %v1294_v59 = vpop.f32.mrf.mxu1  ;;  %v1221_v60 = vpop.f32.mrf.mxu0  ;;  %v4818_v29 = vld [vmem:[#allocation2 + $0x48] sm:$0xff]  }
 0x150   : > { %4178 = vst [vmem:[#allocation2 + $0x50] sm:$0xff] %v4042_v57   ;;  %4170 = vst [vmem:[#allocation2 + $0x10] sm:$0xff] %v4002_v58   ;;  %v4062_v61 = vpack.c.bf16 %v1294_v59, %v1290_v53  ;;  %v4022_v62 = vpack.c.bf16 %v1221_v60, %v1217_v54  ;;  %v4819_v31 = vld [vmem:[#allocation2 + $0x8] sm:$0xff]  }
 0x151   : > { %v1298_v63 = vpop.f32.mrf.mxu1  ;;  %v1225_v0 = vpop.f32.mrf.mxu0  ;;  %v4810_v19 = vld [vmem:[#allocation2 + $0x68] sm:$0xff]  }
 0x152   : > { %4182 = vst [vmem:[#allocation2 + $0x70] sm:$0xff] %v4062_v61   ;;  %4174 = vst [vmem:[#allocation2 + $0x30] sm:$0xff] %v4022_v62   ;;  %v4811_v20 = vld [vmem:[#allocation2 + $0x28] sm:$0xff]  }
 0x153   : > { %v1300_v1 = vpop.f32.mrf.mxu1  ;;  %v1227_v2 = vpop.f32.mrf.mxu0  ;;  %v4828_v54 = vld [vmem:[%s6308_s1 + $0x54] ss:$20 sps:$4 sm:$0xff]  }
 0x155   : > { %v1302_v4 = vpop.f32.mrf.mxu1  ;;  %v1229_v5 = vpop.f32.mrf.mxu0 }
 0x156   : > { %v4047_v6 = vpack.c.bf16 %v1302_v4, %v1298_v63  ;;  %v4007_v7 = vpack.c.bf16 %v1229_v5, %v1225_v0  ;;  %v4831_v5 = vld [vmem:[%s6308_s1 + $0x7c] ss:$20 sps:$4 sm:$0xff]  }
 0x157   : > { %v1304_v9 = vpop.f32.mrf.mxu1  ;;  %v1231_v10 = vpop.f32.mrf.mxu0  ;;  %v4816_v26 = vld [vmem:[#allocation2 + $0x50] sm:$0xff]  }
 0x158   : > { %4179 = vst [vmem:[#allocation2 + $0x58] sm:$0xff] %v4047_v6   ;;  %4171 = vst [vmem:[#allocation2 + $0x18] sm:$0xff] %v4007_v7   ;;  %v4067_v11 = vpack.c.bf16 %v1304_v9, %v1300_v1  ;;  %v4027_v12 = vpack.c.bf16 %v1231_v10, %v1227_v2  ;;  %v4817_v27 = vld [vmem:[#allocation2 + $0x10] sm:$0xff]  }
 0x159   : > { %v4808_v14 = vld [vmem:[#allocation2 + $0x70] sm:$0xff]  }
 0x15a   : > { %4183 = vst [vmem:[#allocation2 + $0x78] sm:$0xff] %v4067_v11   ;;  %4175 = vst [vmem:[#allocation2 + $0x38] sm:$0xff] %v4027_v12   ;;  %v4809_v17 = vld [vmem:[#allocation2 + $0x30] sm:$0xff]  }
 0x15b   : > { %v4830_v1 = vld [vmem:[%s6308_s1 + $0x50] ss:$20 sps:$4 sm:$0xff]  }
 0x15f   : > { %v4814_v22 = vld [vmem:[#allocation2 + $0x58] sm:$0xff]  }
 0x160   : > { %v4815_v25 = vld [vmem:[#allocation2 + $0x18] sm:$0xff]  }
 0x161   : > { %v4806_v15 = vld [vmem:[#allocation2 + $0x78] sm:$0xff]  }
 0x162   : > { %v4807_v16 = vld [vmem:[#allocation2 + $0x38] sm:$0xff]   ;;  %4244 = vmatprep.subr.bf16.mxu1 %v4806_v15 }
 0x163   : > { %4245 = vmatpush3.bf16.msra.mxu1 %v4807_v16 }
 0x164   : > { %4246 = vmatprep.subr.bf16.mxu1 %v4808_v14 }
 0x167   : > { %4247 = vmatpush3.bf16.msra.mxu1 %v4809_v17 }
 0x168   : > { %4248 = vmatprep.subr.bf16.mxu1 %v4810_v19  ;;  %v4833_v19 = vld [vmem:[%s6308_s1 + $0x78] ss:$20 sps:$4 sm:$0xff]  }
 0x16b   : > { %4249 = vmatpush3.bf16.msra.mxu1 %v4811_v20 }
 0x16c   : > { %4250 = vmatprep.subr.bf16.mxu1 %v4812_v21 }
 0x16f   : > { %4251 = vmatpush3.bf16.msra.mxu1 %v4813_v24 }
 0x170   : > { %4252 = vmatprep.subr.bf16.mxu1 %v4814_v22  ;;  %v4834_v22 = vld [vmem:[%s6308_s1 + $0xa4] ss:$20 sps:$4 sm:$0xff]  }
 0x173   : > { %4253 = vmatpush3.bf16.msra.mxu1 %v4815_v25 }
 0x174   : > { %4254 = vmatprep.subr.bf16.mxu1 %v4816_v26 }
 0x177   : > { %4255 = vmatpush3.bf16.msra.mxu1 %v4817_v27 }
 0x178   : > { %4256 = vmatprep.subr.bf16.mxu1 %v4818_v29 }
 0x179   : > { %v1341_v30 = vpop.f32.mrf.mxu0  ;;  %v1414_v48 = vpop.f32.mrf.mxu1 }
 0x17b   : > { %v1343_v32 = vpop.f32.mrf.mxu0  ;;  %v1416_v3 = vpop.f32.mrf.mxu1  ;;  %4257 = vmatpush3.bf16.msra.mxu1 %v4819_v31  ;;  %v4841_v31 = vld [vmem:[%s6308_s1 + $0xcc] ss:$20 sps:$4 sm:$0xff]  }
 0x17c   : > { %4258 = vmatprep.subr.bf16.mxu1 %v4820_v34 }
 0x17d   : > { %v1345_v8 = vpop.f32.mrf.mxu0  ;;  %v1418_v35 = vpop.f32.mrf.mxu1 }
 0x17e   : > { %v4072_v13 = vpack.c.bf16 %v1345_v8, %v1341_v30  ;;  %v4112_v36 = vpack.c.bf16 %v1418_v35, %v1414_v48  ;;  %v4836_v30 = vld [vmem:[%s6308_s1 + $0xa0] ss:$20 sps:$4 sm:$0xff]  }
 0x17f   : > { %v1347_v37 = vpop.f32.mrf.mxu0  ;;  %v1420_v23 = vpop.f32.mrf.mxu1  ;;  %4259 = vmatpush3.bf16.msra.mxu1 %v4821_v18 }
 0x180   : > { %4184 = vst [vmem:[#allocation2 + $0x80] sm:$0xff] %v4072_v13   ;;  %4192 = vst [vmem:[#allocation2 + $0xc0] sm:$0xff] %v4112_v36   ;;  %v4092_v33 = vpack.c.bf16 %v1347_v37, %v1343_v32  ;;  %v4132_v38 = vpack.c.bf16 %v1420_v23, %v1416_v3 }
 0x181   : > { %v1351_v40 = vpop.f32.mrf.mxu0  ;;  %v1424_v41 = vpop.f32.mrf.mxu1 }
 0x182   : > { %4188 = vst [vmem:[#allocation2 + $0xa0] sm:$0xff] %v4092_v33   ;;  %4196 = vst [vmem:[#allocation2 + $0xe0] sm:$0xff] %v4132_v38   ;;  %2751 = vmatmul.mubr.bf16.vlgmr.msra.gmra.mxu1 %v4822_v28  ;;  %v4843_v28 = vld [vmem:[%s6308_s1 + $0xc8] ss:$20 sps:$4 sm:$0xff]  }
 0x183   : > { %v1353_v42 = vpop.f32.mrf.mxu0  ;;  %v1426_v43 = vpop.f32.mrf.mxu1  ;;  %2758 = vmatprep.mubr.bf16.mxu1 %v4825_v39  ;;  %v4848_v39 = vld [vmem:[%s6308_s1 + $0xf4] ss:$20 sps:$4 sm:$0xff]  }
 0x185   : > { %v1355_v44 = vpop.f32.mrf.mxu0  ;;  %v1428_v45 = vpop.f32.mrf.mxu1 }
 0x186   : > { %v4077_v46 = vpack.c.bf16 %v1355_v44, %v1351_v40  ;;  %v4117_v47 = vpack.c.bf16 %v1428_v45, %v1424_v41 }
 0x187   : > { %v1357_v49 = vpop.f32.mrf.mxu0  ;;  %v1430_v50 = vpop.f32.mrf.mxu1 }
 0x188   : > { %4185 = vst [vmem:[#allocation2 + $0x88] sm:$0xff] %v4077_v46   ;;  %4193 = vst [vmem:[#allocation2 + $0xc8] sm:$0xff] %v4117_v47   ;;  %v4097_v52 = vpack.c.bf16 %v1357_v49, %v1353_v42  ;;  %v4137_v53 = vpack.c.bf16 %v1430_v50, %v1426_v43  ;;  %v4850_v50 = vld [vmem:[%s6308_s1 + $0xf0] ss:$20 sps:$4 sm:$0xff]  }
 0x189   : > { %v1361_v55 = vpop.f32.mrf.mxu0  ;;  %v1434_v56 = vpop.f32.mrf.mxu1  ;;  %v4846_v44 = vld [vmem:[#allocation2 + $0xe0] sm:$0xff]  }
 0x18a   : > { %4189 = vst [vmem:[#allocation2 + $0xa8] sm:$0xff] %v4097_v52   ;;  %4197 = vst [vmem:[#allocation2 + $0xe8] sm:$0xff] %v4137_v53   ;;  %2759 = vmatmul.mubr.bf16.gmra.mxu1 %v4827_v51  ;;  %v4847_v47 = vld [vmem:[#allocation2 + $0xa0] sm:$0xff]   ;;  %v4856_v53 = vld [vmem:[%s6308_s1 + $0x11c] ss:$20 sps:$4 sm:$0xff]  }
 0x18b   : > { %v1363_v57 = vpop.f32.mrf.mxu0  ;;  %v1436_v58 = vpop.f32.mrf.mxu1  ;;  %2766 = vmatprep.mubr.bf16.mxu1 %v4828_v54 }
 0x18d   : > { %v1365_v59 = vpop.f32.mrf.mxu0  ;;  %v1438_v60 = vpop.f32.mrf.mxu1 }
 0x18e   : > { %v4082_v61 = vpack.c.bf16 %v1365_v59, %v1361_v55  ;;  %v4122_v62 = vpack.c.bf16 %v1438_v60, %v1434_v56 }
 0x18f   : > { %v1367_v63 = vpop.f32.mrf.mxu0  ;;  %v1440_v0 = vpop.f32.mrf.mxu1 }
 0x190   : > { %4186 = vst [vmem:[#allocation2 + $0x90] sm:$0xff] %v4082_v61   ;;  %4194 = vst [vmem:[#allocation2 + $0xd0] sm:$0xff] %v4122_v62   ;;  %v4102_v2 = vpack.c.bf16 %v1367_v63, %v1363_v57  ;;  %v4142_v4 = vpack.c.bf16 %v1440_v0, %v1436_v58  ;;  %v4855_v63 = vld [vmem:[#allocation2 + $0xc8] sm:$0xff]  }
 0x191   : > { %v1371_v6 = vpop.f32.mrf.mxu0  ;;  %v1444_v7 = vpop.f32.mrf.mxu1  ;;  %v4844_v33 = vld [vmem:[#allocation2 + $0xe8] sm:$0xff]  }
 0x192   : > { %4190 = vst [vmem:[#allocation2 + $0xb0] sm:$0xff] %v4102_v2   ;;  %4198 = vst [vmem:[#allocation2 + $0xf0] sm:$0xff] %v4142_v4   ;;  %2767 = vmatmul.mubr.bf16.gmra.mxu1 %v4830_v1  ;;  %v4845_v42 = vld [vmem:[#allocation2 + $0xa8] sm:$0xff]   ;;  %v4862_v2 = vld [vmem:[%s6308_s1 + $0x144] ss:$20 sps:$4 sm:$0xff]  }
 0x193   : > { %v1373_v9 = vpop.f32.mrf.mxu0  ;;  %v1446_v10 = vpop.f32.mrf.mxu1  ;;  %2774 = vmatprep.mubr.bf16.mxu1 %v4831_v5  ;;  %v4858_v0 = vld [vmem:[%s6308_s1 + $0x118] ss:$20 sps:$4 sm:$0xff]  }
 0x194   : > { %v4859_v5 = vld [vmem:[#allocation2 + $0x88] sm:$0xff]  }
 0x195   : > { %v1375_v11 = vpop.f32.mrf.mxu0  ;;  %v1448_v12 = vpop.f32.mrf.mxu1 }
 0x196   : > { %v4087_v14 = vpack.c.bf16 %v1375_v11, %v1371_v6  ;;  %v4127_v15 = vpack.c.bf16 %v1448_v12, %v1444_v7  ;;  %v4860_v6 = vld [vmem:[#allocation2 + $0xc0] sm:$0xff]   ;;  %v4872_v12 = vld [vmem:[%s6308_s1 + $0x34] ss:$20 sps:$4 sm:$0xff]  }
 0x197   : > { %v1377_v16 = vpop.f32.mrf.mxu0  ;;  %v1450_v17 = vpop.f32.mrf.mxu1  ;;  %v4853_v58 = vld [vmem:[#allocation2 + $0xd0] sm:$0xff]   ;;  %v4861_v7 = vld [vmem:[#allocation2 + $0x80] sm:$0xff]  }
 0x198   : > { %4187 = vst [vmem:[#allocation2 + $0x98] sm:$0xff] %v4087_v14   ;;  %4195 = vst [vmem:[#allocation2 + $0xd8] sm:$0xff] %v4127_v15   ;;  %v4107_v20 = vpack.c.bf16 %v1377_v16, %v1373_v9  ;;  %v4147_v21 = vpack.c.bf16 %v1450_v17, %v1446_v10  ;;  %v4854_v61 = vld [vmem:[#allocation2 + $0x90] sm:$0xff]   ;;  %v4864_v9 = vld [vmem:[%s6308_s1 + $0x8] ss:$20 sps:$4 sm:$0xff]  }
 0x199   : > { %v4220_v24 = vpop.f32.mrf.mxu0  ;;  %v4839_v13 = vld [vmem:[#allocation2 + $0xf0] sm:$0xff]   ;;  %v4870_v11 = vld [vmem:[%s6308_s1 + $0x16c] ss:$20 sps:$4 sm:$0xff]   ;;  %v4874_v16 = vld [vmem:[%s6308_s1 + $0x168] ss:$20 sps:$4 sm:$0xff]  }
 0x19a   : > { %4191 = vst [vmem:[#allocation2 + $0xb8] sm:$0xff] %v4107_v20   ;;  %4199 = vst [vmem:[#allocation2 + $0xf8] sm:$0xff] %v4147_v21   ;;  %2775 = vmatmul.mubr.bf16.gmra.mxu1 %v4833_v19  ;;  %v4840_v37 = vld [vmem:[#allocation2 + $0xb0] sm:$0xff]  }
 0x19b   : > { %v4221_v25 = vpop.f32.mrf.mxu0  ;;  %2782 = vmatprep.mubr.bf16.mxu1 %v4834_v22  ;;  %v4867_v10 = vld [vmem:[%s6308_s1 + $0x140] ss:$20 sps:$4 sm:$0xff]   ;;  %v4875_v17 = vld [vmem:[%s6308_s1 + $0x30] ss:$20 sps:$4 sm:$0xff]  }
 0x19c   : > { %v4222_v27 = vadd.f32 %v4221_v25, %v4220_v24  ;;  %v4878_v20 = vld [vmem:[%s6308_s1 + $0x194] ss:$20 sps:$4 sm:$0xff]   ;;  %v4880_v21 = vld [vmem:[%s6308_s1 + $0x5c] ss:$20 sps:$4 sm:$0xff]   ;;  %v4883_v25 = vld [vmem:[%s6308_s1 + $0x58] ss:$20 sps:$4 sm:$0xff]  }
 0x19d   : > { %v4223_v26 = vpop.f32.mrf.mxu0  ;;  %v4882_v24 = vld [vmem:[%s6308_s1 + $0x190] ss:$20 sps:$4 sm:$0xff]  }
 0x19f   : > { %v4224_v29 = vpop.f32.mrf.mxu0  ;;  %v4851_v51 = vld [vmem:[#allocation2 + $0xd8] sm:$0xff]  }
 0x1a0   : > { %v4225_v48 = vadd.f32 %v4224_v29, %v4223_v26  ;;  %v4852_v56 = vld [vmem:[#allocation2 + $0x98] sm:$0xff]  }
 0x1a1   : > { %v4226_v32 = vpop.f32.mrf.mxu0  ;;  %v4837_v3 = vld [vmem:[#allocation2 + $0xf8] sm:$0xff]  }
 0x1a2   : > { %v4152_v34 = vpack.c.bf16 %v4225_v48, %v4222_v27  ;;  %v4838_v8 = vld [vmem:[#allocation2 + $0xb8] sm:$0xff]   ;;  %2783 = vmatmul.mubr.bf16.gmra.mxu1 %v4836_v30  ;;  %4356 = vmatprep.subr.bf16.mxu0 %v4837_v3  ;;  %v4889_v30 = vld [vmem:[%s6308_s1 + $0x80] ss:$20 sps:$4 sm:$0xff]  }
 0x1a3   : > { %v4227_v35 = vpop.f32.mrf.mxu0  ;;  %4357 = vmatpush3.bf16.msra.mxu0 %v4838_v8  ;;  %2790 = vmatprep.mubr.bf16.mxu1 %v4841_v31  ;;  %v4884_v26 = vld [vmem:[%s6308_s1 + $0x1bc] ss:$20 sps:$4 sm:$0xff]   ;;  %v4886_v27 = vld [vmem:[%s6308_s1 + $0x84] ss:$20 sps:$4 sm:$0xff]   ;;  %v4892_v31 = vld [vmem:[%s6308_s1 + $0xac] ss:$20 sps:$4 sm:$0xff]  }
 0x1a4   : > { %4200 = vst [vmem:[#allocation2 + $0x100] sm:$0xff] %v4152_v34   ;;  %4358 = vmatprep.subr.bf16.mxu0 %v4839_v13  ;;  %v4228_v18 = vadd.f32 %v4227_v35, %v4226_v32  ;;  %v4888_v29 = vld [vmem:[%s6308_s1 + $0x1b8] ss:$20 sps:$4 sm:$0xff]   ;;  %v4894_v32 = vld [vmem:[%s6308_s1 + $0x1e0] ss:$20 sps:$4 sm:$0xff]  }
 0x1a5   : > { %v4229_v36 = vpop.f32.mrf.mxu0  ;;  %v4890_v48 = vld [vmem:[%s6308_s1 + $0x1e4] ss:$20 sps:$4 sm:$0xff]   ;;  %v4895_v3 = vld [vmem:[%s6308_s1 + $0xa8] ss:$20 sps:$4 sm:$0xff]   ;;  %v4896_v34 = vld [vmem:[%s6308_s1 + $0x20c] ss:$20 sps:$4 sm:$0xff]  }
 0x1a6   : > { %v4898_v8 = vld [vmem:[%s6308_s1 + $0xd4] ss:$20 sps:$4 sm:$0xff]   ;;  %v4901_v13 = vld [vmem:[%s6308_s1 + $0xd0] ss:$20 sps:$4 sm:$0xff]  }
 0x1a7   : > { %v4230_v23 = vpop.f32.mrf.mxu0  ;;  %4359 = vmatpush3.bf16.msra.mxu0 %v4840_v37  ;;  %v4900_v35 = vld [vmem:[%s6308_s1 + $0x208] ss:$20 sps:$4 sm:$0xff]   ;;  %v4906_v37 = vld [vmem:[%s6308_s1 + $0x230] ss:$20 sps:$4 sm:$0xff]  }
 0x1a8   : > { %v4231_v38 = vadd.f32 %v4230_v23, %v4229_v36  ;;  %4360 = vmatprep.subr.bf16.mxu0 %v4844_v33  ;;  %v4902_v36 = vld [vmem:[%s6308_s1 + $0x234] ss:$20 sps:$4 sm:$0xff]   ;;  %v4907_v23 = vld [vmem:[%s6308_s1 + $0xf8] ss:$20 sps:$4 sm:$0xff]  }
 0x1a9   : > { %v4232_v40 = vpop.f32.mrf.mxu0  ;;  %v4910_v33 = vld [vmem:[%s6308_s1 + $0x124] ss:$20 sps:$4 sm:$0xff]  }
 0x1aa   : > { %v4157_v41 = vpack.c.bf16 %v4231_v38, %v4228_v18  ;;  %2791 = vmatmul.mubr.bf16.gmra.mxu1 %v4843_v28  ;;  %v4904_v18 = vld [vmem:[%s6308_s1 + $0xfc] ss:$20 sps:$4 sm:$0xff]   ;;  %v4912_v38 = vld [vmem:[%s6308_s1 + $0x258] ss:$20 sps:$4 sm:$0xff]  }
 0x1ab   : > { %v4233_v43 = vpop.f32.mrf.mxu0  ;;  %4361 = vmatpush3.bf16.msra.mxu0 %v4845_v42  ;;  %2798 = vmatprep.mubr.bf16.mxu1 %v4848_v39  ;;  %v4877_v22 = vld [vmem:[#allocation2 + $0x100] sm:$0xff]   ;;  %v4908_v28 = vld [vmem:[%s6308_s1 + $0x25c] ss:$20 sps:$4 sm:$0xff]  }
 0x1ac   : > { %4201 = vst [vmem:[#allocation2 + $0x108] sm:$0xff] %v4157_v41   ;;  %4362 = vmatprep.subr.bf16.mxu0 %v4846_v44  ;;  %v4234_v46 = vadd.f32 %v4233_v43, %v4232_v40  ;;  %v4913_v39 = vld [vmem:[%s6308_s1 + $0x120] ss:$20 sps:$4 sm:$0xff]   ;;  %v4916_v41 = vld [vmem:[%s6308_s1 + $0xb0] ss:$20 sps:$4 sm:$0xff]  }
 0x1ad   : > { %v4235_v45 = vpop.f32.mrf.mxu0  ;;  %v4914_v40 = vld [vmem:[%s6308_s1 + $0x14c] ss:$20 sps:$4 sm:$0xff]   ;;  %v4917_v42 = vld [vmem:[%s6308_s1 + $0x148] ss:$20 sps:$4 sm:$0xff]  }
 0x1ae   : > { %v4918_v43 = vld [vmem:[%s6308_s1 + $0xd8] ss:$20 sps:$4 sm:$0xff]   ;;  %v4919_v44 = vld [vmem:[%s6308_s1 + $0x174] ss:$20 sps:$4 sm:$0xff]  }
 0x1af   : > { %v4236_v49 = vpop.f32.mrf.mxu0  ;;  %4363 = vmatpush3.bf16.msra.mxu0 %v4847_v47  ;;  %v4923_v47 = vld [vmem:[%s6308_s1 + $0x128] ss:$20 sps:$4 sm:$0xff]  }
 0x1b0   : > { %v4237_v52 = vadd.f32 %v4236_v49, %v4235_v45  ;;  %4364 = vmatprep.subr.bf16.mxu0 %v4851_v51  ;;  %v4921_v45 = vld [vmem:[%s6308_s1 + $0x100] ss:$20 sps:$4 sm:$0xff]   ;;  %v4924_v49 = vld [vmem:[%s6308_s1 + $0x19c] ss:$20 sps:$4 sm:$0xff]   ;;  %v4927_v51 = vld [vmem:[%s6308_s1 + $0x198] ss:$20 sps:$4 sm:$0xff]  }
 0x1b1   : > { %v4238_v54 = vpop.f32.mrf.mxu0 }
 0x1b2   : > { %v4162_v55 = vpack.c.bf16 %v4237_v52, %v4234_v46  ;;  %2799 = vmatmul.mubr.bf16.gmra.mxu1 %v4850_v50  ;;  %v4922_v46 = vld [vmem:[%s6308_s1 + $0x170] ss:$20 sps:$4 sm:$0xff]   ;;  %v4928_v52 = vld [vmem:[%s6308_s1 + $0x178] ss:$20 sps:$4 sm:$0xff]  }
 0x1b3   : > { %v4239_v57 = vpop.f32.mrf.mxu0  ;;  %4365 = vmatpush3.bf16.msra.mxu0 %v4852_v56  ;;  %2806 = vmatprep.mubr.bf16.mxu1 %v4856_v53  ;;  %v4876_v19 = vld [vmem:[#allocation2 + $0x108] sm:$0xff]   ;;  %v4926_v50 = vld [vmem:[%s6308_s1 + $0x150] ss:$20 sps:$4 sm:$0xff]  }
 0x1b4   : > { %4202 = vst [vmem:[#allocation2 + $0x110] sm:$0xff] %v4162_v55   ;;  %4366 = vmatprep.subr.bf16.mxu0 %v4853_v58  ;;  %v4240_v60 = vadd.f32 %v4239_v57, %v4238_v54  ;;  %v4929_v53 = vld [vmem:[%s6308_s1 + $0x1c4] ss:$20 sps:$4 sm:$0xff]   ;;  %v4931_v54 = vld [vmem:[%s6308_s1 + $0x1a0] ss:$20 sps:$4 sm:$0xff]  }
 0x1b5   : > { %v4241_v59 = vpop.f32.mrf.mxu0  ;;  %v4932_v55 = vld [vmem:[%s6308_s1 + $0x1c0] ss:$20 sps:$4 sm:$0xff]   ;;  %v4933_v56 = vld [vmem:[%s6308_s1 + $0x1c8] ss:$20 sps:$4 sm:$0xff]   ;;  %v4937_v58 = vld [vmem:[%s6308_s1 + $0x1f0] ss:$20 sps:$4 sm:$0xff]  }
 0x1b6   : > { %v4934_v57 = vld [vmem:[%s6308_s1 + $0x1ec] ss:$20 sps:$4 sm:$0xff]  }
 0x1b7   : > { %v4242_v62 = vpop.f32.mrf.mxu0  ;;  %4367 = vmatpush3.bf16.msra.mxu0 %v4854_v61  ;;  %v4939_v61 = vld [vmem:[%s6308_s1 + $0x214] ss:$20 sps:$4 sm:$0xff]  }
 0x1b8   : > { %v4243_v1 = vadd.f32 %v4242_v62, %v4241_v59  ;;  %4368 = vmatprep.subr.bf16.mxu0 %v4855_v63  ;;  %v4936_v59 = vld [vmem:[%s6308_s1 + $0x1e8] ss:$20 sps:$4 sm:$0xff]   ;;  %v4945_v62 = vld [vmem:[%s6308_s1 + $0x240] ss:$20 sps:$4 sm:$0xff]   ;;  %v4941_v63 = vld [vmem:[%s6308_s1 + $0x210] ss:$20 sps:$4 sm:$0xff]  }
 0x1ba   : > { %v4167_v4 = vpack.c.bf16 %v4243_v1, %v4240_v60  ;;  %2807 = vmatmul.mubr.bf16.gmra.mxu1 %v4858_v0  ;;  %v4938_v60 = vld [vmem:[%s6308_s1 + $0x218] ss:$20 sps:$4 sm:$0xff]   ;;  %v4946_v0 = vld [vmem:[%s6308_s1 + $0x268] ss:$20 sps:$4 sm:$0xff]  }
 0x1bb   : > { %4369 = vmatpush3.bf16.msra.mxu0 %v4859_v5  ;;  %2814 = vmatprep.mubr.bf16.mxu1 %v4862_v2  ;;  %v4869_v14 = vld [vmem:[#allocation2 + $0x110] sm:$0xff]   ;;  %v4944_v2 = vld [vmem:[%s6308_s1 + $0x238] ss:$20 sps:$4 sm:$0xff]  }
 0x1bc   : > { %4203 = vst [vmem:[#allocation2 + $0x118] sm:$0xff] %v4167_v4   ;;  %4370 = vmatprep.subr.bf16.mxu0 %v4860_v6  ;;  %v4942_v1 = vld [vmem:[%s6308_s1 + $0x23c] ss:$20 sps:$4 sm:$0xff]   ;;  %v4947_v4 = vld [vmem:[%s6308_s1 + $0x264] ss:$20 sps:$4 sm:$0xff]  }
 0x1bd   : > { %v4949_v5 = vld [vmem:[%s6308_s1 + $0x260] ss:$20 sps:$4 sm:$0xff]   ;;  %v4950_v6 = vld [vmem:[%s6308_s1 + $0x10] ss:$20 sps:$4 sm:$0xff]  }
 0x1bf   : > { %4371 = vmatpush3.bf16.msra.mxu0 %v4861_v7  ;;  %v4951_v7 = vld [vmem:[%s6308_s1 + $0x38] ss:$20 sps:$4 sm:$0xff]  }
 0x1c2   : > { %2815 = vmatmul.mubr.bf16.gmra.mxu1 %v4867_v10  ;;  %2912 = vmatmul.mubr.bf16.vlgmr.msra.gmra.mxu0 %v4864_v9  ;;  %v4952_v9 = vld [vmem:[%s6308_s1 + $0x60] ss:$20 sps:$4 sm:$0xff]  }
 0x1c3   : > { %v4868_v15 = vld [vmem:[#allocation2 + $0x118] sm:$0xff]   ;;  %2822 = vmatprep.mubr.bf16.mxu1 %v4870_v11  ;;  %2919 = vmatprep.mubr.bf16.mxu0 %v4872_v12 }
 0x1c4   : > { %4488 = vmatprep.subr.bf16.mxu0 %v4868_v15  ;;  %4528 = vmatprep.subr.bf16.mxu1 %v4868_v15 }
 0x1c5   : > { %4489 = vmatpush3.bf16.msra.mxu0 %v4868_v15  ;;  %4532 = vmatpush3.bf16.msra.mxu1 %v4868_v15  ;;  %v4953_v15 = vld [vmem:[%s6308_s1 + $0x88] ss:$20 sps:$4 sm:$0xff]  }
 0x1c6   : > { %4490 = vmatprep.subr.bf16.mxu0 %v4869_v14  ;;  %4529 = vmatprep.subr.bf16.mxu1 %v4869_v14 }
 0x1c9   : > { %4491 = vmatpush3.bf16.msra.mxu0 %v4869_v14  ;;  %4533 = vmatpush3.bf16.msra.mxu1 %v4869_v14 }
 0x1ca   : > { %2823 = vmatmul.mubr.bf16.gmra.mxu1 %v4874_v16  ;;  %2920 = vmatmul.mubr.bf16.gmra.mxu0 %v4875_v17 }
 0x1cb   : > { %4492 = vmatprep.subr.bf16.mxu0 %v4876_v19  ;;  %4530 = vmatprep.subr.bf16.mxu1 %v4876_v19 }
 0x1cc   : > { %2830 = vmatprep.mubr.bf16.mxu1 %v4878_v20  ;;  %2927 = vmatprep.mubr.bf16.mxu0 %v4880_v21 }
 0x1cd   : > { %4493 = vmatpush3.bf16.msra.mxu0 %v4876_v19  ;;  %4534 = vmatpush3.bf16.msra.mxu1 %v4876_v19 }
 0x1ce   : > { %4494 = vmatprep.subr.bf16.mxu0 %v4877_v22  ;;  %4531 = vmatprep.subr.bf16.mxu1 %v4877_v22 }
 0x1d1   : > { %4495 = vmatpush3.bf16.msra.mxu0 %v4877_v22  ;;  %4535 = vmatpush3.bf16.msra.mxu1 %v4877_v22 }
 0x1d2   : > { %2831 = vmatmul.mubr.bf16.gmra.mxu1 %v4882_v24  ;;  %2928 = vmatmul.mubr.bf16.gmra.mxu0 %v4883_v25 }
 0x1d3   : > { %2838 = vmatprep.mubr.bf16.mxu1 %v4884_v26  ;;  %2935 = vmatprep.mubr.bf16.mxu0 %v4886_v27 }
 0x1da   : > { %2839 = vmatmul.mubr.bf16.gmra.mxu1 %v4888_v29  ;;  %2936 = vmatmul.mubr.bf16.gmra.mxu0 %v4889_v30 }
 0x1db   : > { %2846 = vmatprep.mubr.bf16.mxu1 %v4890_v48  ;;  %2943 = vmatprep.mubr.bf16.mxu0 %v4892_v31 }
 0x1e2   : > { %2847 = vmatmul.mubr.bf16.gmra.mxu1 %v4894_v32  ;;  %2944 = vmatmul.mubr.bf16.gmra.mxu0 %v4895_v3 }
 0x1e3   : > { %2854 = vmatprep.mubr.bf16.mxu1 %v4896_v34  ;;  %2951 = vmatprep.mubr.bf16.mxu0 %v4898_v8 }
 0x1ea   : > { %2855 = vmatmul.mubr.bf16.gmra.mxu1 %v4900_v35  ;;  %2952 = vmatmul.mubr.bf16.gmra.mxu0 %v4901_v13 }
 0x1eb   : > { %2862 = vmatprep.mubr.bf16.mxu1 %v4902_v36  ;;  %2959 = vmatprep.mubr.bf16.mxu0 %v4904_v18 }
 0x1f2   : > { %2863 = vmatmul.mubr.bf16.gmra.mxu1 %v4906_v37  ;;  %2960 = vmatmul.mubr.bf16.gmra.mxu0 %v4907_v23 }
 0x1f3   : > { %2870 = vmatprep.mubr.bf16.mxu1 %v4908_v28  ;;  %2967 = vmatprep.mubr.bf16.mxu0 %v4910_v33 }
 0x1fa   : > { %2871 = vmatmul.mubr.bf16.gmra.mxu1 %v4912_v38  ;;  %2968 = vmatmul.mubr.bf16.gmra.mxu0 %v4913_v39 }
 0x1fb   : > { %2975 = vmatprep.mubr.bf16.mxu0 %v4914_v40  ;;  %4504 = vmatprep.mubr.msk.bf16.mxu1 %vm2669_vm0, %v4916_v41 }
 0x202   : > { %2976 = vmatmul.mubr.bf16.gmra.mxu0 %v4917_v42  ;;  %4505 = vmatmul.mubr.msk.bf16.vlgmr.msra.gmra.mxu1 %vm2669_vm0, %v4918_v43 }
 0x203   : > { %2983 = vmatprep.mubr.bf16.mxu0 %v4919_v44  ;;  %4508 = vmatprep.mubr.msk.bf16.mxu1 %vm2669_vm0, %v4921_v45 }
 0x20a   : > { %2984 = vmatmul.mubr.bf16.gmra.mxu0 %v4922_v46  ;;  %4509 = vmatmul.mubr.msk.bf16.gmra.mxu1 %vm2669_vm0, %v4923_v47 }
 0x20b   : > { %2991 = vmatprep.mubr.bf16.mxu0 %v4924_v49  ;;  %4512 = vmatprep.mubr.msk.bf16.mxu1 %vm2669_vm0, %v4926_v50 }
 0x212   : > { %2992 = vmatmul.mubr.bf16.gmra.mxu0 %v4927_v51  ;;  %4513 = vmatmul.mubr.msk.bf16.gmra.mxu1 %vm2669_vm0, %v4928_v52 }
 0x213   : > { %2999 = vmatprep.mubr.bf16.mxu0 %v4929_v53  ;;  %4516 = vmatprep.mubr.msk.bf16.mxu1 %vm2669_vm0, %v4931_v54 }
 0x21a   : > { %3000 = vmatmul.mubr.bf16.gmra.mxu0 %v4932_v55  ;;  %4517 = vmatmul.mubr.msk.bf16.gmra.mxu1 %vm2669_vm0, %v4933_v56 }
 0x21b   : > { %3007 = vmatprep.mubr.bf16.mxu0 %v4934_v57  ;;  %4520 = vmatprep.mubr.msk.bf16.mxu1 %vm2669_vm0, %v4937_v58  ;;  %v6031_v57 = vld [vmem:[%s6310_s3] ss:$0 sm:$0xff] }
 0x222   : > { %3008 = vmatmul.mubr.bf16.gmra.mxu0 %v4936_v59  ;;  %4521 = vmatmul.mubr.msk.bf16.gmra.mxu1 %vm2669_vm0, %v4938_v60 }
 0x223   : > { %3015 = vmatprep.mubr.bf16.mxu0 %v4939_v61  ;;  %4524 = vmatprep.mubr.msk.bf16.mxu1 %vm2669_vm0, %v4945_v62 }
 0x22a   : > { %3016 = vmatmul.mubr.bf16.gmra.mxu0 %v4941_v63  ;;  %4525 = vmatmul.mubr.msk.bf16.gmra.mxu1 %vm2669_vm0, %v4946_v0 }
 0x22b   : > { %3023 = vmatprep.mubr.bf16.mxu0 %v4942_v1 }
 0x232   : > { %3024 = vmatmul.mubr.bf16.gmra.mxu0 %v4944_v2 }
 0x233   : > { %3031 = vmatprep.mubr.bf16.mxu0 %v4947_v4 }
 0x23a   : > { %3032 = vmatmul.mubr.bf16.gmra.mxu0 %v4949_v5 }
 0x23b   : > { %4496 = vmatprep.mubr.msk.bf16.mxu0 %vm2669_vm0, %v4950_v6 }
 0x242   : > { %v4260_v10 = vpop.f32.mrf.mxu1  ;;  %4497 = vmatmul.mubr.msk.bf16.vlgmr.msra.gmra.mxu0 %vm2669_vm0, %v4951_v7 }
 0x243   : > { %4500 = vmatprep.mubr.msk.bf16.mxu0 %vm2669_vm0, %v4952_v9 }
 0x244   : > { %v4261_v11 = vpop.f32.mrf.mxu1 }
 0x245   : > { %v4262_v12 = vadd.f32 %v4261_v11, %v4260_v10 }
 0x246   : > { %v4263_v14 = vpop.f32.mrf.mxu1 }
 0x247   : > { %v2753_v62 = vadd.f32 %v4262_v12, %v6031_v57 }
 0x248   : > { %v4264_v16 = vpop.f32.mrf.mxu1 }
 0x249   : > { %v4265_v17 = vadd.f32 %v4264_v16, %v4263_v14 }
 0x24a   : > { %v4266_v19 = vpop.f32.mrf.mxu1  ;;  %4501 = vmatmul.mubr.msk.bf16.gmra.mxu0 %vm2669_vm0, %v4953_v15 }
 0x24b   : > { %v2756_v7 = vadd.f32 %v4265_v17, %v6031_v57 }
 0x24c   : > { %v4267_v20 = vpop.f32.mrf.mxu1 }
 0x24d   : > { %v4268_v21 = vadd.f32 %v4267_v20, %v4266_v19 }
 0x24e   : > { %v4269_v22 = vpop.f32.mrf.mxu1 }
 0x24f   : > { %v2761_v19 = vadd.f32 %v4268_v21, %v6031_v57 }
 0x250   : > { %v4270_v24 = vpop.f32.mrf.mxu1 }
 0x251   : > { %v6002_v25 = vadd.f32 %v4270_v24, %v4269_v22 }
 0x252   : > { %v4272_v26 = vpop.f32.mrf.mxu1 }
 0x254   : > { %v4273_v27 = vpop.f32.mrf.mxu1 }
 0x255   : > { %v6004_v29 = vadd.f32 %v4273_v27, %v4272_v26 }
 0x256   : > { %v4275_v30 = vpop.f32.mrf.mxu1 }
 0x258   : > { %v4276_v48 = vpop.f32.mrf.mxu1 }
 0x259   : > { %v6006_v31 = vadd.f32 %v4276_v48, %v4275_v30  ;;  %v2764_v48 = vadd.f32 %v6002_v25, %v6031_v57 }
 0x25a   : > { %v4278_v32 = vpop.f32.mrf.mxu1 }
 0x25c   : > { %v4279_v3 = vpop.f32.mrf.mxu1 }
 0x25d   : > { %v6008_v34 = vadd.f32 %v4279_v3, %v4278_v32 }
 0x25e   : > { %v4281_v8 = vpop.f32.mrf.mxu1 }
 0x260   : > { %v4282_v35 = vpop.f32.mrf.mxu1 }
 0x261   : > { %v6010_v13 = vadd.f32 %v4282_v35, %v4281_v8 }
 0x262   : > { %v4284_v36 = vpop.f32.mrf.mxu1 }
 0x264   : > { %v4285_v18 = vpop.f32.mrf.mxu1 }
 0x265   : > { %v6012_v37 = vadd.f32 %v4285_v18, %v4284_v36 }
 0x266   : > { %v4287_v23 = vpop.f32.mrf.mxu1 }
 0x268   : > { %v4288_v28 = vpop.f32.mrf.mxu1 }
 0x269   : > { %v6014_v33 = vadd.f32 %v4288_v28, %v4287_v23  ;;  %v2769_v23 = vadd.f32 %v6004_v29, %v6031_v57 }
 0x26a   : > { %v4290_v38 = vpop.f32.mrf.mxu1 }
 0x26c   : > { %v4291_v39 = vpop.f32.mrf.mxu1 }
 0x26d   : > { %v6016_v40 = vadd.f32 %v4291_v39, %v4290_v38 }
 0x26e   : > { %v4293_v41 = vpop.f32.mrf.mxu1 }
 0x270   : > { %v4294_v42 = vpop.f32.mrf.mxu1 }
 0x271   : > { %v6018_v43 = vadd.f32 %v4294_v42, %v4293_v41 }
 0x272   : > { %v4296_v44 = vpop.f32.mrf.mxu1 }
 0x274   : > { %v4297_v45 = vpop.f32.mrf.mxu1 }
 0x275   : > { %v6020_v46 = vadd.f32 %v4297_v45, %v4296_v44  ;;  %v2772_v45 = vadd.f32 %v6006_v31, %v6031_v57 }
 0x276   : > { %v4299_v47 = vpop.f32.mrf.mxu1 }
 0x278   : > { %v4300_v49 = vpop.f32.mrf.mxu1 }
 0x279   : > { %v6022_v50 = vadd.f32 %v4300_v49, %v4299_v47 }
 0x27a   : > { %v4302_v51 = vpop.f32.mrf.mxu1 }
 0x27c   : > { %v4303_v52 = vpop.f32.mrf.mxu1 }
 0x27d   : > { %v6024_v53 = vadd.f32 %v4303_v52, %v4302_v51 }
 0x27e   : > { %v4305_v54 = vpop.f32.mrf.mxu1 }
 0x280   : > { %v4306_v55 = vpop.f32.mrf.mxu1 }
 0x281   : > { %v6026_v56 = vadd.f32 %v4306_v55, %v4305_v54 }
 0x282   : > { %v4308_v58 = vpop.f32.mrf.mxu1  ;;  %v4372_v59 = vpop.f32.mrf.mxu0 }
 0x284   : > { %v4309_v60 = vpop.f32.mrf.mxu1  ;;  %v4373_v61 = vpop.f32.mrf.mxu0 }
 0x285   : > { %v6034_v63 = vadd.f32 %v4309_v60, %v4308_v58  ;;  %v4374_v0 = vadd.f32 %v4373_v61, %v4372_v59  ;;  %v2777_v58 = vadd.f32 %v6008_v34, %v6031_v57 }
 0x286   : > { %v4311_v1 = vpop.f32.mrf.mxu1  ;;  %v4375_v2 = vpop.f32.mrf.mxu0 }
 0x287   : > { %v6036_v4 = vadd.f32 %v4374_v0, %v2753_v62 }
 0x288   : > { %v4312_v5 = vpop.f32.mrf.mxu1  ;;  %v4376_v6 = vpop.f32.mrf.mxu0 }
 0x289   : > { %v6039_v9 = vadd.f32 %v4312_v5, %v4311_v1  ;;  %v4377_v10 = vadd.f32 %v4376_v6, %v4375_v2  ;;  %v2780_v1 = vadd.f32 %v6010_v13, %v6031_v57 }
 0x28a   : > { %v4314_v11 = vpop.f32.mrf.mxu1  ;;  %v4378_v14 = vpop.f32.mrf.mxu0 }
 0x28b   : > { %v6041_v15 = vadd.f32 %v4377_v10, %v2756_v7 }
 0x28c   : > { %v4315_v16 = vpop.f32.mrf.mxu1  ;;  %v4379_v12 = vpop.f32.mrf.mxu0 }
 0x28d   : > { %6320 = vst [vmem:[#allocation9_spill] sm:$0xff] %v6041_v15  ;;  %v6044_v20 = vadd.f32 %v4315_v16, %v4314_v11  ;;  %v4380_v22 = vadd.f32 %v4379_v12, %v4378_v14 }
 0x28e   : > { %v4317_v24 = vpop.f32.mrf.mxu1  ;;  %v4381_v26 = vpop.f32.mrf.mxu0 }
 0x28f   : > { %v6046_v27 = vadd.f32 %v4380_v22, %v2761_v19 }
 0x290   : > { %v4318_v30 = vpop.f32.mrf.mxu1  ;;  %v4382_v17 = vpop.f32.mrf.mxu0 }
 0x291   : > { %v6050_v32 = vadd.f32 %v4318_v30, %v4317_v24  ;;  %v4383_v3 = vadd.f32 %v4382_v17, %v4381_v26 }
 0x292   : > { %v4320_v8 = vpop.f32.mrf.mxu1  ;;  %v4384_v35 = vpop.f32.mrf.mxu0 }
 0x293   : > { %v6052_v36 = vadd.f32 %v4383_v3, %v2764_v48 }
 0x294   : > { %v4321_v21 = vpop.f32.mrf.mxu1  ;;  %v4385_v18 = vpop.f32.mrf.mxu0 }
 0x295   : > { %v6056_v28 = vadd.f32 %v4321_v21, %v4320_v8  ;;  %v4386_v38 = vadd.f32 %v4385_v18, %v4384_v35 }
 0x296   : > { %v4323_v39 = vpop.f32.mrf.mxu1  ;;  %v4387_v41 = vpop.f32.mrf.mxu0 }
 0x297   : > { %v6058_v42 = vadd.f32 %v4386_v38, %v2769_v23 }
 0x298   : > { %v4324_v25 = vpop.f32.mrf.mxu1  ;;  %v4388_v44 = vpop.f32.mrf.mxu0 }
 0x299   : > { %6321 = vst [vmem:[#allocation10_spill] sm:$0xff] %v6058_v42  ;;  %v6062_v47 = vadd.f32 %v4324_v25, %v4323_v39  ;;  %v4389_v49 = vadd.f32 %v4388_v44, %v4387_v41 }
 0x29a   : > { %v6064_v51 = vpop.f32.mrf.mxu1  ;;  %v4390_v52 = vpop.f32.mrf.mxu0 }
 0x29b   : > { %v6066_v54 = vadd.f32 %v4389_v49, %v2772_v45 }
 0x29c   : > { %v6068_v29 = vpop.f32.mrf.mxu1  ;;  %v4391_v55 = vpop.f32.mrf.mxu0 }
 0x29d   : > { %6322 = vst [vmem:[#allocation11_spill] sm:$0xff] %v6066_v54  ;;  %v4392_v59 = vadd.f32 %v4391_v55, %v4390_v52  ;;  %v2788_v54 = vadd.f32 %v6014_v33, %v6031_v57 }
 0x29e   : > { %v6072_v60 = vpop.f32.mrf.mxu1  ;;  %v4393_v61 = vpop.f32.mrf.mxu0 }
 0x29f   : > { %v6074_v62 = vadd.f32 %v4392_v59, %v2777_v58  ;;  %v2793_v58 = vadd.f32 %v6016_v40, %v6031_v57  ;;  %v2804_v40 = vadd.f32 %v6022_v50, %v6031_v57 }
 0x2a0   : > { %v6076_v31 = vpop.f32.mrf.mxu1  ;;  %v4394_v0 = vpop.f32.mrf.mxu0 }
 0x2a1   : > { %6323 = vst [vmem:[#allocation12_spill] sm:$0xff] %v6074_v62  ;;  %v4395_v2 = vadd.f32 %v4394_v0, %v4393_v61  ;;  %v2785_v61 = vadd.f32 %v6012_v37, %v6031_v57  ;;  %v2809_v37 = vadd.f32 %v6024_v53, %v6031_v57  ;;  %v6144_v53 = vadd.f32 %v6050_v32, %v6031_v57 }
 0x2a2   : > { %v6080_v5 = vpop.f32.mrf.mxu1  ;;  %v4396_v6 = vpop.f32.mrf.mxu0 }
 0x2a3   : > { %v6082_v7 = vadd.f32 %v4395_v2, %v2780_v1 }
 0x2a4   : > { %v6084_v10 = vpop.f32.mrf.mxu1  ;;  %v4397_v34 = vpop.f32.mrf.mxu0 }
 0x2a5   : > { %6324 = vst [vmem:[#allocation13_spill] sm:$0xff] %v6082_v7  ;;  %v4398_v59 = vadd.f32 %v4397_v34, %v4396_v6  ;;  %v2812_v6 = vadd.f32 %v6026_v56, %v6031_v57  ;;  %v6132_v34 = vadd.f32 %v6034_v63, %v6031_v57  ;;  %v4328_v56 = vadd.f32 %v6068_v29, %v6064_v51 }
 0x2a6   : > { %v6086_v11 = vpop.f32.mrf.mxu1  ;;  %v4399_v14 = vpop.f32.mrf.mxu0 }
 0x2a8   : > { %v6088_v16 = vpop.f32.mrf.mxu1  ;;  %v4400_v12 = vpop.f32.mrf.mxu0 }
 0x2a9   : > { %v4401_v63 = vadd.f32 %v4400_v12, %v4399_v14 }
 0x2aa   : > { %v6090_v19 = vpop.f32.mrf.mxu1  ;;  %v4402_v22 = vpop.f32.mrf.mxu0 }
 0x2ac   : > { %v6092_v24 = vpop.f32.mrf.mxu1  ;;  %v4403_v13 = vpop.f32.mrf.mxu0 }
 0x2ad   : > { %v4404_v49 = vadd.f32 %v4403_v13, %v4402_v22  ;;  %v2796_v22 = vadd.f32 %v6018_v43, %v6031_v57  ;;  %v2801_v13 = vadd.f32 %v6020_v46, %v6031_v57  ;;  %v6136_v43 = vadd.f32 %v6039_v9, %v6031_v57 }
 0x2ae   : > { %v6094_v26 = vpop.f32.mrf.mxu1  ;;  %v4405_v30 = vpop.f32.mrf.mxu0  ;;  %v6140_v46 = vadd.f32 %v6044_v20, %v6031_v57  ;;  %v6150_v20 = vadd.f32 %v6056_v28, %v6031_v57 }
 0x2af   : > { %v2954_v7 = vadd.f32 %v4404_v49, %v2793_v58 }
 0x2b0   : > { %v6096_v17 = vpop.f32.mrf.mxu1  ;;  %v4406_v48 = vpop.f32.mrf.mxu0 }
 0x2b1   : > { %v4407_v0 = vadd.f32 %v4406_v48, %v4405_v30  ;;  %v2946_v48 = vadd.f32 %v4398_v59, %v2785_v61 }
 0x2b2   : > { %v6098_v3 = vpop.f32.mrf.mxu1  ;;  %v4408_v8 = vpop.f32.mrf.mxu0 }
 0x2b3   : > { %v2957_v42 = vadd.f32 %v4407_v0, %v2796_v22  ;;  %v2949_v22 = vadd.f32 %v4401_v63, %v2788_v54 }
 0x2b4   : > { %v6100_v35 = vpop.f32.mrf.mxu1  ;;  %v4409_v21 = vpop.f32.mrf.mxu0 }
 0x2b5   : > { %v4410_v32 = vadd.f32 %v4409_v21, %v4408_v8 }
 0x2b6   : > { %v6102_v18 = vpop.f32.mrf.mxu1  ;;  %v4411_v23 = vpop.f32.mrf.mxu0 }
 0x2b8   : > { %v6104_v38 = vpop.f32.mrf.mxu1  ;;  %v4412_v39 = vpop.f32.mrf.mxu0 }
 0x2b9   : > { %v4413_v59 = vadd.f32 %v4412_v39, %v4411_v23 }
 0x2ba   : > { %v6106_v41 = vpop.f32.mrf.mxu1  ;;  %v4414_v25 = vpop.f32.mrf.mxu0 }
 0x2bc   : > { %v6108_v44 = vpop.f32.mrf.mxu1  ;;  %v4415_v45 = vpop.f32.mrf.mxu0 }
 0x2bd   : > { %v4416_v62 = vadd.f32 %v4415_v45, %v4414_v25  ;;  %v6157_v25 = vadd.f32 %v4328_v56, %v6031_v57  ;;  %v4331_v45 = vadd.f32 %v6076_v31, %v6072_v60 }
 0x2be   : > { %v6110_v52 = vpop.f32.mrf.mxu1  ;;  %v4417_v55 = vpop.f32.mrf.mxu0 }
 0x2bf   : > { %v2970_v21 = vadd.f32 %v4416_v62, %v2809_v37 }
 0x2c0   : > { %v6116_v1 = vpop.f32.mrf.mxu1  ;;  %v4418_v2 = vpop.f32.mrf.mxu0 }
 0x2c1   : > { %v4419_v23 = vadd.f32 %v4418_v2, %v4417_v55 }
 0x2c2   : > { %v4420_v33 = vpop.f32.mrf.mxu0  ;;  %v4506_v30 = vpop.f32.mrf.mxu1 }
 0x2c3   : > { %v3115_v50 = vadd.f32 %v4506_v30, %v2954_v7  ;;  %v6154_v7 = vadd.f32 %v6062_v47, %v6031_v57 }
 0x2c4   : > { %v4421_v49 = vpop.f32.mrf.mxu0  ;;  %v3106_v58 = vpop.f32.mrf.mxu1 }
 0x2c5   : > { %vm3211_vm1 = vcmp.ge.f32.partialorder %v3115_v50, 0.0  ;;  %v3243_v9 = vmul.f32 0.01, %v3115_v50  ;;  %v3107_v15 = vadd.f32 %v3106_v58, %v2946_v48  ;;  %v4422_v55 = vadd.f32 %v4421_v49, %v4420_v33 }
 0x2c6   : > { %v4423_v61 = vpop.f32.mrf.mxu0  ;;  %v4507_v51 = vpop.f32.mrf.mxu1 }
 0x2c7   : > { %v3275_v29 = vsel %vm3211_vm1, %v3115_v50, %v3243_v9  ;;  %vm3209_vm2 = vcmp.ge.f32.partialorder %v3107_v15, 0.0  ;;  %v3241_v14 = vmul.f32 0.01, %v3107_v15  ;;  %v3118_v12 = vadd.f32 %v4507_v51, %v2957_v42 }
 0x2c8   : > { %v3307_v28 = vmul.f32 0.5, %v3275_v29  ;;  %v4424_v0 = vpop.f32.mrf.mxu0  ;;  %v3109_v30 = vpop.f32.mrf.mxu1  ;;  %v2962_v9 = vadd.f32 %v4410_v32, %v2801_v13  ;;  %v2965_v51 = vadd.f32 %v4413_v59, %v2804_v40 }
 0x2c9   : > { %v3273_v47 = vsel %vm3209_vm2, %v3107_v15, %v3241_v14  ;;  %vm3212_vm3 = vcmp.ge.f32.partialorder %v3118_v12, 0.0  ;;  %v3244_v8 = vmul.f32 0.01, %v3118_v12  ;;  %v3110_v50 = vadd.f32 %v3109_v30, %v2949_v22 }
 0x2ca   : > { %4954 = vtanh.f32 %v3307_v28  ;;  %v3305_v39 = vmul.f32 0.5, %v3273_v47  ;;  %v4426_v48 = vpop.f32.mrf.mxu0  ;;  %v4510_v42 = vpop.f32.mrf.mxu1  ;;  %v2973_v14 = vadd.f32 %v4419_v23, %v2812_v6  ;;  %v4425_v40 = vadd.f32 %v4424_v0, %v4423_v61 }
 0x2cb   : > { %v3276_v58 = vsel %vm3212_vm3, %v3118_v12, %v3244_v8  ;;  %v3131_v56 = vadd.f32 %v4510_v42, %v2970_v21  ;;  %vm3210_vm4 = vcmp.ge.f32.partialorder %v3110_v50, 0.0  ;;  %v3242_v31 = vmul.f32 0.01, %v3110_v50 }
 0x2cc   : > { %4956 = vtanh.f32 %v3305_v39  ;;  %v3308_v60 = vmul.f32 0.5, %v3276_v58  ;;  %v4427_v54 = vpop.f32.mrf.mxu0  ;;  %v3122_v63 = vpop.f32.mrf.mxu1  ;;  %v2978_v58 = vadd.f32 %v4422_v55, %v6132_v34 }
 0x2cd   : > { %vm3215_vm5 = vcmp.ge.f32.partialorder %v3131_v56, 0.0  ;;  %v3247_v15 = vmul.f32 0.01, %v3131_v56  ;;  %v4428_v29 = vadd.f32 %v4427_v54, %v4426_v48  ;;  %v3123_v62 = vadd.f32 %v3122_v63, %v2962_v9 }
 0x2ce   : > { %4958 = vtanh.f32 %v3308_v60  ;;  %v3274_v2 = vsel %vm3210_vm4, %v3110_v50, %v3242_v31  ;;  %v4429_v37 = vpop.f32.mrf.mxu0  ;;  %v4511_v28 = vpop.f32.mrf.mxu1  ;;  %v6163_v48 = vadd.f32 %v4331_v45, %v6031_v57  ;;  %v4334_v54 = vadd.f32 %v6084_v10, %v6080_v5 }
 0x2cf   : > { %v3306_v12 = vmul.f32 0.5, %v3274_v2  ;;  %v3279_v22 = vsel %vm3215_vm5, %v3131_v56, %v3247_v15  ;;  %vm3213_vm6 = vcmp.ge.f32.partialorder %v3123_v62, 0.0  ;;  %v3245_v13 = vmul.f32 0.01, %v3123_v62 }
 0x2d0   : > { %v3311_v32 = vmul.f32 0.5, %v3279_v22  ;;  %v3134_v59 = vadd.f32 %v4511_v28, %v2973_v14  ;;  %v4430_v30 = vpop.f32.mrf.mxu0  ;;  %v3125_v47 = vpop.f32.mrf.mxu1  ;;  %v2986_v8 = vadd.f32 %v4428_v29, %v6140_v46 }
 0x2d1   : > { %4960 = vtanh.f32 %v3306_v12  ;;  %v3277_v21 = vsel %vm3213_vm6, %v3123_v62, %v3245_v13  ;;  %v4431_v39 = vadd.f32 %v4430_v30, %v4429_v37  ;;  %v3126_v33 = vadd.f32 %v3125_v47, %v2965_v51 }
 0x2d2   : > { %4962 = vtanh.f32 %v3311_v32  ;;  %v3309_v49 = vmul.f32 0.5, %v3277_v21  ;;  %vm3216_vm7 = vcmp.ge.f32.partialorder %v3134_v59, 0.0  ;;  %v3248_v6 = vmul.f32 0.01, %v3134_v59  ;;  %v4432_v23 = vpop.f32.mrf.mxu0  ;;  %v4514_v50 = vpop.f32.mrf.mxu1 }
 0x2d3   : > { %vm3214_vm8 = vcmp.ge.f32.partialorder %v3126_v33, 0.0  ;;  %v3246_v61 = vmul.f32 0.01, %v3126_v33  ;;  %v3147_v0 = vadd.f32 %v4514_v50, %v2986_v8  ;;  %v2989_v9 = vadd.f32 %v4431_v39, %v6144_v53 }
 0x2d4   : > { %4964 = vtanh.f32 %v3309_v49  ;;  %v3280_v42 = vsel %vm3216_vm7, %v3134_v59, %v3248_v6  ;;  %v4433_v46 = vpop.f32.mrf.mxu0  ;;  %v3138_v56 = vpop.f32.mrf.mxu1  ;;  %v2981_v62 = vadd.f32 %v4425_v40, %v6136_v43  ;;  %v6172_v8 = vadd.f32 %v4334_v54, %v6031_v57 }
 0x2d5   : > { %v3312_v51 = vmul.f32 0.5, %v3280_v42  ;;  %v3278_v60 = vsel %vm3214_vm8, %v3126_v33, %v3246_v61  ;;  %vm3219_vm9 = vcmp.ge.f32.partialorder %v3147_v0, 0.0  ;;  %v3251_v31 = vmul.f32 0.01, %v3147_v0 }
 0x2d6   : > { %v3310_v45 = vmul.f32 0.5, %v3278_v60  ;;  %v3139_v63 = vadd.f32 %v3138_v56, %v2978_v58  ;;  %v4435_v15 = vpop.f32.mrf.mxu0  ;;  %v4515_v29 = vpop.f32.mrf.mxu1  ;;  %v4434_v55 = vadd.f32 %v4433_v46, %v4432_v23 }
 0x2d7   : > { %v4955_v2 = vpop.eup %4954  ;;  %4966 = vtanh.f32 %v3312_v51  ;;  %v3283_v34 = vsel %vm3219_vm9, %v3147_v0, %v3251_v31  ;;  %v3150_v37 = vadd.f32 %v4515_v29, %v2989_v9 }
 0x2d8   : > { %v3371_v53 = vmul.f32 0.5, %v4955_v2  ;;  %4968 = vtanh.f32 %v3310_v45  ;;  %v3315_v14 = vmul.f32 0.5, %v3283_v34  ;;  %vm3217_vm10 = vcmp.ge.f32.partialorder %v3139_v63, 0.0  ;;  %v4436_v28 = vpop.f32.mrf.mxu0  ;;  %v3141_v12 = vpop.f32.mrf.mxu1 }
 0x2d9   : > { %v4957_v22 = vpop.eup %4956  ;;  %v3249_v5 = vmul.f32 0.01, %v3139_v63  ;;  %vm3220_vm11 = vcmp.ge.f32.partialorder %v3150_v37, 0.0  ;;  %v3252_v10 = vmul.f32 0.01, %v3150_v37  ;;  %v4437_v13 = vadd.f32 %v4436_v28, %v4435_v15 }
 0x2da   : > { %v3403_v32 = vadd.f32 0.5, %v3371_v53  ;;  %v3369_v59 = vmul.f32 0.5, %v4957_v22  ;;  %4970 = vtanh.f32 %v3315_v14  ;;  %v3142_v43 = vadd.f32 %v3141_v12, %v2981_v62  ;;  %v4438_v40 = vpop.f32.mrf.mxu0  ;;  %v4518_v30 = vpop.f32.mrf.mxu1 }
 0x2db   : > { %v4959_v47 = vpop.eup %4958  ;;  %v3281_v21 = vsel %vm3217_vm10, %v3139_v63, %v3249_v5  ;;  %v3284_v39 = vsel %vm3220_vm11, %v3150_v37, %v3252_v10  ;;  %v2994_v33 = vadd.f32 %v4434_v55, %v6150_v20  ;;  %v4337_v20 = vadd.f32 %v6088_v16, %v6086_v11 }
 0x2dc   : > { %3435 = vst [vmem:[%s6178_s20 + $0x50] sm:$0xff] %v3403_v32  ;;  %v3401_v49 = vadd.f32 0.5, %v3369_v59  ;;  %v3372_v6 = vmul.f32 0.5, %v4959_v47  ;;  %v3313_v23 = vmul.f32 0.5, %v3281_v21  ;;  %v3316_v50 = vmul.f32 0.5, %v3284_v39  ;;  %v4439_v61 = vpop.f32.mrf.mxu0  ;;  %v3154_v0 = vpop.f32.mrf.mxu1 }
 0x2dd   : > { %vm3218_vm12 = vcmp.ge.f32.partialorder %v3142_v43, 0.0  ;;  %v3250_v42 = vmul.f32 0.01, %v3142_v43  ;;  %v4440_v46 = vadd.f32 %v4439_v61, %v4438_v40  ;;  %v3155_v58 = vadd.f32 %v3154_v0, %v2994_v33 }
 0x2de   : > { %v4961_v56 = vpop.eup %4960  ;;  %3433 = vst [vmem:[%s6178_s20 + $0x40] sm:$0xff] %v3401_v49  ;;  %v3404_v9 = vadd.f32 0.5, %v3372_v6  ;;  %4972 = vtanh.f32 %v3313_v23  ;;  %v4441_v51 = vpop.f32.mrf.mxu0  ;;  %v2997_v31 = vadd.f32 %v4437_v13, %v6154_v7  ;;  %v2852_v59 = vadd.f32 %v4337_v20, %v6031_v57 }
 0x2df   : > { %v4519_v60 = vpop.f32.mrf.mxu1  ;;  %v4963_v54 = vpop.eup %4962  ;;  %v3370_v45 = vmul.f32 0.5, %v4961_v56  ;;  %4974 = vtanh.f32 %v3316_v50  ;;  %v3282_v63 = vsel %vm3218_vm12, %v3142_v43, %v3250_v42  ;;  %v3002_v15 = vadd.f32 %v4440_v46, %v6157_v25 }
 0x2e0   : > { %3436 = vst [vmem:[%s6178_s20 + $0x58] sm:$0xff] %v3404_v9  ;;  %v3375_v29 = vmul.f32 0.5, %v4963_v54  ;;  %v3314_v62 = vmul.f32 0.5, %v3282_v63  ;;  %vm3221_vm13 = vcmp.ge.f32.partialorder %v3155_v58, 0.0  ;;  %v3253_v2 = vmul.f32 0.01, %v3155_v58  ;;  %v4442_v11 = vpop.f32.mrf.mxu0 }
 0x2e1   : > { %v3157_v16 = vpop.f32.mrf.mxu1  ;;  %v4965_v34 = vpop.eup %4964  ;;  %v3402_v55 = vadd.f32 0.5, %v3370_v45  ;;  %v3163_v37 = vadd.f32 %v4518_v30, %v3002_v15  ;;  %v4443_v53 = vadd.f32 %v4442_v11, %v4441_v51 }
 0x2e2   : > { %v3158_v7 = vadd.f32 %v3157_v16, %v2997_v31  ;;  %v3407_v14 = vadd.f32 0.5, %v3375_v29  ;;  %v3373_v28 = vmul.f32 0.5, %v4965_v34  ;;  %4976 = vtanh.f32 %v3314_v62  ;;  %v4444_v22 = vpop.f32.mrf.mxu0 }
 0x2e3   : > { %v3285_v12 = vsel %vm3221_vm13, %v3155_v58, %v3253_v2  ;;  %v6187_v25 = vpop.f32.mrf.mxu1  ;;  %3434 = vst [vmem:[%s6178_s20 + $0x48] sm:$0xff] %v3402_v55  ;;  %vm3223_vm14 = vcmp.ge.f32.partialorder %v3163_v37, 0.0  ;;  %v3255_v5 = vmul.f32 0.01, %v3163_v37  ;;  %v3005_v13 = vadd.f32 %v4443_v53, %v6163_v48 }
 0x2e4   : > { %v3317_v10 = vmul.f32 0.5, %v3285_v12  ;;  %v4967_v32 = vpop.eup %4966  ;;  %3439 = vst [vmem:[%s6178_s20 + $0x70] sm:$0xff] %v3407_v14  ;;  %v3405_v43 = vadd.f32 0.5, %v3373_v28  ;;  %vm3222_vm15 = vcmp.ge.f32.partialorder %v3158_v7, 0.0  ;;  %v3254_v40 = vmul.f32 0.01, %v3158_v7  ;;  %v4445_v30 = vpop.f32.mrf.mxu0 }
 0x2e5   : > { %v3170_v47 = vpop.f32.mrf.mxu1  ;;  %v4969_v21 = vpop.eup %4968  ;;  %v3376_v39 = vmul.f32 0.5, %v4967_v32  ;;  %v3287_v33 = vsel %vm3223_vm14, %v3163_v37, %v3255_v5  ;;  %v3166_v49 = vadd.f32 %v4519_v60, %v3005_v13  ;;  %v4446_v48 = vadd.f32 %v4445_v30, %v4444_v22 }
 0x2e6   : > { %4978 = vtanh.f32 %v3317_v10  ;;  %3437 = vst [vmem:[%s6178_s20 + $0x60] sm:$0xff] %v3405_v43  ;;  %v3374_v6 = vmul.f32 0.5, %v4969_v21  ;;  %v3319_v23 = vmul.f32 0.5, %v3287_v33  ;;  %v3286_v50 = vsel %vm3222_vm15, %v3158_v7, %v3254_v40  ;;  %v4447_v61 = vpop.f32.mrf.mxu0 }
 0x2e7   : > { %v6194_v0 = vpop.f32.mrf.mxu1  ;;  %v4971_v42 = vpop.eup %4970  ;;  %v3408_v46 = vadd.f32 0.5, %v3376_v39  ;;  %vm3224_vm0 = vcmp.ge.f32.partialorder %v3166_v49, 0.0  ;;  %v3256_v58 = vmul.f32 0.01, %v3166_v49  ;;  %v3318_v56 = vmul.f32 0.5, %v3286_v50 }
 0x2e8   : > { %v3406_v20 = vadd.f32 0.5, %v3374_v6  ;;  %v3379_v9 = vmul.f32 0.5, %v4971_v42  ;;  %4980 = vtanh.f32 %v3319_v23  ;;  %v4448_v51 = vpop.f32.mrf.mxu0  ;;  %v3010_v60 = vadd.f32 %v4446_v48, %v6172_v8 }
 0x2e9   : > { %v4340_v31 = vadd.f32 %v6092_v24, %v6090_v19  ;;  %3440 = vst [vmem:[%s6178_s20 + $0x78] sm:$0xff] %v3408_v46  ;;  %v3288_v54 = vsel %vm3224_vm0, %v3166_v49, %v3256_v58  ;;  %4982 = vtanh.f32 %v3318_v56  ;;  %v4449_v45 = vadd.f32 %v4448_v51, %v4447_v61  ;;  %v3173_v2 = vpop.f32.mrf.mxu1 }
 0x2ea   : > { %3438 = vst [vmem:[%s6178_s20 + $0x68] sm:$0xff] %v3406_v20  ;;  %v3411_v63 = vadd.f32 0.5, %v3379_v9  ;;  %v3320_v15 = vmul.f32 0.5, %v3288_v54  ;;  %v3171_v29 = vadd.f32 %v3170_v47, %v3010_v60  ;;  %v4450_v62 = vpop.f32.mrf.mxu0  ;;  %v4343_v14 = vadd.f32 %v6096_v17, %v6094_v26 }
 0x2eb   : > { %v4973_v11 = vpop.eup %4972  ;;  %v3013_v16 = vadd.f32 %v4449_v45, %v2852_v59  ;;  %v2857_v19 = vadd.f32 %v4340_v31, %v6031_v57  ;;  %v6205_v5 = vpop.f32.mrf.mxu1  ;;  %v4346_v43 = vadd.f32 %v6100_v35, %v6098_v3  ;;  %v4349_v61 = vadd.f32 %v6104_v38, %v6102_v18 }
 0x2ec   : > { %v4975_v34 = vpop.eup %4974  ;;  %3443 = vst [vmem:[%s6178_s20 + $0x90] sm:$0xff] %v3411_v63  ;;  %v3377_v55 = vmul.f32 0.5, %v4973_v11  ;;  %4984 = vtanh.f32 %v3320_v15  ;;  %vm3225_vm1 = vcmp.ge.f32.partialorder %v3171_v29, 0.0  ;;  %v3257_v8 = vmul.f32 0.01, %v3171_v29  ;;  %v4451_v37 = vpop.f32.mrf.mxu0 }
 0x2ed   : > { %v3380_v24 = vmul.f32 0.5, %v4975_v34  ;;  %v4452_v53 = vadd.f32 %v4451_v37, %v4450_v62  ;;  %v3174_v7 = vadd.f32 %v3173_v2, %v3013_v16  ;;  %v2860_v39 = vadd.f32 %v4343_v14, %v6031_v57  ;;  %v3186_v23 = vpop.f32.mrf.mxu1 }
 0x2ee   : > { %v3409_v28 = vadd.f32 0.5, %v3377_v55  ;;  %v3289_v12 = vsel %vm3225_vm1, %v3171_v29, %v3257_v8  ;;  %v4453_v22 = vpop.f32.mrf.mxu0  ;;  %v2865_v48 = vadd.f32 %v4346_v43, %v6031_v57  ;;  %v4352_v18 = vadd.f32 %v6108_v44, %v6106_v41 }
 0x2ef   : > { %v4977_v10 = vpop.eup %4976  ;;  %v3412_v13 = vadd.f32 0.5, %v3380_v24  ;;  %v3321_v32 = vmul.f32 0.5, %v3289_v12  ;;  %v3018_v59 = vadd.f32 %v4452_v53, %v2857_v19  ;;  %vm3226_vm2 = vcmp.ge.f32.partialorder %v3174_v7, 0.0  ;;  %v6218_v45 = vpop.f32.mrf.mxu1 }
 0x2f0   : > { %3441 = vst [vmem:[%s6178_s20 + $0x80] sm:$0xff] %v3409_v28  ;;  %v3378_v40 = vmul.f32 0.5, %v4977_v10  ;;  %v3258_v30 = vmul.f32 0.01, %v3174_v7  ;;  %v4454_v47 = vpop.f32.mrf.mxu0  ;;  %v2868_v11 = vadd.f32 %v4349_v61, %v6031_v57  ;;  %v2873_v53 = vadd.f32 %v4352_v18, %v6031_v57  ;;  %v6325_v18 = vld [vmem:[#allocation9_spill] sm:$0xff] }
 0x2f1   : > { %3444 = vst [vmem:[%s6178_s20 + $0x98] sm:$0xff] %v3412_v13  ;;  %4986 = vtanh.f32 %v3321_v32  ;;  %v3179_v26 = vadd.f32 %v6187_v25, %v3018_v59  ;;  %v4455_v17 = vadd.f32 %v4454_v47, %v4453_v22  ;;  %v3189_v41 = vpop.f32.mrf.mxu1 }
 0x2f2   : > { %v3410_v33 = vadd.f32 0.5, %v3378_v40  ;;  %v3290_v49 = vsel %vm3226_vm2, %v3174_v7, %v3258_v30  ;;  %v4456_v6 = vpop.f32.mrf.mxu0  ;;  %v4355_v7 = vadd.f32 %v6116_v1, %v6110_v52 }
 0x2f3   : > { %v4979_v21 = vpop.eup %4978  ;;  %vm3227_vm3 = vcmp.ge.f32.partialorder %v3179_v26, 0.0  ;;  %v3259_v3 = vmul.f32 0.01, %v3179_v26  ;;  %v3322_v35 = vmul.f32 0.5, %v3290_v49  ;;  %v3021_v25 = vadd.f32 %v4455_v17, %v2860_v39 }
 0x2f4   : > { %v3381_v50 = vmul.f32 0.5, %v4979_v21  ;;  %3442 = vst [vmem:[%s6178_s20 + $0x88] sm:$0xff] %v3410_v33  ;;  %v4457_v42 = vpop.f32.mrf.mxu0  ;;  %v2876_v47 = vadd.f32 %v4355_v7, %v6031_v57 }
 0x2f5   : > { %v4981_v46 = vpop.eup %4980  ;;  %v3291_v56 = vsel %vm3227_vm3, %v3179_v26, %v3259_v3  ;;  %4988 = vtanh.f32 %v3322_v35  ;;  %v4458_v20 = vadd.f32 %v4457_v42, %v4456_v6  ;;  %v3182_v31 = vadd.f32 %v6194_v0, %v3021_v25 }
 0x2f6   : > { %v3413_v58 = vadd.f32 0.5, %v3381_v50  ;;  %v4983_v9 = vpop.eup %4982  ;;  %v3383_v51 = vmul.f32 0.5, %v4981_v46  ;;  %v3323_v60 = vmul.f32 0.5, %v3291_v56  ;;  %v4459_v54 = vpop.f32.mrf.mxu0 }
 0x2f7   : > { %v3382_v38 = vmul.f32 0.5, %v4983_v9  ;;  %v3026_v63 = vadd.f32 %v4458_v20, %v2865_v48  ;;  %vm3228_vm4 = vcmp.ge.f32.partialorder %v3182_v31, 0.0  ;;  %v3260_v29 = vmul.f32 0.01, %v3182_v31 }
 0x2f8   : > { %3445 = vst [vmem:[%s6178_s20 + $0xa0] sm:$0xff] %v3413_v58  ;;  %v3415_v15 = vadd.f32 0.5, %v3383_v51  ;;  %4990 = vtanh.f32 %v3323_v60  ;;  %v4460_v62 = vpop.f32.mrf.mxu0 }
 0x2f9   : > { %v4985_v2 = vpop.eup %4984  ;;  %v3414_v0 = vadd.f32 0.5, %v3382_v38  ;;  %v4461_v16 = vadd.f32 %v4460_v62, %v4459_v54  ;;  %v3187_v34 = vadd.f32 %v3186_v23, %v3026_v63  ;;  %v3292_v8 = vsel %vm3228_vm4, %v3182_v31, %v3260_v29 }
 0x2fa   : > { %3447 = vst [vmem:[%s6178_s20 + $0xb0] sm:$0xff] %v3415_v15  ;;  %v3384_v55 = vmul.f32 0.5, %v4985_v2  ;;  %v4462_v37 = vpop.f32.mrf.mxu0  ;;  %v3324_v44 = vmul.f32 0.5, %v3292_v8 }
 0x2fb   : > { %3446 = vst [vmem:[%s6178_s20 + $0xa8] sm:$0xff] %v3414_v0  ;;  %vm3229_vm5 = vcmp.ge.f32.partialorder %v3187_v34, 0.0  ;;  %v3261_v19 = vmul.f32 0.01, %v3187_v34  ;;  %v3029_v24 = vadd.f32 %v4461_v16, %v2868_v11  ;;  %v6326_v16 = vld [vmem:[#allocation12_spill] sm:$0xff] }
 0x2fc   : > { %v3416_v14 = vadd.f32 0.5, %v3384_v55  ;;  %v4463_v28 = vpop.f32.mrf.mxu0  ;;  %4992 = vtanh.f32 %v3324_v44 }
 0x2fd   : > { %v3293_v12 = vsel %vm3229_vm5, %v3187_v34, %v3261_v19  ;;  %v4464_v22 = vadd.f32 %v4463_v28, %v4462_v37  ;;  %v3190_v10 = vadd.f32 %v3189_v41, %v3029_v24 }
 0x2fe   : > { %v4987_v13 = vpop.eup %4986  ;;  %3448 = vst [vmem:[%s6178_s20 + $0xb8] sm:$0xff] %v3416_v14  ;;  %v3325_v32 = vmul.f32 0.5, %v3293_v12  ;;  %v4465_v59 = vpop.f32.mrf.mxu0  ;;  %v6327_v14 = vld [vmem:[#allocation10_spill] sm:$0xff]  ;;  %v6328_v12 = vld [vmem:[#allocation13_spill] sm:$0xff] }
 0x2ff   : > { %v3385_v43 = vmul.f32 0.5, %v4987_v13  ;;  %v3034_v40 = vadd.f32 %v4464_v22, %v2873_v53  ;;  %vm3230_vm6 = vcmp.ge.f32.partialorder %v3190_v10, 0.0  ;;  %v3262_v30 = vmul.f32 0.01, %v3190_v10 }
 0x300   : > { %4994 = vtanh.f32 %v3325_v32  ;;  %v4466_v26 = vpop.f32.mrf.mxu0 }
 0x301   : > { %v3417_v52 = vadd.f32 0.5, %v3385_v43  ;;  %v3195_v1 = vadd.f32 %v6205_v5, %v3034_v40  ;;  %v3294_v17 = vsel %vm3230_vm6, %v3190_v10, %v3262_v30  ;;  %v4467_v21 = vadd.f32 %v4466_v26, %v4465_v59  ;;  %v6329_v26 = vld [vmem:[#allocation11_spill] sm:$0xff] }
 0x302   : > { %v4989_v39 = vpop.eup %4988  ;;  %v3326_v33 = vmul.f32 0.5, %v3294_v17  ;;  %v4498_v49 = vpop.f32.mrf.mxu0 }
 0x303   : > { %3449 = vst [vmem:[%s6178_s20 + $0xc0] sm:$0xff] %v3417_v52  ;;  %v3386_v6 = vmul.f32 0.5, %v4989_v39  ;;  %vm3231_vm7 = vcmp.ge.f32.partialorder %v3195_v1, 0.0  ;;  %v3263_v23 = vmul.f32 0.01, %v3195_v1  ;;  %v3037_v50 = vadd.f32 %v4467_v21, %v2876_v47 }
 0x304   : > { %4996 = vtanh.f32 %v3326_v33  ;;  %v3083_v3 = vadd.f32 %v4498_v49, %v6046_v27  ;;  %v3074_v57 = vpop.f32.mrf.mxu0 }
 0x305   : > { %v4991_v35 = vpop.eup %4990  ;;  %v3418_v48 = vadd.f32 0.5, %v3386_v6  ;;  %v3295_v61 = vsel %vm3231_vm7, %v3195_v1, %v3263_v23  ;;  %v3198_v5 = vadd.f32 %v6218_v45, %v3037_v50  ;;  %v3075_v25 = vadd.f32 %v3074_v57, %v6036_v4 }
 0x306   : > { %v3387_v42 = vmul.f32 0.5, %v4991_v35  ;;  %v3327_v46 = vmul.f32 0.5, %v3295_v61  ;;  %vm3203_vm8 = vcmp.ge.f32.partialorder %v3083_v3, 0.0  ;;  %v3235_v58 = vmul.f32 0.01, %v3083_v3  ;;  %v4499_v56 = vpop.f32.mrf.mxu0 }
 0x307   : > { %3450 = vst [vmem:[%s6178_s20 + $0xc8] sm:$0xff] %v3418_v48  ;;  %vm3232_vm9 = vcmp.ge.f32.partialorder %v3198_v5, 0.0  ;;  %v3264_v20 = vmul.f32 0.01, %v3198_v5  ;;  %vm3201_vm10 = vcmp.ge.f32.partialorder %v3075_v25, 0.0  ;;  %v3086_v60 = vadd.f32 %v4499_v56, %v6052_v36 }
 0x308   : > { %v3233_v9 = vmul.f32 0.01, %v3075_v25  ;;  %v3419_v27 = vadd.f32 0.5, %v3387_v42  ;;  %4998 = vtanh.f32 %v3327_v46  ;;  %v3267_v51 = vsel %vm3203_vm8, %v3083_v3, %v3235_v58  ;;  %v3077_v31 = vpop.f32.mrf.mxu0 }
 0x309   : > { %v3296_v54 = vsel %vm3232_vm9, %v3198_v5, %v3264_v20  ;;  %v3299_v45 = vmul.f32 0.5, %v3267_v51  ;;  %v3078_v38 = vadd.f32 %v3077_v31, %v6325_v18  ;;  %v4993_v63 = vpop.eup %4992  ;;  %vm3204_vm11 = vcmp.ge.f32.partialorder %v3086_v60, 0.0 }
 0x30a   : > { %v3265_v4 = vsel %vm3201_vm10, %v3075_v25, %v3233_v9  ;;  %3451 = vst [vmem:[%s6178_s20 + $0xd0] sm:$0xff] %v3419_v27  ;;  %v3328_v15 = vmul.f32 0.5, %v3296_v54  ;;  %v3236_v62 = vmul.f32 0.01, %v3086_v60  ;;  %v4502_v2 = vpop.f32.mrf.mxu0  ;;  %v3388_v11 = vmul.f32 0.5, %v4993_v63 }
 0x30b   : > { %v3297_v29 = vmul.f32 0.5, %v3265_v4  ;;  %5000 = vtanh.f32 %v3299_v45  ;;  %vm3202_vm12 = vcmp.ge.f32.partialorder %v3078_v38, 0.0  ;;  %v3234_v0 = vmul.f32 0.01, %v3078_v38 }
 0x30c   : > { %5002 = vtanh.f32 %v3328_v15  ;;  %v3268_v36 = vsel %vm3204_vm11, %v3086_v60, %v3236_v62  ;;  %v3099_v34 = vadd.f32 %v4502_v2, %v6326_v16  ;;  %v3090_v55 = vpop.f32.mrf.mxu0  ;;  %v3420_v37 = vadd.f32 0.5, %v3388_v11 }
 0x30d   : > { %v4995_v8 = vpop.eup %4994  ;;  %5004 = vtanh.f32 %v3297_v29  ;;  %v3300_v41 = vmul.f32 0.5, %v3268_v36  ;;  %v3266_v44 = vsel %vm3202_vm12, %v3078_v38, %v3234_v0  ;;  %v3091_v28 = vadd.f32 %v3090_v55, %v6327_v14 }
 0x30e   : > { %v3389_v19 = vmul.f32 0.5, %v4995_v8  ;;  %v3298_v24 = vmul.f32 0.5, %v3266_v44  ;;  %vm3207_vm13 = vcmp.ge.f32.partialorder %v3099_v34, 0.0  ;;  %v3239_v53 = vmul.f32 0.01, %v3099_v34  ;;  %v4503_v7 = vpop.f32.mrf.mxu0  ;;  %3452 = vst [vmem:[%s6178_s20 + $0xd8] sm:$0xff] %v3420_v37 }
 0x30f   : > { %5006 = vtanh.f32 %v3300_v41  ;;  %v3102_v22 = vadd.f32 %v4503_v7, %v6328_v12  ;;  %vm3205_vm14 = vcmp.ge.f32.partialorder %v3091_v28, 0.0  ;;  %v3237_v40 = vmul.f32 0.01, %v3091_v28 }
 0x310   : > { %v3421_v10 = vadd.f32 0.5, %v3389_v19  ;;  %5008 = vtanh.f32 %v3298_v24  ;;  %v3271_v13 = vsel %vm3207_vm13, %v3099_v34, %v3239_v53  ;;  %v3093_v32 = vpop.f32.mrf.mxu0 }
 0x311   : > { %v4997_v59 = vpop.eup %4996  ;;  %v3303_v43 = vmul.f32 0.5, %v3271_v13  ;;  %vm3208_vm15 = vcmp.ge.f32.partialorder %v3102_v22, 0.0  ;;  %v3240_v47 = vmul.f32 0.01, %v3102_v22  ;;  %v3094_v52 = vadd.f32 %v3093_v32, %v6329_v26 }
 0x312   : > { %3453 = vst [vmem:[%s6178_s20 + $0xe0] sm:$0xff] %v3421_v10  ;;  %v3390_v30 = vmul.f32 0.5, %v4997_v59  ;;  %v3269_v1 = vsel %vm3205_vm14, %v3091_v28, %v3237_v40 }
 0x313   : > { %5010 = vtanh.f32 %v3303_v43  ;;  %v3301_v21 = vmul.f32 0.5, %v3269_v1  ;;  %v3272_v39 = vsel %vm3208_vm15, %v3102_v22, %v3240_v47  ;;  %vm3206_vm0 = vcmp.ge.f32.partialorder %v3094_v52, 0.0 }
 0x314   : > { %v3422_v17 = vadd.f32 0.5, %v3390_v30  ;;  %v3304_v49 = vmul.f32 0.5, %v3272_v39  ;;  %v3238_v6 = vmul.f32 0.01, %v3094_v52 }
 0x315   : > { %v4999_v33 = vpop.eup %4998  ;;  %5012 = vtanh.f32 %v3301_v21 }
 0x316   : > { %v3391_v23 = vmul.f32 0.5, %v4999_v33  ;;  %3454 = vst [vmem:[%s6178_s20 + $0xe8] sm:$0xff] %v3422_v17  ;;  %5014 = vtanh.f32 %v3304_v49  ;;  %v3270_v50 = vsel %vm3206_vm0, %v3094_v52, %v3238_v6 }
 0x317   : > { %v3302_v35 = vmul.f32 0.5, %v3270_v50 }
 0x318   : > { %v5001_v3 = vpop.eup %5000  ;;  %v3423_v57 = vadd.f32 0.5, %v3391_v23 }
 0x319   : > { %v5003_v48 = vpop.eup %5002  ;;  %v3363_v61 = vmul.f32 0.5, %v5001_v3  ;;  %5016 = vtanh.f32 %v3302_v35 }
 0x31a   : > { %v5005_v5 = vpop.eup %5004  ;;  %3455 = vst [vmem:[%s6178_s20 + $0xf0] sm:$0xff] %v3423_v57  ;;  %v3392_v25 = vmul.f32 0.5, %v5003_v48 }
 0x31b   : > { %v3395_v42 = vadd.f32 0.5, %v3363_v61  ;;  %v3361_v46 = vmul.f32 0.5, %v5005_v5 }
 0x31c   : > { %v5007_v58 = vpop.eup %5006  ;;  %v3424_v56 = vadd.f32 0.5, %v3392_v25 }
 0x31d   : > { %v5009_v20 = vpop.eup %5008  ;;  %3427 = vst [vmem:[%s6178_s20 + $0x10] sm:$0xff] %v3395_v42  ;;  %v3393_v9 = vadd.f32 0.5, %v3361_v46  ;;  %v3364_v27 = vmul.f32 0.5, %v5007_v58 }
 0x31e   : > { %3456 = vst [vmem:[%s6178_s20 + $0xf8] sm:$0xff] %v3424_v56  ;;  %v3362_v51 = vmul.f32 0.5, %v5009_v20 }
 0x31f   : > { %3425 = vst [vmem:[%s6178_s20] sm:$0xff] %v3393_v9  ;;  %v3396_v60 = vadd.f32 0.5, %v3364_v27 }
 0x320   : > { %v5011_v31 = vpop.eup %5010  ;;  %v3394_v54 = vadd.f32 0.5, %v3362_v51 }
 0x321   : > { %3428 = vst [vmem:[%s6178_s20 + $0x18] sm:$0xff] %v3396_v60  ;;  %v3367_v45 = vmul.f32 0.5, %v5011_v31 }
 0x322   : > { %3426 = vst [vmem:[%s6178_s20 + $0x8] sm:$0xff] %v3394_v54  ;;  %v5013_v4 = vpop.eup %5012 }
 0x323   : > { %v3399_v18 = vadd.f32 0.5, %v3367_v45  ;;  %v5015_v38 = vpop.eup %5014  ;;  %v3365_v63 = vmul.f32 0.5, %v5013_v4 }
 0x324   : > { %v3368_v15 = vmul.f32 0.5, %v5015_v38 }
 0x325   : > { %3431 = vst [vmem:[%s6178_s20 + $0x30] sm:$0xff] %v3399_v18  ;;  %v3397_v29 = vadd.f32 0.5, %v3365_v63 }
 0x326   : > { %v5017_v62 = vpop.eup %5016  ;;  %v3400_v2 = vadd.f32 0.5, %v3368_v15 }
 0x327   : > { %3429 = vst [vmem:[%s6178_s20 + $0x20] sm:$0xff] %v3397_v29  ;;  %v3366_v11 = vmul.f32 0.5, %v5017_v62 }
 0x328   : > { %3432 = vst [vmem:[%s6178_s20 + $0x38] sm:$0xff] %v3400_v2 }
 0x329   : > { %v3398_v0 = vadd.f32 0.5, %v3366_v11 }
 0x32b   : > { %3430 = vst [vmem:[%s6178_s20 + $0x28] sm:$0xff] %v3398_v0 }
 0x32c   : > { %5059 = shalt.err (!%p5056_p10)
}
 0x32d   : > { %s5060_s26 = scalar_lea.hbm %s6261_s23, 4096  ;;  %s5064_s7 = scalar_lea.hbm %s6311_s4, 8192 }
 0x32e   : > { %p5061_p0 = scmp.ne.s32.totalorder %s6261_s23, %s5060_s26  ;;  %p5065_p1 = scmp.lt.s32.totalorder %s6261_s23, %s6311_s4 }
 0x32f   : > { %p5066_p3 = scmp.lt.s32.totalorder %s5064_s7, %s5060_s26 }
 0x330   : > { %p5062_p2 = pnand %p5061_p0, %p6330_p12 }
 0x331   : > { %p5067_p6 = por %p5066_p3, %p5065_p1 }
 0x332   : > { %p5063_p9 = pneg %p5062_p2 }
 0x334   : > { %p5068_p11 = pnand %p5067_p6, %p5063_p9 }
 0x336   : > { %5071 = shalt.err (!%p5068_p11)
}
 0x337   : > { %s5116_s20 = smov 128   ;;  %s5117_s8 = smov 8  }
 0x338   : > { %4538 = dma.vmem_to_hbm [thread:$0]  (%p6330_p12), %s6263_s10, 4096, %s6261_s23, %s3458_s25, %s5116_s20, %s5116_s20, %s5117_s8  }
 0x339 PF: > { %s3486_s11 = sand.u32 1, %s5098_s15   ;;  %p6331_p13 = scmp.ne.s32.totalorder %s6317_s28, 0 }
 0x33a   : > { %p6332_p4 = scmp.ge.s32.totalorder %s5110_s18, 2  ;;  %s3487_s12 = scalar_lea.sflag [#allocation5], %s3486_s11 }
 0x33c   : > { %p4545_p5 = pnand %p6332_p4, %p6331_p13 }
 0x33e   : > { %p4546_p7 = pneg %p4545_p5 }
 0x340   : > { %5093 = dma.done.wait (%p4546_p7), %s3487_s12, 4096  }
 0x341   : > { %5095 = vsyncadd (%p4546_p7), %s3487_s12, 4294963200  ;;  %p17_p8 = scmp.ge.s32.totalorder %s5168_s21, 4   ;;  %s6333_s15 = smov %s5102_s16 }
 0x342   : > { %s6334_s16 = smov %s5106_s17  ;;  %s6335_s17 = smov %s5180_s24 }
 0x343   : > { %s6336_s18 = smov %s5168_s21  ;;  %19 = sbr.rel (!%p17_p8) target bundleno = 5 (0x5), region = 81 }
 0x348   :  { %3492 = vsyncpa [#allocation4], 1 }
 0x349   :  { %3494 = vsyncpa [#allocation4 + $0x1], 1 }
 0x34a   :  { %3495 = vsyncpa [#allocation5], 1 }
 0x34b   :  { %3497 = vsyncpa [#allocation5 + $0x1], 1 }

</bundles_post_ra>
